<compile_context>
chip_gen: v7x
topology: tpu7x:2x2x1
jax: 0.10.0
libtpu: 0.0.40
codegen_flags: <defaults>
</compile_context>

<pallas_src>
import functools

import numpy as np
import jax
import jax.numpy as jnp
from jax.experimental import pallas as pl
from jax.experimental.pallas import tpu as pltpu

NEG_SLOPE = 0.1   # leaky_relu() default in the original repo
LANE = 128


def _round_up(x, m):
    return (x + m - 1) // m * m


def _choose_tm(M, target=512):
    """Big tiles to amortize per-step overhead, but always >= 2 grid steps so
    v7x can shard the M axis across both TensorCores."""
    if M >= 2 * target:
        return target
    return max(8, _round_up((M + 1) // 2, 8))


# ---------------------------------------------------------------------------
# Pallas kernels
# ---------------------------------------------------------------------------
def _conv_mm_kernel(p_ref, w_ref, b_ref, o_ref, *, apply_act):
    # p_ref: (TM, K) bf16, w_ref: (K, Cp) bf16, b_ref: (1, Cp) f32
    acc = jnp.dot(p_ref[...], w_ref[...], preferred_element_type=jnp.float32)
    acc = acc + b_ref[...]
    if apply_act:
        acc = jnp.where(acc >= 0, acc, acc * NEG_SLOPE)
    o_ref[...] = acc.astype(o_ref.dtype)


def _final_fused_kernel(p_ref, w1_ref, b1_ref, w2_ref, b2_ref, o_ref):
    # 3x3 conv (as matmul) + bias + LeakyReLU + 1x1 conv (as matmul) + bias.
    y = jnp.dot(p_ref[...], w1_ref[...], preferred_element_type=jnp.float32)
    y = y + b1_ref[...]
    y = jnp.where(y >= 0, y, y * NEG_SLOPE)
    acc = jnp.dot(y.astype(w2_ref.dtype), w2_ref[...],
                  preferred_element_type=jnp.float32)
    acc = acc + b2_ref[...]
    o_ref[...] = acc.astype(o_ref.dtype)


# ---------------------------------------------------------------------------
# Plain-JAX glue: im2col (natural K order) + grouped matmul weight
# ---------------------------------------------------------------------------
def _im2col(x_nhwc, cin, KH, KW, stride, padding):
    """Patches (M, K) with K ordered (kh, kw, cin).

    Channels beyond `cin` (lane-padding carried over from the previous layer's
    lane-dense output) are dropped lazily so the slice fuses into the
    pad/stack fusion instead of costing a separate HBM copy.
    """
    N, H, W, C = x_nhwc.shape
    xp = x_nhwc[..., :cin] if cin < C else x_nhwc
    if padding > 0:
        xp = jnp.pad(xp, ((0, 0), (padding, padding), (padding, padding), (0, 0)))
    Hp, Wp = xp.shape[1], xp.shape[2]
    Ho = (Hp - KH) // stride + 1
    Wo = (Wp - KW) // stride + 1
    cols = []
    for i in range(KH):
        for j in range(KW):
            cols.append(xp[:, i:i + (Ho - 1) * stride + 1:stride,
                              j:j + (Wo - 1) * stride + 1:stride, :])
    p = jnp.stack(cols, axis=3)                       # (N, Ho, Wo, KK, cin)
    p = p.reshape(N * Ho * Wo, KH * KW * cin)         # K order: (kh, kw, cin)
    return p, Ho, Wo


def _matmul_weight(w, groups):
    """PyTorch (Cout, Cin_g, KH, KW) -> (KH*KW*Cin, Cout) matmul weight whose
    row order matches the im2col K order (kh, kw, cin); grouped-conv structure
    is encoded as a block mask over channels."""
    Cout, Cin_g, KH, KW = w.shape
    Cin = Cin_g * groups
    Cout_g = Cout // groups
    if groups == 1:
        return jnp.transpose(w, (2, 3, 1, 0)).reshape(KH * KW * Cin, Cout)
    wg = w.reshape(groups, Cout_g, Cin_g, KH, KW)     # (g, o, i, kh, kw)
    eye = jnp.eye(groups, dtype=w.dtype)
    # full[h, w, b, i, a, o] = wg[a, o, i, h, w] * delta(a, b)
    full = jnp.einsum('aoihw,ab->hwbiao', wg, eye)
    return full.reshape(KH * KW * Cin, Cout)


# ---------------------------------------------------------------------------
# Conv2d (possibly grouped / strided / padded) + optional LeakyReLU
# ---------------------------------------------------------------------------
def conv2d_pallas(x_nhwc, cin, w, b, *, stride, padding, groups, apply_act,
                  out_dtype=jnp.bfloat16):
    """Returns (out_nhwc_with_lane_padded_channels, actual_cout)."""
    N = x_nhwc.shape[0]
    Cout, _, KH, KW = w.shape
    p, Ho, Wo = _im2col(x_nhwc.astype(jnp.bfloat16), cin, KH, KW, stride, padding)
    M, K = p.shape

    Cp = _round_up(Cout, LANE)            # lane-dense output slab
    TM = _choose_tm(M)
    grid_m = -(-M // TM)                  # ragged last block is masked by Pallas

    wmat = jnp.pad(_matmul_weight(w, groups),
                   ((0, 0), (0, Cp - Cout))).astype(jnp.bfloat16)
    bmat = jnp.pad(b, (0, Cp - Cout)).reshape(1, Cp).astype(jnp.float32)

    # True (unpadded) cost so XLA can schedule/overlap the glue sensibly.
    flops = int(2 * M * K * Cout)
    bytes_accessed = int(M * K * 2 + K * Cp * 2 + Cp * 4
                         + M * Cp * jnp.dtype(out_dtype).itemsize)

    out = pl.pallas_call(
        functools.partial(_conv_mm_kernel, apply_act=apply_act),
        out_shape=jax.ShapeDtypeStruct((M, Cp), out_dtype),
        grid=(grid_m,),
        in_specs=[
            pl.BlockSpec((TM, K), lambda i: (i, 0)),   # K untiled (full dim)
            pl.BlockSpec((K, Cp), lambda i: (0, 0)),   # resident weight
            pl.BlockSpec((1, Cp), lambda i: (0, 0)),   # resident bias
        ],
        out_specs=pl.BlockSpec((TM, Cp), lambda i: (i, 0)),
        compiler_params=pltpu.CompilerParams(dimension_semantics=("parallel",)),
        cost_estimate=pl.CostEstimate(flops=flops, transcendentals=0,
                                      bytes_accessed=bytes_accessed),
    )(p, wmat, bmat)

    return out.reshape(N, Ho, Wo, Cp), Cout


def final_conv_fused_pallas(x_nhwc, cin, w1, b1, w2, b2):
    """Conv2d(C, C, 3) + LeakyReLU(0.1) + Conv2d(C, 1, 1) fused in one kernel."""
    N = x_nhwc.shape[0]
    C1 = w1.shape[0]
    C2 = w2.shape[0]
    p, Ho, Wo = _im2col(x_nhwc.astype(jnp.bfloat16), cin, 3, 3, 1, 0)
    M, K = p.shape

    C1p = _round_up(C1, LANE)
    C2p = _round_up(C2, LANE)
    TM = _choose_tm(M)
    grid_m = -(-M // TM)

    w1m = jnp.pad(_matmul_weight(w1, 1),
                  ((0, 0), (0, C1p - C1))).astype(jnp.bfloat16)
    b1m = jnp.pad(b1, (0, C1p - C1)).reshape(1, C1p).astype(jnp.float32)
    w2m = jnp.pad(w2.reshape(C2, C1).T,
                  ((0, C1p - C1), (0, C2p - C2))).astype(jnp.bfloat16)
    b2m = jnp.pad(b2, (0, C2p - C2)).reshape(1, C2p).astype(jnp.float32)

    flops = int(2 * M * (K * C1 + C1 * C2))
    bytes_accessed = int(M * K * 2 + K * C1p * 2 + C1p * C2p * 2
                         + (C1p + C2p) * 4 + M * C2p * 4)

    out = pl.pallas_call(
        _final_fused_kernel,
        out_shape=jax.ShapeDtypeStruct((M, C2p), jnp.float32),
        grid=(grid_m,),
        in_specs=[
            pl.BlockSpec((TM, K), lambda i: (i, 0)),
            pl.BlockSpec((K, C1p), lambda i: (0, 0)),
            pl.BlockSpec((1, C1p), lambda i: (0, 0)),
            pl.BlockSpec((C1p, C2p), lambda i: (0, 0)),
            pl.BlockSpec((1, C2p), lambda i: (0, 0)),
        ],
        out_specs=pl.BlockSpec((TM, C2p), lambda i: (i, 0)),
        compiler_params=pltpu.CompilerParams(dimension_semantics=("parallel",)),
        cost_estimate=pl.CostEstimate(flops=flops, transcendentals=0,
                                      bytes_accessed=bytes_accessed),
    )(p, w1m, b1m, w2m, b2m)

    return out.reshape(N, Ho, Wo, C2p), C2


# ---------------------------------------------------------------------------
# Parameter construction (deterministic, PyTorch-style uniform(-1/sqrt(fan_in)))
# ---------------------------------------------------------------------------
def make_params(key, channels=8, layers=2, groups=4, chan_max=128, input_channels=1):
    specs = []
    specs.append(dict(cout=channels, cin=input_channels, groups=1, k=4, s=1, p=0, act=False))
    curr = channels
    for _ in range(layers):
        cout = min(curr * 4, chan_max)
        specs.append(dict(cout=cout, cin=curr, groups=groups, k=4, s=2, p=2, act=True))
        curr = cout
    specs.append(dict(cout=curr, cin=curr, groups=1, k=3, s=1, p=0, act=True))
    specs.append(dict(cout=1, cin=curr, groups=1, k=1, s=1, p=0, act=False))

    params = []
    for spec in specs:
        key, k1, k2 = jax.random.split(key, 3)
        cin_g = spec["cin"] // spec["groups"]
        fan_in = cin_g * spec["k"] * spec["k"]
        bound = 1.0 / float(np.sqrt(fan_in))
        w = jax.random.uniform(k1, (spec["cout"], cin_g, spec["k"], spec["k"]),
                               jnp.float32, -bound, bound)
        b = jax.random.uniform(k2, (spec["cout"],), jnp.float32, -bound, bound)
        params.append((w, b, spec))
    return params


def nlayer_discriminator_forward(params, x_nchw, return_intermediates=False):
    # External layout NCHW (PyTorch), NHWC inside; channels stay lane-padded
    # between layers and are sliced lazily by the consumer / once at the end.
    x = jnp.transpose(x_nchw, (0, 2, 3, 1))
    cin = x.shape[-1]
    n_body = len(params) - 3   # params = [init] + body layers + [final0, final1]

    # init_conv
    w, b, s = params[0]
    x, cin = conv2d_pallas(x, cin, w, b, stride=s["s"], padding=s["p"],
                           groups=s["groups"], apply_act=s["act"])

    # conv_layers (each: grouped strided conv + LeakyReLU)
    intermediates = []
    for w, b, s in params[1:1 + n_body]:
        x, cin = conv2d_pallas(x, cin, w, b, stride=s["s"], padding=s["p"],
                               groups=s["groups"], apply_act=s["act"])
        if return_intermediates:
            intermediates.append(
                jnp.transpose(x[..., :cin].astype(jnp.float32), (0, 3, 1, 2)))

    # final_conv: Conv2d(C,C,3) + LeakyReLU + Conv2d(C,1,1) fused into one kernel
    (w1, b1, _), (w2, b2, _) = params[1 + n_body:]
    y, cfin = final_conv_fused_pallas(x, cin, w1, b1, w2, b2)

    out = jnp.transpose(y[..., :cfin], (0, 3, 1, 2))
    if return_intermediates:
        return out, intermediates
    return out


# ---------------------------------------------------------------------------
# Matched-precision pure-JAX reference (bf16 operands, f32 accumulate,
# bf16 inter-layer handoff) for numerical validation.
# ---------------------------------------------------------------------------
def _ref_forward(params, x_nchw):
    x = jnp.transpose(x_nchw, (0, 2, 3, 1))
    n = len(params)
    for idx, (w, b, s) in enumerate(params):
        y = jax.lax.conv_general_dilated(
            x.astype(jnp.bfloat16),
            jnp.transpose(w, (2, 3, 1, 0)).astype(jnp.bfloat16),
            window_strides=(s["s"], s["s"]),
            padding=((s["p"], s["p"]), (s["p"], s["p"])),
            dimension_numbers=("NHWC", "HWIO", "NHWC"),
            feature_group_count=s["groups"],
            preferred_element_type=jnp.float32,
        ) + b
        if s["act"]:
            y = jnp.where(y >= 0, y, NEG_SLOPE * y)
        x = y if idx == n - 1 else y.astype(jnp.bfloat16)
    return jnp.transpose(x, (0, 3, 1, 2))


if __name__ == "__main__":
    key = jax.random.PRNGKey(0)
    kx, kp = jax.random.split(key)

    # Small instantiation: NLayerDiscriminator(channels=8, layers=2, groups=4,
    # chan_max=128, input_channels=1), input (N=2, C=1, H=32, W=32).
    x = jax.random.normal(kx, (2, 1, 32, 32), jnp.float32)
    params = make_params(kp, channels=8, layers=2, groups=4, chan_max=128,
                         input_channels=1)

    fwd = jax.jit(functools.partial(nlayer_discriminator_forward, params))
    out = jax.block_until_ready(fwd(x))
    assert out.shape == (2, 1, 6, 6), out.shape

    ref = jax.block_until_ready(jax.jit(functools.partial(_ref_forward, params))(x))
    np.testing.assert_allclose(np.asarray(out), np.asarray(ref),
                               rtol=5e-3, atol=5e-3)
    print("KERNEL_OK")
</pallas_src>

<mosaic_0001>
module attributes {stable_mosaic.version = 11 : i64} {
  func.func @_conv_mm_kernel(%arg0: i32, %arg1: memref<512x16xbf16, #tpu.memory_space<vmem>>, %arg2: memref<16x128xbf16, #tpu.memory_space<vmem>>, %arg3: memref<1x128xf32, #tpu.memory_space<vmem>>, %arg4: memref<512x128xbf16, #tpu.memory_space<vmem>>) attributes {dimension_semantics = [#tpu.dimension_semantics<parallel>], iteration_bounds = array<i64: 4>, scalar_prefetch = 0 : i64, scratch_operands = 0 : i64, tpu.core_type = #tpu.core_type<tc>, window_params = [{transform_indices = @transform_0, window_bounds = array<i64: 512, 16>}, {pipeline_mode = #tpu.pipeline_mode<synchronous>, transform_indices = @transform_1, window_bounds = array<i64: 16, 128>}, {pipeline_mode = #tpu.pipeline_mode<synchronous>, transform_indices = @transform_2, window_bounds = array<i64: 1, 128>}, {transform_indices = @transform_3, window_bounds = array<i64: 512, 128>}]} {
    %c0 = arith.constant 0 : index
    %c0_0 = arith.constant 0 : index
    %0 = vector.load %arg1[%c0, %c0_0] : memref<512x16xbf16, #tpu.memory_space<vmem>>, vector<512x16xbf16>
    %c0_1 = arith.constant 0 : index
    %c0_2 = arith.constant 0 : index
    %1 = vector.load %arg2[%c0_1, %c0_2] : memref<16x128xbf16, #tpu.memory_space<vmem>>, vector<16x128xbf16>
    %cst = arith.constant dense<0.000000e+00> : vector<512x128xf32>
    %2 = tpu.matmul %0, %1, %cst {dimension_numbers = #tpu.dot_dimension_numbers<[1], [0], [0], [1], [0, 0, 1, 1], [], []>} : vector<512x16xbf16>, vector<16x128xbf16>, vector<512x128xf32> -> vector<512x128xf32>
    %c0_3 = arith.constant 0 : index
    %c0_4 = arith.constant 0 : index
    %3 = vector.load %arg3[%c0_3, %c0_4] : memref<1x128xf32, #tpu.memory_space<vmem>>, vector<1x128xf32>
    %4 = vector.broadcast %3 : vector<1x128xf32> to vector<512x128xf32>
    %5 = arith.addf %2, %4 : vector<512x128xf32>
    %6 = arith.truncf %5 : vector<512x128xf32> to vector<512x128xbf16>
    %c0_5 = arith.constant 0 : index
    %c0_6 = arith.constant 0 : index
    %7 = vector.load %arg4[%c0_5, %c0_6] : memref<512x128xbf16, #tpu.memory_space<vmem>>, vector<512x128xbf16>
    tpu.vector_store %arg4[%c0_5, %c0_6], %6 {strides = array<i32>} : memref<512x128xbf16, #tpu.memory_space<vmem>>, vector<512x128xbf16>,
    return
  }
  func.func @transform_0(%arg0: i32) -> (i32, i32) {
    %c0_i32 = arith.constant 0 : i32
    %c0_i32_0 = arith.constant 0 : i32
    return %arg0, %c0_i32 : i32, i32
  }
  func.func @transform_1(%arg0: i32) -> (i32, i32) {
    %c0_i32 = arith.constant 0 : i32
    %c0_i32_0 = arith.constant 0 : i32
    %c0_i32_1 = arith.constant 0 : i32
    return %c0_i32, %c0_i32_0 : i32, i32
  }
  func.func @transform_2(%arg0: i32) -> (i32, i32) {
    %c0_i32 = arith.constant 0 : i32
    %c0_i32_0 = arith.constant 0 : i32
    %c0_i32_1 = arith.constant 0 : i32
    return %c0_i32, %c0_i32_0 : i32, i32
  }
  func.func @transform_3(%arg0: i32) -> (i32, i32) {
    %c0_i32 = arith.constant 0 : i32
    %c0_i32_0 = arith.constant 0 : i32
    return %arg0, %c0_i32 : i32, i32
  }
}

module attributes {stable_mosaic.version = 11 : i64} {
  func.func @_conv_mm_kernel(%arg0: i32, %arg1: memref<232x128xbf16, #tpu.memory_space<vmem>>, %arg2: memref<128x128xbf16, #tpu.memory_space<vmem>>, %arg3: memref<1x128xf32, #tpu.memory_space<vmem>>, %arg4: memref<232x128xbf16, #tpu.memory_space<vmem>>) attributes {dimension_semantics = [#tpu.dimension_semantics<parallel>], iteration_bounds = array<i64: 2>, scalar_prefetch = 0 : i64, scratch_operands = 0 : i64, tpu.core_type = #tpu.core_type<tc>, window_params = [{transform_indices = @transform_0, window_bounds = array<i64: 232, 128>}, {pipeline_mode = #tpu.pipeline_mode<synchronous>, transform_indices = @transform_1, window_bounds = array<i64: 128, 128>}, {pipeline_mode = #tpu.pipeline_mode<synchronous>, transform_indices = @transform_2, window_bounds = array<i64: 1, 128>}, {transform_indices = @transform_3, window_bounds = array<i64: 232, 128>}]} {
    %c0 = arith.constant 0 : index
    %c0_0 = arith.constant 0 : index
    %0 = vector.load %arg1[%c0, %c0_0] : memref<232x128xbf16, #tpu.memory_space<vmem>>, vector<232x128xbf16>
    %c0_1 = arith.constant 0 : index
    %c0_2 = arith.constant 0 : index
    %1 = vector.load %arg2[%c0_1, %c0_2] : memref<128x128xbf16, #tpu.memory_space<vmem>>, vector<128x128xbf16>
    %cst = arith.constant dense<0.000000e+00> : vector<232x128xf32>
    %2 = tpu.matmul %0, %1, %cst {dimension_numbers = #tpu.dot_dimension_numbers<[1], [0], [0], [1], [0, 0, 1, 1], [], []>} : vector<232x128xbf16>, vector<128x128xbf16>, vector<232x128xf32> -> vector<232x128xf32>
    %c0_3 = arith.constant 0 : index
    %c0_4 = arith.constant 0 : index
    %3 = vector.load %arg3[%c0_3, %c0_4] : memref<1x128xf32, #tpu.memory_space<vmem>>, vector<1x128xf32>
    %4 = vector.broadcast %3 : vector<1x128xf32> to vector<232x128xf32>
    %5 = arith.addf %2, %4 : vector<232x128xf32>
    %cst_5 = arith.constant 0.000000e+00 : f32
    %6 = vector.broadcast %cst_5 : f32 to vector<232x128xf32>
    %7 = arith.cmpf oge, %5, %6 : vector<232x128xf32>
    %cst_6 = arith.constant 1.000000e-01 : f32
    %8 = vector.broadcast %cst_6 : f32 to vector<232x128xf32>
    %9 = arith.mulf %5, %8 : vector<232x128xf32>
    %10 = arith.select %7, %5, %9 : vector<232x128xi1>, vector<232x128xf32>
    %11 = arith.truncf %10 : vector<232x128xf32> to vector<232x128xbf16>
    %c0_7 = arith.constant 0 : index
    %c0_8 = arith.constant 0 : index
    %12 = vector.load %arg4[%c0_7, %c0_8] : memref<232x128xbf16, #tpu.memory_space<vmem>>, vector<232x128xbf16>
    tpu.vector_store %arg4[%c0_7, %c0_8], %11 {strides = array<i32>} : memref<232x128xbf16, #tpu.memory_space<vmem>>, vector<232x128xbf16>,
    return
  }
  func.func @transform_0(%arg0: i32) -> (i32, i32) {
    %c0_i32 = arith.constant 0 : i32
    %c0_i32_0 = arith.constant 0 : i32
    return %arg0, %c0_i32 : i32, i32
  }
  func.func @transform_1(%arg0: i32) -> (i32, i32) {
    %c0_i32 = arith.constant 0 : i32
    %c0_i32_0 = arith.constant 0 : i32
    %c0_i32_1 = arith.constant 0 : i32
    return %c0_i32, %c0_i32_0 : i32, i32
  }
  func.func @transform_2(%arg0: i32) -> (i32, i32) {
    %c0_i32 = arith.constant 0 : i32
    %c0_i32_0 = arith.constant 0 : i32
    %c0_i32_1 = arith.constant 0 : i32
    return %c0_i32, %c0_i32_0 : i32, i32
  }
  func.func @transform_3(%arg0: i32) -> (i32, i32) {
    %c0_i32 = arith.constant 0 : i32
    %c0_i32_0 = arith.constant 0 : i32
    return %arg0, %c0_i32 : i32, i32
  }
}

module attributes {stable_mosaic.version = 11 : i64} {
  func.func @_conv_mm_kernel(%arg0: i32, %arg1: memref<64x512xbf16, #tpu.memory_space<vmem>>, %arg2: memref<512x128xbf16, #tpu.memory_space<vmem>>, %arg3: memref<1x128xf32, #tpu.memory_space<vmem>>, %arg4: memref<64x128xbf16, #tpu.memory_space<vmem>>) attributes {dimension_semantics = [#tpu.dimension_semantics<parallel>], iteration_bounds = array<i64: 2>, scalar_prefetch = 0 : i64, scratch_operands = 0 : i64, tpu.core_type = #tpu.core_type<tc>, window_params = [{transform_indices = @transform_0, window_bounds = array<i64: 64, 512>}, {pipeline_mode = #tpu.pipeline_mode<synchronous>, transform_indices = @transform_1, window_bounds = array<i64: 512, 128>}, {pipeline_mode = #tpu.pipeline_mode<synchronous>, transform_indices = @transform_2, window_bounds = array<i64: 1, 128>}, {transform_indices = @transform_3, window_bounds = array<i64: 64, 128>}]} {
    %c0 = arith.constant 0 : index
    %c0_0 = arith.constant 0 : index
    %0 = vector.load %arg1[%c0, %c0_0] : memref<64x512xbf16, #tpu.memory_space<vmem>>, vector<64x512xbf16>
    %c0_1 = arith.constant 0 : index
    %c0_2 = arith.constant 0 : index
    %1 = vector.load %arg2[%c0_1, %c0_2] : memref<512x128xbf16, #tpu.memory_space<vmem>>, vector<512x128xbf16>
    %cst = arith.constant dense<0.000000e+00> : vector<64x128xf32>
    %2 = tpu.matmul %0, %1, %cst {dimension_numbers = #tpu.dot_dimension_numbers<[1], [0], [0], [1], [0, 0, 1, 1], [], []>} : vector<64x512xbf16>, vector<512x128xbf16>, vector<64x128xf32> -> vector<64x128xf32>
    %c0_3 = arith.constant 0 : index
    %c0_4 = arith.constant 0 : index
    %3 = vector.load %arg3[%c0_3, %c0_4] : memref<1x128xf32, #tpu.memory_space<vmem>>, vector<1x128xf32>
    %4 = vector.broadcast %3 : vector<1x128xf32> to vector<64x128xf32>
    %5 = arith.addf %2, %4 : vector<64x128xf32>
    %cst_5 = arith.constant 0.000000e+00 : f32
    %6 = vector.broadcast %cst_5 : f32 to vector<64x128xf32>
    %7 = arith.cmpf oge, %5, %6 : vector<64x128xf32>
    %cst_6 = arith.constant 1.000000e-01 : f32
    %8 = vector.broadcast %cst_6 : f32 to vector<64x128xf32>
    %9 = arith.mulf %5, %8 : vector<64x128xf32>
    %10 = arith.select %7, %5, %9 : vector<64x128xi1>, vector<64x128xf32>
    %11 = arith.truncf %10 : vector<64x128xf32> to vector<64x128xbf16>
    %c0_7 = arith.constant 0 : index
    %c0_8 = arith.constant 0 : index
    %12 = vector.load %arg4[%c0_7, %c0_8] : memref<64x128xbf16, #tpu.memory_space<vmem>>, vector<64x128xbf16>
    tpu.vector_store %arg4[%c0_7, %c0_8], %11 {strides = array<i32>} : memref<64x128xbf16, #tpu.memory_space<vmem>>, vector<64x128xbf16>,
    return
  }
  func.func @transform_0(%arg0: i32) -> (i32, i32) {
    %c0_i32 = arith.constant 0 : i32
    %c0_i32_0 = arith.constant 0 : i32
    return %arg0, %c0_i32 : i32, i32
  }
  func.func @transform_1(%arg0: i32) -> (i32, i32) {
    %c0_i32 = arith.constant 0 : i32
    %c0_i32_0 = arith.constant 0 : i32
    %c0_i32_1 = arith.constant 0 : i32
    return %c0_i32, %c0_i32_0 : i32, i32
  }
  func.func @transform_2(%arg0: i32) -> (i32, i32) {
    %c0_i32 = arith.constant 0 : i32
    %c0_i32_0 = arith.constant 0 : i32
    %c0_i32_1 = arith.constant 0 : i32
    return %c0_i32, %c0_i32_0 : i32, i32
  }
  func.func @transform_3(%arg0: i32) -> (i32, i32) {
    %c0_i32 = arith.constant 0 : i32
    %c0_i32_0 = arith.constant 0 : i32
    return %arg0, %c0_i32 : i32, i32
  }
}

module attributes {stable_mosaic.version = 11 : i64} {
  func.func @_final_fused_kernel(%arg0: i32, %arg1: memref<40x1152xbf16, #tpu.memory_space<vmem>>, %arg2: memref<1152x128xbf16, #tpu.memory_space<vmem>>, %arg3: memref<1x128xf32, #tpu.memory_space<vmem>>, %arg4: memref<128x128xbf16, #tpu.memory_space<vmem>>, %arg5: memref<1x128xf32, #tpu.memory_space<vmem>>, %arg6: memref<40x128xf32, #tpu.memory_space<vmem>>) attributes {dimension_semantics = [#tpu.dimension_semantics<parallel>], iteration_bounds = array<i64: 2>, scalar_prefetch = 0 : i64, scratch_operands = 0 : i64, tpu.core_type = #tpu.core_type<tc>, window_params = [{transform_indices = @transform_0, window_bounds = array<i64: 40, 1152>}, {pipeline_mode = #tpu.pipeline_mode<synchronous>, transform_indices = @transform_1, window_bounds = array<i64: 1152, 128>}, {pipeline_mode = #tpu.pipeline_mode<synchronous>, transform_indices = @transform_2, window_bounds = array<i64: 1, 128>}, {pipeline_mode = #tpu.pipeline_mode<synchronous>, transform_indices = @transform_3, window_bounds = array<i64: 128, 128>}, {pipeline_mode = #tpu.pipeline_mode<synchronous>, transform_indices = @transform_4, window_bounds = array<i64: 1, 128>}, {transform_indices = @transform_5, window_bounds = array<i64: 40, 128>}]} {
    %c0 = arith.constant 0 : index
    %c0_0 = arith.constant 0 : index
    %0 = vector.load %arg1[%c0, %c0_0] : memref<40x1152xbf16, #tpu.memory_space<vmem>>, vector<40x1152xbf16>
    %c0_1 = arith.constant 0 : index
    %c0_2 = arith.constant 0 : index
    %1 = vector.load %arg2[%c0_1, %c0_2] : memref<1152x128xbf16, #tpu.memory_space<vmem>>, vector<1152x128xbf16>
    %cst = arith.constant dense<0.000000e+00> : vector<40x128xf32>
    %2 = tpu.matmul %0, %1, %cst {dimension_numbers = #tpu.dot_dimension_numbers<[1], [0], [0], [1], [0, 0, 1, 1], [], []>} : vector<40x1152xbf16>, vector<1152x128xbf16>, vector<40x128xf32> -> vector<40x128xf32>
    %c0_3 = arith.constant 0 : index
    %c0_4 = arith.constant 0 : index
    %3 = vector.load %arg3[%c0_3, %c0_4] : memref<1x128xf32, #tpu.memory_space<vmem>>, vector<1x128xf32>
    %4 = vector.broadcast %3 : vector<1x128xf32> to vector<40x128xf32>
    %5 = arith.addf %2, %4 : vector<40x128xf32>
    %cst_5 = arith.constant 0.000000e+00 : f32
    %6 = vector.broadcast %cst_5 : f32 to vector<40x128xf32>
    %7 = arith.cmpf oge, %5, %6 : vector<40x128xf32>
    %cst_6 = arith.constant 1.000000e-01 : f32
    %8 = vector.broadcast %cst_6 : f32 to vector<40x128xf32>
    %9 = arith.mulf %5, %8 : vector<40x128xf32>
    %10 = arith.select %7, %5, %9 : vector<40x128xi1>, vector<40x128xf32>
    %11 = arith.truncf %10 : vector<40x128xf32> to vector<40x128xbf16>
    %c0_7 = arith.constant 0 : index
    %c0_8 = arith.constant 0 : index
    %12 = vector.load %arg4[%c0_7, %c0_8] : memref<128x128xbf16, #tpu.memory_space<vmem>>, vector<128x128xbf16>
    %cst_9 = arith.constant dense<0.000000e+00> : vector<40x128xf32>
    %13 = tpu.matmul %11, %12, %cst_9 {dimension_numbers = #tpu.dot_dimension_numbers<[1], [0], [0], [1], [0, 0, 1, 1], [], []>} : vector<40x128xbf16>, vector<128x128xbf16>, vector<40x128xf32> -> vector<40x128xf32>
    %c0_10 = arith.constant 0 : index
    %c0_11 = arith.constant 0 : index
    %14 = vector.load %arg5[%c0_10, %c0_11] : memref<1x128xf32, #tpu.memory_space<vmem>>, vector<1x128xf32>
    %15 = vector.broadcast %14 : vector<1x128xf32> to vector<40x128xf32>
    %16 = arith.addf %13, %15 : vector<40x128xf32>
    %c0_12 = arith.constant 0 : index
    %c0_13 = arith.constant 0 : index
    %17 = vector.load %arg6[%c0_12, %c0_13] : memref<40x128xf32, #tpu.memory_space<vmem>>, vector<40x128xf32>
    tpu.vector_store %arg6[%c0_12, %c0_13], %16 {strides = array<i32>} : memref<40x128xf32, #tpu.memory_space<vmem>>, vector<40x128xf32>,
    return
  }
  func.func @transform_0(%arg0: i32) -> (i32, i32) {
    %c0_i32 = arith.constant 0 : i32
    %c0_i32_0 = arith.constant 0 : i32
    return %arg0, %c0_i32 : i32, i32
  }
  func.func @transform_1(%arg0: i32) -> (i32, i32) {
    %c0_i32 = arith.constant 0 : i32
    %c0_i32_0 = arith.constant 0 : i32
    %c0_i32_1 = arith.constant 0 : i32
    return %c0_i32, %c0_i32_0 : i32, i32
  }
  func.func @transform_2(%arg0: i32) -> (i32, i32) {
    %c0_i32 = arith.constant 0 : i32
    %c0_i32_0 = arith.constant 0 : i32
    %c0_i32_1 = arith.constant 0 : i32
    return %c0_i32, %c0_i32_0 : i32, i32
  }
  func.func @transform_3(%arg0: i32) -> (i32, i32) {
    %c0_i32 = arith.constant 0 : i32
    %c0_i32_0 = arith.constant 0 : i32
    %c0_i32_1 = arith.constant 0 : i32
    return %c0_i32, %c0_i32_0 : i32, i32
  }
  func.func @transform_4(%arg0: i32) -> (i32, i32) {
    %c0_i32 = arith.constant 0 : i32
    %c0_i32_0 = arith.constant 0 : i32
    %c0_i32_1 = arith.constant 0 : i32
    return %c0_i32, %c0_i32_0 : i32, i32
  }
  func.func @transform_5(%arg0: i32) -> (i32, i32) {
    %c0_i32 = arith.constant 0 : i32
    %c0_i32_0 = arith.constant 0 : i32
    return %arg0, %c0_i32 : i32, i32
  }
}

</mosaic_0001>

<bundles_post_ra>
// kernel: nlayer_discriminator_forward.4
= control target key start
LH: loop header
LB: loop body
LE: loop exit
PB: predicated region body
PF: predicated region fallthrough
CT: control target
= control target key end

     0   :  { %8 = vsyncpa [#allocation3], 0  ;;  %s2967_s0 = inlined_call_operand.vmem [shape: bf16[1682,16], index: 0, kind: input, shape index: {}]   ;;  %s2968_s1 = inlined_call_operand.hbm [shape: bf16[16,128], index: 1, kind: input, shape index: {}]   ;;  %s2969_s2 = inlined_call_operand.hbm [shape: f32[1,128], index: 2, kind: input, shape index: {}]   ;;  %s2970_s3 = inlined_call_operand.vmem [shape: bf16[1682,128], index: 3, kind: output, shape index: {}]  }
   0x1   :  { %9 = vsyncpa [#allocation5], 0  ;;  %s2491_s12 = smov 0   ;;  %s2493_s13 = smov 0  }
   0x2   :  { %s2495_s14 = smov 0  }
   0x3 LB: > { %s2504_s15 = sadd.s32 4294967295, %s2433_s14   ;;  %s2506_s16 = sadd.s32 1, %s2433_s14   ;;  %s2433_s14 = sphi %s2495_s14, %s2987_s14   ;;  %s2429_s13 = sphi %s2493_s13, %s2986_s13   ;;  %s2425_s12 = sphi %s2491_s12, %s2985_s12  }
   0x4   : > { %s87_s17 = ssub.s32 %s2433_s14, %s2506_s16  ;;  %s90_s18 = sadd.s32 1, %s2429_s13 }
   0x5   : > { %p88_p0 = scmp.eq.s32.totalorder %s87_s17, 0  ;;  %p100_p1 = scmp.ne.s32.totalorder %s2429_s13, %s2425_s12 }
   0x6   : > { %p101_p2 = scmp.eq.s32.totalorder %s2504_s15, 3  ;;  %p1655_p3 = scmp.ge.s32.totalorder %s2433_s14, 1 }
   0x7   : > { %s2514_s19 = scalar_select %p88_p0, %s2429_s13, %s90_s18  }
   0x8   : > { %p2516_p4 = por %p101_p2, %p100_p1  ;;  %p114_p5 = scmp.lt.s32.totalorder %s2433_s14, 5 }
   0x9   : > { %p2971_p6 = scmp.eq.s32.totalorder %s2504_s15, 0  ;;  %s2467_s22 = smov [#allocation2]  }
   0xa   : > { %s2973_s20 = scalar_select %p2516_p4, 1, 0 }
   0xb   : > { %p2521_p7 = pnand %p1655_p3, %p114_p5  ;;  %s126_s23 = sshll.u32 %s2467_s22, 4  ;;  %s127_s23 = int_to_ptr.vmem [resolvable:$true] %s126_s23 }
   0xc   : > { %s2468_s25 = smov [#allocation4]   ;;  %s2315_s29 = scalar_lea.hbm %s2968_s1, 128 }
   0xd   : > { %s2974_s21 = scalar_select %p2521_p7, 1, 0 }
   0xe   : > { %p2179_p8 = pneg %p2521_p7  ;;  %s140_s26 = sshll.u32 %s2468_s25, 4  ;;  %s2533_s26 = int_to_ptr.vmem [resolvable:$true] %s140_s26 }
   0xf   : > { %p2316_p10 = scmp.ne.s32.totalorder %s2968_s1, %s2315_s29  ;;  %p2322_p0 = scmp.lt.u32.totalorder %s2315_s29, %s2968_s1 }
  0x10   : > { %p2529_p9 = pnand %p2971_p6, %p2179_p8 }
  0x12   : > { %p2317_p11 = pneg %p2529_p9 }
  0x14   : > { %p2318_p12 = pnand %p2317_p11, %p2316_p10 }
  0x16   : > { %p2319_p13 = pneg %p2318_p12 }
  0x18   : > { %p2324_p1 = pnand %p2322_p0, %p2319_p13 }
  0x1a   : > { %2327 = shalt.err (!%p2324_p1)
}
  0x1b   : > { %s2328_s7 = scalar_lea.vmem %s127_s23, 128  ;;  %p2336_p8 = scmp.lt.s32.totalorder %s127_s23, %s127_s23 }
  0x1c   : > { %p2329_p2 = scmp.ne.s32.totalorder %s127_s23, %s2328_s7  ;;  %p2337_p6 = scmp.lt.s32.totalorder %s2328_s7, %s2328_s7 }
  0x1e   : > { %p2331_p3 = pnand %p2329_p2, %p2317_p11  ;;  %p2338_p4 = por %p2337_p6, %p2336_p8 }
  0x20   : > { %p2332_p5 = pneg %p2331_p3 }
  0x22   : > { %p2339_p7 = pnand %p2338_p4, %p2332_p5 }
  0x24   : > { %2342 = shalt.err (!%p2339_p7)
}
  0x25   : > { %s2469_s8 = smov 64   ;;  %s2470_s9 = smov 4  }
  0x26   : > { %2182 = dma.hbm_to_vmem [thread:$0]  (!%p2529_p9), %s2968_s1, 128, %s127_s23, [#allocation3], %s2469_s8, %s2469_s8, %s2470_s9  }
  0x27   : > { %s2343_s18 = scalar_lea.hbm %s2969_s2, 16 }
  0x28   : > { %p2344_p10 = scmp.ne.s32.totalorder %s2969_s2, %s2343_s18  ;;  %p2350_p7 = scmp.lt.u32.totalorder %s2343_s18, %s2969_s2 }
  0x2a   : > { %p2346_p4 = pnand %p2344_p10, %p2317_p11 }
  0x2c   : > { %p2347_p6 = pneg %p2346_p4 }
  0x2e   : > { %p2352_p12 = pnand %p2350_p7, %p2347_p6 }
  0x30   : > { %2355 = shalt.err (!%p2352_p12)
}
  0x31   : > { %s2356_s23 = scalar_lea.vmem %s2533_s26, 16  ;;  %s2363_s29 = scalar_lea.vmem %s2533_s26, 32 }
  0x32   : > { %p2357_p13 = scmp.ne.s32.totalorder %s2533_s26, %s2356_s23  ;;  %p2364_p2 = scmp.lt.s32.totalorder %s2533_s26, %s2533_s26 }
  0x33   : > { %p2365_p3 = scmp.lt.s32.totalorder %s2363_s29, %s2356_s23 }
  0x34   : > { %p2359_p0 = pnand %p2357_p13, %p2317_p11 }
  0x35   : > { %p2366_p5 = por %p2365_p3, %p2364_p2 }
  0x36   : > { %p2360_p1 = pneg %p2359_p0 }
  0x38   : > { %p2367_p8 = pnand %p2366_p5, %p2360_p1 }
  0x3a   : > { %2370 = shalt.err (!%p2367_p8)
}
  0x3b   : > { %2185 = dma.hbm_to_vmem [thread:$0]  (!%p2529_p9), %s2969_s2, 16, %s2533_s26, [#allocation5]  }
  0x3c   : > { %p2976_p10 = scmp.ne.s32.totalorder %s2974_s21, 0 }
  0x3d   : > { %p2977_p11 = scmp.eq.s32.totalorder (!%p2976_p10), %s2504_s15, 0 }
  0x3e   : > { %170 = sbr.rel (%p2976_p10) target bundleno = 451 (0x1c3), region = 32 }
  0x45   : > { %2416 = dma.done.wait (%p2977_p11), [#allocation3], 128   ;;  %p2978_p4 = pmov %p2977_p11 }
  0x47   : > { %2418 = vsyncadd (%p2978_p4), [#allocation3], 4294967168  ;;  %p2979_p6 = pmov %p2978_p4 }
  0x48   : > { %p2980_p7 = pmov %p2978_p4 }
  0x49   : > { %2420 = dma.done.wait (%p2979_p6), [#allocation5], 16  }
  0x4a   : > { %2422 = vsyncadd (%p2980_p7), [#allocation5], 4294967280  ;;  %s2594_s24 = sshll.u32 %s2504_s15, 6  ;;  %v2282_v0 = vld [vmem:[#allocation2] sm:$0xff]   ;;  %vm460_vm0 = vcmask 130048   ;;  %s198_s8 = sand.u32 1, %s2425_s12  }
  0x4b   : > { %p206_p9 = scmp.lt.s32.totalorder %s2594_s24, 210  ;;  %2103 = vmatprep.subr.bf16.mxu0 %v2282_v0  ;;  %2169 = vmatprep.subr.bf16.mxu1 %v2282_v0  ;;  %v2668_v34 = vld [vmem:[#allocation4] ss:$0 sm:$0xff]  ;;  %s1662_s9 = sshll.u32 %s198_s8, 8 }
  0x4c   : > { %2104 = vmatpush3.bf16.msra.mxu0 %v2282_v0  ;;  %2170 = vmatpush3.bf16.msra.mxu1 %v2282_v0  ;;  %s2678_s12 = scalar_lea.vmem [#allocation6], %s1662_s9   ;;  %p2981_p12 = scmp.ne.s32.totalorder %s2973_s20, 0 }
  0x4d   : > { %s207_s21 = scalar_select %p206_p9, %s2594_s24, 210 }
  0x4e   : > { %s1174_s10 = ssub.s32 (%p2981_p12), 211, %s2594_s24  ;;  %s1876_s11 = sshll.u32 (%p2981_p12), %s2504_s15, 8 }
  0x4f   : > { %s1664_s26 = sshll.u32 %s207_s21, 2  ;;  %p1175_p13 = scmp.lt.s32.totalorder (%p2981_p12), %s1174_s10, 64 }
  0x50   : > { %s2601_s7 = scalar_lea.vmem %s2967_s0, %s1664_s26  ;;  %s2775_s18 = scalar_lea.vmem (%p2981_p12), %s2970_s3, %s1876_s11  }
  0x51   : > { %v2283_v1 = vld [vmem:[%s2601_s7] sm:$0xff]   ;;  %v2285_v3 = vld [vmem:[%s2601_s7 + $0x8] sm:$0xff]   ;;  %v2287_v5 = vld [vmem:[%s2601_s7 + $0x10] sm:$0xff]  }
  0x52   : > { %v2284_v2 = vld [vmem:[%s2601_s7 + $0x80] sm:$0xff]   ;;  %2105 = vmatprep.mubr.msk.bf16.mxu0 %vm460_vm0, %v2283_v1  ;;  %v2286_v4 = vld [vmem:[%s2601_s7 + $0x88] sm:$0xff]   ;;  %v2288_v6 = vld [vmem:[%s2601_s7 + $0x90] sm:$0xff]  }
  0x53   : > { %2137 = vmatprep.mubr.msk.bf16.mxu1 %vm460_vm0, %v2284_v2  ;;  %2106 = vmatmul.mubr.msk.bf16.vlgmr.msra.gmra.mrb[0].mxu0 %vm460_vm0, %v2285_v3  ;;  %v2289_v7 = vld [vmem:[%s2601_s7 + $0x18] sm:$0xff]   ;;  %v2291_v9 = vld [vmem:[%s2601_s7 + $0x20] sm:$0xff]   ;;  %v2293_v11 = vld [vmem:[%s2601_s7 + $0x28] sm:$0xff]  }
  0x54   : > { %2138 = vmatmul.mubr.msk.bf16.vlgmr.msra.gmra.mrb[0].mxu1 %vm460_vm0, %v2286_v4  ;;  %2109 = vmatprep.mubr.msk.bf16.mxu0 %vm460_vm0, %v2287_v5  ;;  %v2290_v8 = vld [vmem:[%s2601_s7 + $0x98] sm:$0xff]   ;;  %v2292_v10 = vld [vmem:[%s2601_s7 + $0xa0] sm:$0xff]   ;;  %v2294_v12 = vld [vmem:[%s2601_s7 + $0xa8] sm:$0xff]  }
  0x55   : > { %2141 = vmatprep.mubr.msk.bf16.mxu1 %vm460_vm0, %v2288_v6  ;;  %v2295_v13 = vld [vmem:[%s2601_s7 + $0x30] sm:$0xff]   ;;  %v2297_v15 = vld [vmem:[%s2601_s7 + $0x38] sm:$0xff]   ;;  %v2299_v17 = vld [vmem:[%s2601_s7 + $0x40] sm:$0xff]  }
  0x56   : > { %v2296_v14 = vld [vmem:[%s2601_s7 + $0xb0] sm:$0xff]   ;;  %v2298_v16 = vld [vmem:[%s2601_s7 + $0xb8] sm:$0xff]   ;;  %v2300_v18 = vld [vmem:[%s2601_s7 + $0xc0] sm:$0xff]  }
  0x57   : > { %v2301_v19 = vld [vmem:[%s2601_s7 + $0x48] sm:$0xff]   ;;  %v2303_v21 = vld [vmem:[%s2601_s7 + $0x50] sm:$0xff]   ;;  %v2305_v23 = vld [vmem:[%s2601_s7 + $0x58] sm:$0xff]  }
  0x58   : > { %v2302_v20 = vld [vmem:[%s2601_s7 + $0xc8] sm:$0xff]   ;;  %v2304_v22 = vld [vmem:[%s2601_s7 + $0xd0] sm:$0xff]   ;;  %v2306_v24 = vld [vmem:[%s2601_s7 + $0xd8] sm:$0xff]  }
  0x59   : > { %v2307_v25 = vld [vmem:[%s2601_s7 + $0x60] sm:$0xff]   ;;  %v2309_v27 = vld [vmem:[%s2601_s7 + $0x68] sm:$0xff]   ;;  %v2311_v29 = vld [vmem:[%s2601_s7 + $0x70] sm:$0xff]  }
  0x5a   : > { %v2308_v26 = vld [vmem:[%s2601_s7 + $0xe0] sm:$0xff]   ;;  %v2310_v28 = vld [vmem:[%s2601_s7 + $0xe8] sm:$0xff]   ;;  %v2312_v30 = vld [vmem:[%s2601_s7 + $0xf0] sm:$0xff]  }
  0x5b   : > { %2110 = vmatmul.mubr.msk.bf16.gmra.mrb[4].mxu0 %vm460_vm0, %v2289_v7  ;;  %v2313_v31 = vld [vmem:[%s2601_s7 + $0x78] sm:$0xff]  }
  0x5c   : > { %2142 = vmatmul.mubr.msk.bf16.gmra.mrb[4].mxu1 %vm460_vm0, %v2290_v8  ;;  %2113 = vmatprep.mubr.msk.bf16.mxu0 %vm460_vm0, %v2291_v9  ;;  %v2314_v32 = vld [vmem:[%s2601_s7 + $0xf8] sm:$0xff]  }
  0x5d   : > { %2145 = vmatprep.mubr.msk.bf16.mxu1 %vm460_vm0, %v2292_v10 }
  0x63   : > { %2114 = vmatmul.mubr.msk.bf16.gmra.mrb[8].mxu0 %vm460_vm0, %v2293_v11 }
  0x64   : > { %2146 = vmatmul.mubr.msk.bf16.gmra.mrb[8].mxu1 %vm460_vm0, %v2294_v12  ;;  %2117 = vmatprep.mubr.msk.bf16.mxu0 %vm460_vm0, %v2295_v13 }
  0x65   : > { %2149 = vmatprep.mubr.msk.bf16.mxu1 %vm460_vm0, %v2296_v14 }
  0x6b   : > { %2118 = vmatmul.mubr.msk.bf16.gmra.mrb[12].mxu0 %vm460_vm0, %v2297_v15 }
  0x6c   : > { %2150 = vmatmul.mubr.msk.bf16.gmra.mrb[12].mxu1 %vm460_vm0, %v2298_v16  ;;  %2121 = vmatprep.mubr.msk.bf16.mxu0 %vm460_vm0, %v2299_v17 }
  0x6d   : > { %2153 = vmatprep.mubr.msk.bf16.mxu1 %vm460_vm0, %v2300_v18 }
  0x73   : > { %2122 = vmatmul.mubr.msk.bf16.gmra.mrb[16].mxu0 %vm460_vm0, %v2301_v19 }
  0x74   : > { %2154 = vmatmul.mubr.msk.bf16.gmra.mrb[16].mxu1 %vm460_vm0, %v2302_v20  ;;  %2125 = vmatprep.mubr.msk.bf16.mxu0 %vm460_vm0, %v2303_v21 }
  0x75   : > { %2157 = vmatprep.mubr.msk.bf16.mxu1 %vm460_vm0, %v2304_v22 }
  0x7b   : > { %2126 = vmatmul.mubr.msk.bf16.gmra.mrb[20].mxu0 %vm460_vm0, %v2305_v23 }
  0x7c   : > { %2158 = vmatmul.mubr.msk.bf16.gmra.mrb[20].mxu1 %vm460_vm0, %v2306_v24  ;;  %2129 = vmatprep.mubr.msk.bf16.mxu0 %vm460_vm0, %v2307_v25 }
  0x7d   : > { %2161 = vmatprep.mubr.msk.bf16.mxu1 %vm460_vm0, %v2308_v26 }
  0x83   : > { %2130 = vmatmul.mubr.msk.bf16.gmra.mrb[24].mxu0 %vm460_vm0, %v2309_v27 }
  0x84   : > { %2162 = vmatmul.mubr.msk.bf16.gmra.mrb[24].mxu1 %vm460_vm0, %v2310_v28  ;;  %2133 = vmatprep.mubr.msk.bf16.mxu0 %vm460_vm0, %v2311_v29 }
  0x85   : > { %2165 = vmatprep.mubr.msk.bf16.mxu1 %vm460_vm0, %v2312_v30 }
  0x8b   : > { %2134 = vmatmul.mubr.msk.bf16.gmra.mrb[28].mxu0 %vm460_vm0, %v2313_v31 }
  0x8c   : > { %2166 = vmatmul.mubr.msk.bf16.gmra.mrb[28].mxu1 %vm460_vm0, %v2314_v32 }
 0x126   : > { %v2107_v33 = vpop.f32.mrb[0].mxu0 }
 0x127   : > { %v2139_v35 = vpop.f32.mrb[0].mxu1  ;;  %v591_v36 = vpop.f32.mrb[1].mxu0  ;;  %v600_v40 = vadd.f32 %v2107_v33, %v2668_v34 }
 0x128   : > { %v719_v37 = vpop.f32.mrb[1].mxu1  ;;  %v2108_v38 = vpop.f32.mrb[2].mxu0  ;;  %v728_v41 = vadd.f32 %v2139_v35, %v2668_v34  ;;  %v592_v46 = vadd.f32 %v2668_v34, %v591_v36 }
 0x129   : > { %v2140_v39 = vpop.f32.mrb[2].mxu1  ;;  %v603_v42 = vadd.f32 %v2108_v38, %v2668_v34  ;;  %v594_v44 = vpop.f32.mrb[3].mxu0  ;;  %v720_v47 = vadd.f32 %v2668_v34, %v719_v37 }
 0x12a   : > { %v731_v43 = vadd.f32 %v2140_v39, %v2668_v34  ;;  %v722_v45 = vpop.f32.mrb[3].mxu1  ;;  %v595_v48 = vadd.f32 %v2668_v34, %v594_v44 }
 0x12b   : > { %v723_v49 = vadd.f32 %v2668_v34, %v722_v45  ;;  %v1887_v50 = vpack.c.bf16 %v603_v42, %v600_v40 }
 0x12c   : > { %v1967_v51 = vpack.c.bf16 %v731_v43, %v728_v41  ;;  %v1882_v52 = vpack.c.bf16 %v595_v48, %v592_v46 }
 0x12d   : > { %v1962_v53 = vpack.c.bf16 %v723_v49, %v720_v47  ;;  %2039 = vst [vmem:[%s2678_s12 + $0x8] sm:$0xff] %v1887_v50  }
 0x12e   : > { %2055 = vst [vmem:[%s2678_s12 + $0x88] sm:$0xff] %v1967_v51   ;;  %1883 = vst [vmem:[%s2678_s12] sm:$0xff] %v1882_v52   ;;  %v2111_v54 = vpop.f32.mrb[4].mxu0 }
 0x12f   : > { %2054 = vst [vmem:[%s2678_s12 + $0x80] sm:$0xff] %v1962_v53   ;;  %v2143_v55 = vpop.f32.mrb[4].mxu1  ;;  %v607_v56 = vpop.f32.mrb[5].mxu0  ;;  %v616_v60 = vadd.f32 %v2111_v54, %v2668_v34 }
 0x130   : > { %v735_v57 = vpop.f32.mrb[5].mxu1  ;;  %v2112_v58 = vpop.f32.mrb[6].mxu0  ;;  %v744_v61 = vadd.f32 %v2143_v55, %v2668_v34  ;;  %v608_v2 = vadd.f32 %v2668_v34, %v607_v56 }
 0x131   : > { %v2144_v59 = vpop.f32.mrb[6].mxu1  ;;  %v619_v62 = vadd.f32 %v2112_v58, %v2668_v34  ;;  %v610_v0 = vpop.f32.mrb[7].mxu0  ;;  %v736_v3 = vadd.f32 %v2668_v34, %v735_v57 }
 0x132   : > { %v747_v63 = vadd.f32 %v2144_v59, %v2668_v34  ;;  %v738_v1 = vpop.f32.mrb[7].mxu1  ;;  %v611_v4 = vadd.f32 %v2668_v34, %v610_v0 }
 0x133   : > { %v739_v5 = vadd.f32 %v2668_v34, %v738_v1  ;;  %v1897_v6 = vpack.c.bf16 %v619_v62, %v616_v60 }
 0x134   : > { %v1977_v7 = vpack.c.bf16 %v747_v63, %v744_v61  ;;  %v1892_v8 = vpack.c.bf16 %v611_v4, %v608_v2 }
 0x135   : > { %v1972_v9 = vpack.c.bf16 %v739_v5, %v736_v3  ;;  %2041 = vst [vmem:[%s2678_s12 + $0x18] sm:$0xff] %v1897_v6  }
 0x136   : > { %2057 = vst [vmem:[%s2678_s12 + $0x98] sm:$0xff] %v1977_v7   ;;  %2040 = vst [vmem:[%s2678_s12 + $0x10] sm:$0xff] %v1892_v8   ;;  %v2115_v10 = vpop.f32.mrb[8].mxu0 }
 0x137   : > { %2056 = vst [vmem:[%s2678_s12 + $0x90] sm:$0xff] %v1972_v9   ;;  %v2147_v11 = vpop.f32.mrb[8].mxu1  ;;  %v623_v12 = vpop.f32.mrb[9].mxu0  ;;  %v632_v16 = vadd.f32 %v2115_v10, %v2668_v34 }
 0x138   : > { %v751_v13 = vpop.f32.mrb[9].mxu1  ;;  %v2116_v14 = vpop.f32.mrb[10].mxu0  ;;  %v760_v17 = vadd.f32 %v2147_v11, %v2668_v34  ;;  %v624_v22 = vadd.f32 %v2668_v34, %v623_v12 }
 0x139   : > { %v2148_v15 = vpop.f32.mrb[10].mxu1  ;;  %v635_v18 = vadd.f32 %v2116_v14, %v2668_v34  ;;  %v626_v20 = vpop.f32.mrb[11].mxu0  ;;  %v752_v23 = vadd.f32 %v2668_v34, %v751_v13 }
 0x13a   : > { %v763_v19 = vadd.f32 %v2148_v15, %v2668_v34  ;;  %v754_v21 = vpop.f32.mrb[11].mxu1  ;;  %v627_v24 = vadd.f32 %v2668_v34, %v626_v20 }
 0x13b   : > { %v755_v25 = vadd.f32 %v2668_v34, %v754_v21  ;;  %v1907_v26 = vpack.c.bf16 %v635_v18, %v632_v16 }
 0x13c   : > { %v1987_v27 = vpack.c.bf16 %v763_v19, %v760_v17  ;;  %v1902_v28 = vpack.c.bf16 %v627_v24, %v624_v22 }
 0x13d   : > { %v1982_v29 = vpack.c.bf16 %v755_v25, %v752_v23  ;;  %2043 = vst [vmem:[%s2678_s12 + $0x28] sm:$0xff] %v1907_v26  }
 0x13e   : > { %2059 = vst [vmem:[%s2678_s12 + $0xa8] sm:$0xff] %v1987_v27   ;;  %2042 = vst [vmem:[%s2678_s12 + $0x20] sm:$0xff] %v1902_v28   ;;  %v2119_v30 = vpop.f32.mrb[12].mxu0 }
 0x13f   : > { %2058 = vst [vmem:[%s2678_s12 + $0xa0] sm:$0xff] %v1982_v29   ;;  %v2151_v31 = vpop.f32.mrb[12].mxu1  ;;  %v639_v32 = vpop.f32.mrb[13].mxu0  ;;  %v648_v37 = vadd.f32 %v2119_v30, %v2668_v34 }
 0x140   : > { %v767_v33 = vpop.f32.mrb[13].mxu1  ;;  %v2120_v35 = vpop.f32.mrb[14].mxu0  ;;  %v776_v38 = vadd.f32 %v2151_v31, %v2668_v34  ;;  %v640_v43 = vadd.f32 %v2668_v34, %v639_v32 }
 0x141   : > { %v2152_v36 = vpop.f32.mrb[14].mxu1  ;;  %v651_v39 = vadd.f32 %v2120_v35, %v2668_v34  ;;  %v642_v41 = vpop.f32.mrb[15].mxu0  ;;  %v768_v44 = vadd.f32 %v2668_v34, %v767_v33 }
 0x142   : > { %v779_v40 = vadd.f32 %v2152_v36, %v2668_v34  ;;  %v770_v42 = vpop.f32.mrb[15].mxu1  ;;  %v643_v45 = vadd.f32 %v2668_v34, %v642_v41 }
 0x143   : > { %v771_v46 = vadd.f32 %v2668_v34, %v770_v42  ;;  %v1917_v47 = vpack.c.bf16 %v651_v39, %v648_v37 }
 0x144   : > { %v1997_v48 = vpack.c.bf16 %v779_v40, %v776_v38  ;;  %v1912_v49 = vpack.c.bf16 %v643_v45, %v640_v43 }
 0x145   : > { %v1992_v50 = vpack.c.bf16 %v771_v46, %v768_v44  ;;  %2045 = vst [vmem:[%s2678_s12 + $0x38] sm:$0xff] %v1917_v47  }
 0x146   : > { %2061 = vst [vmem:[%s2678_s12 + $0xb8] sm:$0xff] %v1997_v48   ;;  %2044 = vst [vmem:[%s2678_s12 + $0x30] sm:$0xff] %v1912_v49   ;;  %v2123_v51 = vpop.f32.mrb[16].mxu0 }
 0x147   : > { %2060 = vst [vmem:[%s2678_s12 + $0xb0] sm:$0xff] %v1992_v50   ;;  %v2155_v52 = vpop.f32.mrb[16].mxu1  ;;  %v655_v53 = vpop.f32.mrb[17].mxu0  ;;  %v664_v57 = vadd.f32 %v2123_v51, %v2668_v34 }
 0x148   : > { %v783_v54 = vpop.f32.mrb[17].mxu1  ;;  %v2124_v55 = vpop.f32.mrb[18].mxu0  ;;  %v792_v58 = vadd.f32 %v2155_v52, %v2668_v34  ;;  %v656_v63 = vadd.f32 %v2668_v34, %v655_v53 }
 0x149   : > { %v2156_v56 = vpop.f32.mrb[18].mxu1  ;;  %v667_v59 = vadd.f32 %v2124_v55, %v2668_v34  ;;  %v658_v61 = vpop.f32.mrb[19].mxu0  ;;  %v784_v0 = vadd.f32 %v2668_v34, %v783_v54 }
 0x14a   : > { %v795_v60 = vadd.f32 %v2156_v56, %v2668_v34  ;;  %v786_v62 = vpop.f32.mrb[19].mxu1  ;;  %v659_v1 = vadd.f32 %v2668_v34, %v658_v61 }
 0x14b   : > { %v787_v2 = vadd.f32 %v2668_v34, %v786_v62  ;;  %v1927_v3 = vpack.c.bf16 %v667_v59, %v664_v57 }
 0x14c   : > { %v2007_v4 = vpack.c.bf16 %v795_v60, %v792_v58  ;;  %v1922_v5 = vpack.c.bf16 %v659_v1, %v656_v63 }
 0x14d   : > { %v2002_v6 = vpack.c.bf16 %v787_v2, %v784_v0  ;;  %2047 = vst [vmem:[%s2678_s12 + $0x48] sm:$0xff] %v1927_v3  }
 0x14e   : > { %2063 = vst [vmem:[%s2678_s12 + $0xc8] sm:$0xff] %v2007_v4   ;;  %2046 = vst [vmem:[%s2678_s12 + $0x40] sm:$0xff] %v1922_v5   ;;  %v2127_v7 = vpop.f32.mrb[20].mxu0 }
 0x14f   : > { %2062 = vst [vmem:[%s2678_s12 + $0xc0] sm:$0xff] %v2002_v6   ;;  %v2159_v8 = vpop.f32.mrb[20].mxu1  ;;  %v671_v9 = vpop.f32.mrb[21].mxu0  ;;  %v680_v13 = vadd.f32 %v2127_v7, %v2668_v34 }
 0x150   : > { %v799_v10 = vpop.f32.mrb[21].mxu1  ;;  %v2128_v11 = vpop.f32.mrb[22].mxu0  ;;  %v808_v14 = vadd.f32 %v2159_v8, %v2668_v34  ;;  %v672_v19 = vadd.f32 %v2668_v34, %v671_v9 }
 0x151   : > { %v2160_v12 = vpop.f32.mrb[22].mxu1  ;;  %v683_v15 = vadd.f32 %v2128_v11, %v2668_v34  ;;  %v674_v17 = vpop.f32.mrb[23].mxu0  ;;  %v800_v20 = vadd.f32 %v2668_v34, %v799_v10 }
 0x152   : > { %v811_v16 = vadd.f32 %v2160_v12, %v2668_v34  ;;  %v802_v18 = vpop.f32.mrb[23].mxu1  ;;  %v675_v21 = vadd.f32 %v2668_v34, %v674_v17 }
 0x153   : > { %v803_v22 = vadd.f32 %v2668_v34, %v802_v18  ;;  %v1937_v23 = vpack.c.bf16 %v683_v15, %v680_v13 }
 0x154   : > { %v2017_v24 = vpack.c.bf16 %v811_v16, %v808_v14  ;;  %v1932_v25 = vpack.c.bf16 %v675_v21, %v672_v19 }
 0x155   : > { %v2012_v26 = vpack.c.bf16 %v803_v22, %v800_v20  ;;  %2049 = vst [vmem:[%s2678_s12 + $0x58] sm:$0xff] %v1937_v23  }
 0x156   : > { %2065 = vst [vmem:[%s2678_s12 + $0xd8] sm:$0xff] %v2017_v24   ;;  %2048 = vst [vmem:[%s2678_s12 + $0x50] sm:$0xff] %v1932_v25   ;;  %v2131_v27 = vpop.f32.mrb[24].mxu0 }
 0x157   : > { %2064 = vst [vmem:[%s2678_s12 + $0xd0] sm:$0xff] %v2012_v26   ;;  %v2163_v28 = vpop.f32.mrb[24].mxu1  ;;  %v687_v29 = vpop.f32.mrb[25].mxu0  ;;  %v696_v33 = vadd.f32 %v2131_v27, %v2668_v34 }
 0x158   : > { %v815_v30 = vpop.f32.mrb[25].mxu1  ;;  %v2132_v31 = vpop.f32.mrb[26].mxu0  ;;  %v824_v35 = vadd.f32 %v2163_v28, %v2668_v34  ;;  %v688_v40 = vadd.f32 %v2668_v34, %v687_v29 }
 0x159   : > { %v2164_v32 = vpop.f32.mrb[26].mxu1  ;;  %v699_v36 = vadd.f32 %v2132_v31, %v2668_v34  ;;  %v690_v38 = vpop.f32.mrb[27].mxu0  ;;  %v816_v41 = vadd.f32 %v2668_v34, %v815_v30 }
 0x15a   : > { %v827_v37 = vadd.f32 %v2164_v32, %v2668_v34  ;;  %v818_v39 = vpop.f32.mrb[27].mxu1  ;;  %v691_v42 = vadd.f32 %v2668_v34, %v690_v38 }
 0x15b   : > { %v819_v43 = vadd.f32 %v2668_v34, %v818_v39  ;;  %v1947_v44 = vpack.c.bf16 %v699_v36, %v696_v33 }
 0x15c   : > { %v2027_v45 = vpack.c.bf16 %v827_v37, %v824_v35  ;;  %v1942_v46 = vpack.c.bf16 %v691_v42, %v688_v40 }
 0x15d   : > { %v2022_v47 = vpack.c.bf16 %v819_v43, %v816_v41  ;;  %2051 = vst [vmem:[%s2678_s12 + $0x68] sm:$0xff] %v1947_v44  }
 0x15e   : > { %2067 = vst [vmem:[%s2678_s12 + $0xe8] sm:$0xff] %v2027_v45   ;;  %2050 = vst [vmem:[%s2678_s12 + $0x60] sm:$0xff] %v1942_v46   ;;  %v2135_v48 = vpop.f32.mrb[28].mxu0 }
 0x15f   : > { %2066 = vst [vmem:[%s2678_s12 + $0xe0] sm:$0xff] %v2022_v47   ;;  %v2167_v49 = vpop.f32.mrb[28].mxu1  ;;  %v703_v50 = vpop.f32.mrb[29].mxu0  ;;  %v712_v54 = vadd.f32 %v2135_v48, %v2668_v34 }
 0x160   : > { %v831_v51 = vpop.f32.mrb[29].mxu1  ;;  %v2136_v52 = vpop.f32.mrb[30].mxu0  ;;  %v840_v55 = vadd.f32 %v2167_v49, %v2668_v34  ;;  %v704_v60 = vadd.f32 %v2668_v34, %v703_v50 }
 0x161   : > { %v2168_v53 = vpop.f32.mrb[30].mxu1  ;;  %v715_v56 = vadd.f32 %v2136_v52, %v2668_v34  ;;  %v706_v58 = vpop.f32.mrb[31].mxu0  ;;  %v832_v61 = vadd.f32 %v2668_v34, %v831_v51  ;;  %1172 = sbr.rel (!%p2981_p12) target bundleno = 451 (0x1c3), region = 44 }
 0x162   : > { %v843_v57 = vadd.f32 %v2168_v53, %v2668_v34  ;;  %v834_v59 = vpop.f32.mrb[31].mxu1  ;;  %v707_v62 = vadd.f32 %v2668_v34, %v706_v58 }
 0x163   : > { %v835_v63 = vadd.f32 %v2668_v34, %v834_v59  ;;  %v1957_v0 = vpack.c.bf16 %v715_v56, %v712_v54 }
 0x164   : > { %v2037_v1 = vpack.c.bf16 %v843_v57, %v840_v55  ;;  %v1952_v2 = vpack.c.bf16 %v707_v62, %v704_v60 }
 0x165   : > { %v2032_v3 = vpack.c.bf16 %v835_v63, %v832_v61  ;;  %2053 = vst [vmem:[%s2678_s12 + $0x78] sm:$0xff] %v1957_v0  }
 0x166   : > { %2069 = vst [vmem:[%s2678_s12 + $0xf8] sm:$0xff] %v2037_v1   ;;  %2052 = vst [vmem:[%s2678_s12 + $0x70] sm:$0xff] %v1952_v2  }
 0x167   : > { %2068 = vst [vmem:[%s2678_s12 + $0xf0] sm:$0xff] %v2032_v3  }
 0x168   : > { %s2989_s10 = smov (!%p1175_p13, %s1174_s10), 64 }
 0x169   : > { %s1797_s22 = sshll.u32 %s2989_s10, 6 }
 0x16a   : > { %p1800_p0 = scmp.eq.s32.totalorder %s1797_s22, 0 }
 0x16b   : > { %s2781_s25 = sshrl.u32 (!%p1800_p0), %s2989_s10, 6 }
 0x16c   : > { %1183 = sbr.rel (%p1800_p0) target bundleno = 451 (0x1c3), region = 48  ;;  %p1801_p1 = scmp.le.s32.totalorder (!%p1800_p0), %s2781_s25, 0 }
 0x173   : > { %1592 = sbr.rel (%p1801_p1) target bundleno = 430 (0x1ae), region = 121  ;;  %s2982_s15 = smov (!%p1801_p1), %s2775_s18 }
 0x174   : > { %s2983_s20 = smov (!%p1801_p1), %s2678_s12  ;;  %s2790_s27 = smov (!%p1801_p1), 0  }
 0x175   : > { %s2792_s28 = smov (!%p1801_p1), 0  }
 0x17a LB: >> { %v1199_v34 = vld [vmem:[%s2441_s20] sm:$0xf]  ;;  %v1201_v4 = vld [vmem:[%s2441_s20 + $0x4] sm:$0xf]  ;;  %v1203_v5 = vld [vmem:[%s2441_s20 + $0x8] sm:$0xf]  ;;  %s2449_s28 = sphi %s2792_s28, %s1193_s28   ;;  %s2445_s27 = sphi %s2790_s27, %s2984_s27   ;;  %s2441_s20 = sphi %s2983_s20, %s1332_s20   ;;  %s2437_s15 = sphi %s2982_s15, %s1333_s15  }
 0x17b   : >> { %1200 = vst [vmem:[%s2437_s15] sm:$0xf] %v1199_v34  ;;  %1202 = vst [vmem:[%s2437_s15 + $0x4] sm:$0xf] %v1201_v4  ;;  %v1205_v6 = vld [vmem:[%s2441_s20 + $0xc] sm:$0xf]  ;;  %s1327_s23 = sadd.s32 1, %s2445_s27 }
 0x17c   : >> { %1204 = vst [vmem:[%s2437_s15 + $0x8] sm:$0xf] %v1203_v5  ;;  %v1207_v7 = vld [vmem:[%s2441_s20 + $0x10] sm:$0xf]  ;;  %v1209_v8 = vld [vmem:[%s2441_s20 + $0x14] sm:$0xf]  ;;  %p1328_p2 = scmp.ge.s32.totalorder %s1327_s23, %s2781_s25 }
 0x17d   : >> { %1206 = vst [vmem:[%s2437_s15 + $0xc] sm:$0xf] %v1205_v6  ;;  %1208 = vst [vmem:[%s2437_s15 + $0x10] sm:$0xf] %v1207_v7  ;;  %v1211_v9 = vld [vmem:[%s2441_s20 + $0x18] sm:$0xf] }
 0x17e   : >> { %1210 = vst [vmem:[%s2437_s15 + $0x14] sm:$0xf] %v1209_v8  ;;  %v1213_v10 = vld [vmem:[%s2441_s20 + $0x1c] sm:$0xf]  ;;  %v1215_v11 = vld [vmem:[%s2441_s20 + $0x20] sm:$0xf] }
 0x17f   : >> { %1212 = vst [vmem:[%s2437_s15 + $0x18] sm:$0xf] %v1211_v9  ;;  %1214 = vst [vmem:[%s2437_s15 + $0x1c] sm:$0xf] %v1213_v10  ;;  %v1217_v12 = vld [vmem:[%s2441_s20 + $0x24] sm:$0xf] }
 0x180   : >> { %1216 = vst [vmem:[%s2437_s15 + $0x20] sm:$0xf] %v1215_v11  ;;  %v1219_v13 = vld [vmem:[%s2441_s20 + $0x28] sm:$0xf]  ;;  %v1221_v14 = vld [vmem:[%s2441_s20 + $0x2c] sm:$0xf] }
 0x181   : >> { %1218 = vst [vmem:[%s2437_s15 + $0x24] sm:$0xf] %v1217_v12  ;;  %1220 = vst [vmem:[%s2437_s15 + $0x28] sm:$0xf] %v1219_v13  ;;  %v1223_v15 = vld [vmem:[%s2441_s20 + $0x30] sm:$0xf] }
 0x182   : >> { %1222 = vst [vmem:[%s2437_s15 + $0x2c] sm:$0xf] %v1221_v14  ;;  %v1225_v16 = vld [vmem:[%s2441_s20 + $0x34] sm:$0xf]  ;;  %v1227_v17 = vld [vmem:[%s2441_s20 + $0x38] sm:$0xf] }
 0x183   : >> { %1224 = vst [vmem:[%s2437_s15 + $0x30] sm:$0xf] %v1223_v15  ;;  %1226 = vst [vmem:[%s2437_s15 + $0x34] sm:$0xf] %v1225_v16  ;;  %v1229_v18 = vld [vmem:[%s2441_s20 + $0x3c] sm:$0xf] }
 0x184   : >> { %1228 = vst [vmem:[%s2437_s15 + $0x38] sm:$0xf] %v1227_v17  ;;  %v1231_v19 = vld [vmem:[%s2441_s20 + $0x40] sm:$0xf]  ;;  %v1233_v20 = vld [vmem:[%s2441_s20 + $0x44] sm:$0xf] }
 0x185   : >> { %1230 = vst [vmem:[%s2437_s15 + $0x3c] sm:$0xf] %v1229_v18  ;;  %1232 = vst [vmem:[%s2437_s15 + $0x40] sm:$0xf] %v1231_v19  ;;  %v1235_v21 = vld [vmem:[%s2441_s20 + $0x48] sm:$0xf] }
 0x186   : >> { %1234 = vst [vmem:[%s2437_s15 + $0x44] sm:$0xf] %v1233_v20  ;;  %v1237_v22 = vld [vmem:[%s2441_s20 + $0x4c] sm:$0xf]  ;;  %v1239_v23 = vld [vmem:[%s2441_s20 + $0x50] sm:$0xf] }
 0x187   : >> { %1236 = vst [vmem:[%s2437_s15 + $0x48] sm:$0xf] %v1235_v21  ;;  %1238 = vst [vmem:[%s2437_s15 + $0x4c] sm:$0xf] %v1237_v22  ;;  %v1241_v24 = vld [vmem:[%s2441_s20 + $0x54] sm:$0xf] }
 0x188   : >> { %1240 = vst [vmem:[%s2437_s15 + $0x50] sm:$0xf] %v1239_v23  ;;  %v1243_v25 = vld [vmem:[%s2441_s20 + $0x58] sm:$0xf]  ;;  %v1245_v26 = vld [vmem:[%s2441_s20 + $0x5c] sm:$0xf] }
 0x189   : >> { %1242 = vst [vmem:[%s2437_s15 + $0x54] sm:$0xf] %v1241_v24  ;;  %1244 = vst [vmem:[%s2437_s15 + $0x58] sm:$0xf] %v1243_v25  ;;  %v1247_v27 = vld [vmem:[%s2441_s20 + $0x60] sm:$0xf] }
 0x18a   : >> { %1246 = vst [vmem:[%s2437_s15 + $0x5c] sm:$0xf] %v1245_v26  ;;  %v1249_v28 = vld [vmem:[%s2441_s20 + $0x64] sm:$0xf]  ;;  %v1251_v29 = vld [vmem:[%s2441_s20 + $0x68] sm:$0xf] }
 0x18b   : >> { %1248 = vst [vmem:[%s2437_s15 + $0x60] sm:$0xf] %v1247_v27  ;;  %1250 = vst [vmem:[%s2437_s15 + $0x64] sm:$0xf] %v1249_v28  ;;  %v1253_v30 = vld [vmem:[%s2441_s20 + $0x6c] sm:$0xf] }
 0x18c   : >> { %1252 = vst [vmem:[%s2437_s15 + $0x68] sm:$0xf] %v1251_v29  ;;  %v1255_v31 = vld [vmem:[%s2441_s20 + $0x70] sm:$0xf]  ;;  %v1257_v32 = vld [vmem:[%s2441_s20 + $0x74] sm:$0xf] }
 0x18d   : >> { %1254 = vst [vmem:[%s2437_s15 + $0x6c] sm:$0xf] %v1253_v30  ;;  %1256 = vst [vmem:[%s2437_s15 + $0x70] sm:$0xf] %v1255_v31  ;;  %v1259_v33 = vld [vmem:[%s2441_s20 + $0x78] sm:$0xf] }
 0x18e   : >> { %1258 = vst [vmem:[%s2437_s15 + $0x74] sm:$0xf] %v1257_v32  ;;  %v1261_v35 = vld [vmem:[%s2441_s20 + $0x7c] sm:$0xf]  ;;  %v1263_v36 = vld [vmem:[%s2441_s20 + $0x80] sm:$0xf] }
 0x18f   : >> { %1260 = vst [vmem:[%s2437_s15 + $0x78] sm:$0xf] %v1259_v33  ;;  %1262 = vst [vmem:[%s2437_s15 + $0x7c] sm:$0xf] %v1261_v35  ;;  %v1265_v37 = vld [vmem:[%s2441_s20 + $0x84] sm:$0xf] }
 0x190   : >> { %1264 = vst [vmem:[%s2437_s15 + $0x80] sm:$0xf] %v1263_v36  ;;  %v1267_v38 = vld [vmem:[%s2441_s20 + $0x88] sm:$0xf]  ;;  %v1269_v39 = vld [vmem:[%s2441_s20 + $0x8c] sm:$0xf] }
 0x191   : >> { %1266 = vst [vmem:[%s2437_s15 + $0x84] sm:$0xf] %v1265_v37  ;;  %1268 = vst [vmem:[%s2437_s15 + $0x88] sm:$0xf] %v1267_v38  ;;  %v1271_v40 = vld [vmem:[%s2441_s20 + $0x90] sm:$0xf] }
 0x192   : >> { %1270 = vst [vmem:[%s2437_s15 + $0x8c] sm:$0xf] %v1269_v39  ;;  %v1273_v41 = vld [vmem:[%s2441_s20 + $0x94] sm:$0xf]  ;;  %v1275_v42 = vld [vmem:[%s2441_s20 + $0x98] sm:$0xf] }
 0x193   : >> { %1272 = vst [vmem:[%s2437_s15 + $0x90] sm:$0xf] %v1271_v40  ;;  %1274 = vst [vmem:[%s2437_s15 + $0x94] sm:$0xf] %v1273_v41  ;;  %v1277_v43 = vld [vmem:[%s2441_s20 + $0x9c] sm:$0xf] }
 0x194   : >> { %1276 = vst [vmem:[%s2437_s15 + $0x98] sm:$0xf] %v1275_v42  ;;  %v1279_v44 = vld [vmem:[%s2441_s20 + $0xa0] sm:$0xf]  ;;  %v1281_v45 = vld [vmem:[%s2441_s20 + $0xa4] sm:$0xf] }
 0x195   : >> { %1278 = vst [vmem:[%s2437_s15 + $0x9c] sm:$0xf] %v1277_v43  ;;  %1280 = vst [vmem:[%s2437_s15 + $0xa0] sm:$0xf] %v1279_v44  ;;  %v1283_v46 = vld [vmem:[%s2441_s20 + $0xa8] sm:$0xf] }
 0x196   : >> { %1282 = vst [vmem:[%s2437_s15 + $0xa4] sm:$0xf] %v1281_v45  ;;  %v1285_v47 = vld [vmem:[%s2441_s20 + $0xac] sm:$0xf]  ;;  %v1287_v48 = vld [vmem:[%s2441_s20 + $0xb0] sm:$0xf] }
 0x197   : >> { %1284 = vst [vmem:[%s2437_s15 + $0xa8] sm:$0xf] %v1283_v46  ;;  %1286 = vst [vmem:[%s2437_s15 + $0xac] sm:$0xf] %v1285_v47  ;;  %v1289_v49 = vld [vmem:[%s2441_s20 + $0xb4] sm:$0xf] }
 0x198   : >> { %1288 = vst [vmem:[%s2437_s15 + $0xb0] sm:$0xf] %v1287_v48  ;;  %v1291_v50 = vld [vmem:[%s2441_s20 + $0xb8] sm:$0xf]  ;;  %v1293_v51 = vld [vmem:[%s2441_s20 + $0xbc] sm:$0xf] }
 0x199   : >> { %1290 = vst [vmem:[%s2437_s15 + $0xb4] sm:$0xf] %v1289_v49  ;;  %1292 = vst [vmem:[%s2437_s15 + $0xb8] sm:$0xf] %v1291_v50  ;;  %v1295_v52 = vld [vmem:[%s2441_s20 + $0xc0] sm:$0xf] }
 0x19a   : >> { %1294 = vst [vmem:[%s2437_s15 + $0xbc] sm:$0xf] %v1293_v51  ;;  %v1297_v53 = vld [vmem:[%s2441_s20 + $0xc4] sm:$0xf]  ;;  %v1299_v54 = vld [vmem:[%s2441_s20 + $0xc8] sm:$0xf] }
 0x19b   : >> { %1296 = vst [vmem:[%s2437_s15 + $0xc0] sm:$0xf] %v1295_v52  ;;  %1298 = vst [vmem:[%s2437_s15 + $0xc4] sm:$0xf] %v1297_v53  ;;  %v1301_v55 = vld [vmem:[%s2441_s20 + $0xcc] sm:$0xf] }
 0x19c   : >> { %1300 = vst [vmem:[%s2437_s15 + $0xc8] sm:$0xf] %v1299_v54  ;;  %v1303_v56 = vld [vmem:[%s2441_s20 + $0xd0] sm:$0xf]  ;;  %v1305_v57 = vld [vmem:[%s2441_s20 + $0xd4] sm:$0xf] }
 0x19d   : >> { %1302 = vst [vmem:[%s2437_s15 + $0xcc] sm:$0xf] %v1301_v55  ;;  %1304 = vst [vmem:[%s2437_s15 + $0xd0] sm:$0xf] %v1303_v56  ;;  %v1307_v58 = vld [vmem:[%s2441_s20 + $0xd8] sm:$0xf] }
 0x19e   : >> { %1306 = vst [vmem:[%s2437_s15 + $0xd4] sm:$0xf] %v1305_v57  ;;  %v1309_v59 = vld [vmem:[%s2441_s20 + $0xdc] sm:$0xf]  ;;  %v1311_v60 = vld [vmem:[%s2441_s20 + $0xe0] sm:$0xf] }
 0x19f   : >> { %1308 = vst [vmem:[%s2437_s15 + $0xd8] sm:$0xf] %v1307_v58  ;;  %1310 = vst [vmem:[%s2437_s15 + $0xdc] sm:$0xf] %v1309_v59  ;;  %v1313_v61 = vld [vmem:[%s2441_s20 + $0xe4] sm:$0xf] }
 0x1a0   : >> { %1312 = vst [vmem:[%s2437_s15 + $0xe0] sm:$0xf] %v1311_v60  ;;  %v1315_v62 = vld [vmem:[%s2441_s20 + $0xe8] sm:$0xf]  ;;  %v1317_v63 = vld [vmem:[%s2441_s20 + $0xec] sm:$0xf] }
 0x1a1   : >> { %1314 = vst [vmem:[%s2437_s15 + $0xe4] sm:$0xf] %v1313_v61  ;;  %1316 = vst [vmem:[%s2437_s15 + $0xe8] sm:$0xf] %v1315_v62  ;;  %v1319_v0 = vld [vmem:[%s2441_s20 + $0xf0] sm:$0xf] }
 0x1a2   : >> { %1318 = vst [vmem:[%s2437_s15 + $0xec] sm:$0xf] %v1317_v63  ;;  %v1321_v1 = vld [vmem:[%s2441_s20 + $0xf4] sm:$0xf]  ;;  %v1323_v2 = vld [vmem:[%s2441_s20 + $0xf8] sm:$0xf] }
 0x1a3   : >> { %1320 = vst [vmem:[%s2437_s15 + $0xf0] sm:$0xf] %v1319_v0  ;;  %1322 = vst [vmem:[%s2437_s15 + $0xf4] sm:$0xf] %v1321_v1  ;;  %v1325_v3 = vld [vmem:[%s2441_s20 + $0xfc] sm:$0xf] }
 0x1a4   : >> { %1324 = vst [vmem:[%s2437_s15 + $0xf8] sm:$0xf] %v1323_v2  ;;  %1326 = vst [vmem:[%s2437_s15 + $0xfc] sm:$0xf] %v1325_v3  ;;  %s2991_s23 = smov (%p1328_p2, %s1327_s23), 0  ;;  %s1193_s28 = sadd.s32 1, %s2449_s28  }
 0x1a5   : >> { %s1802_s29 = sshll.u32 %s2991_s23, 8  ;;  %p1192_p3 = scmp.ge.s32.totalorder %s1193_s28, %s2781_s25 }
 0x1a6   : >> { %s1332_s20 = scalar_lea.vmem %s2678_s12, %s1802_s29 [#allocation6]   ;;  %s1333_s15 = scalar_lea.vmem %s2775_s18, %s1802_s29  }
 0x1a7   : >> { %s2984_s27 = smov %s2991_s23  ;;  %1195 = sbr.rel (!%p1192_p3) target bundleno = 378 (0x17a), region = 127 }
 0x1ae PF: > { %s2949_s30 = sand.u32 63, %s2989_s10   ;;  %s1877_s4 = sshll.u32 %s2781_s25, 8 }
 0x1af   : > { %s1338_s24 = scalar_lea.vmem %s2678_s12, %s1877_s4 [#allocation6]   ;;  %s1340_s21 = scalar_lea.vmem %s2775_s18, %s1877_s4  }
 0x1b0   : > { %p1807_p5 = scmp.le.s32.totalorder %s2949_s30, 0 }
 0x1b1   : > { %s2451_s26 = smov (!%p1807_p5), %s1340_s21   ;;  %s2455_s5 = smov (!%p1807_p5), %s1338_s24  }
 0x1b2   : > { %1606 = sbr.rel (%p1807_p5) target bundleno = 451 (0x1c3), region = 132  ;;  %s2459_s6 = smov (!%p1807_p5), 0  }
 0x1b3   : > { %s2463_s7 = smov (!%p1807_p5), 0  }
 0x1b9 LB: >> { %v1350_v34 = vld [vmem:[%s2457_s5] sm:$0xf]  ;;  %s1352_s8 = sadd.s32 1, %s2461_s6  ;;  %s1344_s7 = sadd.s32 1, %s2465_s7   ;;  %s2465_s7 = sphi %s2463_s7, %s1344_s7   ;;  %s2461_s6 = sphi %s2459_s6, %s2460_s6   ;;  %s2457_s5 = sphi %s2455_s5, %s1357_s5   ;;  %s2453_s26 = sphi %s2451_s26, %s1358_s26  }
 0x1ba   : >> { %1351 = vst [vmem:[%s2453_s26] sm:$0xf] %v1350_v34  ;;  %p1353_p8 = scmp.ge.s32.totalorder %s1352_s8, %s2949_s30  ;;  %p1343_p10 = scmp.ge.s32.totalorder %s1344_s7, %s2949_s30 }
 0x1bc   : >> { %s2993_s8 = smov (%p1353_p8, %s1352_s8), 0  ;;  %1346 = sbr.rel (!%p1343_p10) target bundleno = 441 (0x1b9), region = 138 }
 0x1bd   : >> { %s1808_s9 = sshll.u32 %s2993_s8, 2  ;;  %s2460_s6 = smov %s2993_s8  }
 0x1be   : >> { %s1357_s5 = scalar_lea.vmem %s1338_s24, %s1808_s9 [#allocation6]   ;;  %s1358_s26 = scalar_lea.vmem %s1340_s21, %s1808_s9  }
 0x1c3 PF: > { %p12_p11 = scmp.ge.s32.totalorder %s2506_s16, 6   ;;  %s2985_s12 = smov %s2429_s13 }
 0x1c4   : > { %s2986_s13 = smov %s2514_s19  ;;  %s2987_s14 = smov %s2506_s16 }
 0x1c5   :  { %14 = sbr.rel (!%p12_p11) target bundleno = 3 (0x3), region = 149 }
 0x1cc   :  { %1545 = vsyncpa [#allocation3], 1 }
 0x1cd   :  { %1547 = vsyncpa [#allocation3 + $0x1], 1 }
 0x1ce   :  { %1548 = vsyncpa [#allocation5], 1 }

// kernel: nlayer_discriminator_forward.5
= control target key start
LH: loop header
LB: loop body
LE: loop exit
PB: predicated region body
PF: predicated region fallthrough
CT: control target
= control target key end

     0   :  { %s1621_s12 = smov 0   ;;  %s1623_s13 = smov 0   ;;  %s1921_s0 = inlined_call_operand.vmem [shape: bf16[450,128], index: 0, kind: input, shape index: {}]   ;;  %s1922_s1 = inlined_call_operand.vmem [shape: bf16[128,128], index: 1, kind: input, shape index: {}]   ;;  %s1923_s2 = inlined_call_operand.vmem [shape: f32[1,128], index: 2, kind: input, shape index: {}]   ;;  %s1924_s3 = inlined_call_operand.vmem [shape: bf16[450,128], index: 3, kind: output, shape index: {}]  }
   0x1   :  { %s1625_s14 = smov 0  }
   0x2 LB: > { %s1634_s15 = sadd.s32 4294967295, %s1565_s14   ;;  %s1636_s16 = sadd.s32 1, %s1565_s14   ;;  %s1565_s14 = sphi %s1625_s14, %s1931_s14   ;;  %s1561_s13 = sphi %s1623_s13, %s1930_s13   ;;  %s1557_s12 = sphi %s1621_s12, %s1929_s12  }
   0x3   : > { %s85_s17 = ssub.s32 %s1565_s14, %s1636_s16  ;;  %s88_s18 = sadd.s32 1, %s1561_s13 }
   0x4   : > { %p86_p0 = scmp.eq.s32.totalorder %s85_s17, 0  ;;  %p98_p1 = scmp.ne.s32.totalorder %s1561_s13, %s1557_s12 }
   0x5   : > { %p99_p2 = scmp.eq.s32.totalorder %s1634_s15, 1  ;;  %p1097_p3 = scmp.ge.s32.totalorder %s1565_s14, 1 }
   0x6   : > { %s1644_s19 = scalar_select %p86_p0, %s1561_s13, %s88_s18  }
   0x7   : > { %p1646_p4 = por %p99_p2, %p98_p1  ;;  %p146_p5 = scmp.lt.s32.totalorder %s1565_s14, 3 }
   0x9   : > { %p147_p6 = pnand %p1097_p3, %p146_p5 }
   0xa   : > { %v1484_v0 = vld [vmem:[%s1922_s1] sm:$0xff] (!%p147_p6)   ;;  %v1599_v1 = vmov (!%p147_p6), 0.0   ;;  %v1485_v2 = vld [vmem:[%s1922_s1 + $0x8] sm:$0xff] (!%p147_p6)   ;;  %s1659_s25 = smul.u32 (!%p147_p6), 29, %s1634_s15  ;;  %vm1600_vm0 = vmmov (!%p147_p6), 0   ;;  %v1486_v3 = vld [vmem:[%s1922_s1 + $0x10] sm:$0xff] (!%p147_p6)  }
   0xb   : > { %150 = sbr.rel (%p147_p6) target bundleno = 402 (0x192), region = 32  ;;  %1300 = vmatprep.subr.bf16.mxu0 (!%p147_p6), %v1599_v1  ;;  %1376 = vmatprep.subr.bf16.mxu1 (!%p147_p6), %v1599_v1  ;;  %v1487_v4 = vld [vmem:[%s1922_s1 + $0x18] sm:$0xff] (!%p147_p6)   ;;  %v1488_v5 = vld [vmem:[%s1922_s1 + $0x20] sm:$0xff] (!%p147_p6)   ;;  %v1489_v6 = vld [vmem:[%s1922_s1 + $0x28] sm:$0xff] (!%p147_p6)   ;;  %s170_s24 = sand.u32 (!%p147_p6), 1, %s1557_s12  }
   0xc   : > { %1301 = vmatpush3.bf16.msra.mxu0 (!%p147_p6), %v1484_v0  ;;  %1384 = vmatpush3.bf16.msra.mxu1 (!%p147_p6), %v1484_v0  ;;  %p178_p7 = scmp.lt.s32.totalorder (!%p147_p6), %s1659_s25, 56  ;;  %v1490_v7 = vld [vmem:[%s1922_s1 + $0x30] sm:$0xff] (!%p147_p6)   ;;  %v1491_v8 = vld [vmem:[%s1922_s1 + $0x38] sm:$0xff] (!%p147_p6)   ;;  %v1748_v24 = vld [vmem:[%s1923_s2] ss:$0 sm:$0xff] (!%p147_p6)  ;;  %s1392_s26 = smul.u32 (!%p147_p6), 116, %s170_s24 }
   0xd   : > { %1302 = vmatprep.subr.bf16.mxu0 (!%p147_p6), %v1599_v1  ;;  %1377 = vmatprep.subr.bf16.mxu1 (!%p147_p6), %v1599_v1 }
   0xe   : > { %1316 = vmatprep.mubr.msk.bf16.mxu0 (!%p147_p6), %vm1600_vm0, %v1599_v1  ;;  %1348 = vmatprep.mubr.msk.bf16.mxu1 (!%p147_p6), %vm1600_vm0, %v1599_v1  ;;  %s1757_s12 = scalar_lea.vmem (!%p147_p6), [#allocation2], %s1392_s26  }
  0x10   : > { %1303 = vmatpush3.bf16.msra.mxu0 (!%p147_p6), %v1485_v2  ;;  %1385 = vmatpush3.bf16.msra.mxu1 (!%p147_p6), %v1485_v2 }
  0x11   : > { %1304 = vmatprep.subr.bf16.mxu0 (!%p147_p6), %v1599_v1  ;;  %1378 = vmatprep.subr.bf16.mxu1 (!%p147_p6), %v1599_v1 }
  0x12   : > { %s179_s28 = scalar_select %p178_p7, %s1659_s25, 56 }
  0x13   : > { %s774_s27 = ssub.s32 (%p1646_p4), 57, %s1659_s25 }
  0x14   : > { %s1098_s29 = sshll.u32 %s179_s28, 2  ;;  %1305 = vmatpush3.bf16.msra.mxu0 %v1486_v3  ;;  %1386 = vmatpush3.bf16.msra.mxu1 %v1486_v3  ;;  %s1193_s28 = smul.u32 (%p1646_p4), 116, %s1634_s15 }
  0x15   : > { %s1677_s5 = scalar_lea.vmem %s1921_s0, %s1098_s29  ;;  %1306 = vmatprep.subr.bf16.mxu0 %v1599_v1  ;;  %1379 = vmatprep.subr.bf16.mxu1 %v1599_v1  ;;  %p775_p8 = scmp.lt.s32.totalorder (%p1646_p4), %s774_s27, 29 }
  0x16   : > { %v1492_v9 = vld [vmem:[%s1677_s5] sm:$0xff]   ;;  %v1494_v11 = vld [vmem:[%s1677_s5 + $0x8] sm:$0xff]   ;;  %v1496_v13 = vld [vmem:[%s1677_s5 + $0x10] sm:$0xff]   ;;  %s1804_s4 = scalar_lea.vmem (%p1646_p4), %s1924_s3, %s1193_s28  }
  0x17   : > { %v1493_v10 = vld [vmem:[%s1677_s5 + $0x40] sm:$0xff]   ;;  %v1495_v12 = vld [vmem:[%s1677_s5 + $0x48] sm:$0xff]   ;;  %v1497_v14 = vld [vmem:[%s1677_s5 + $0x50] sm:$0xff]  }
  0x18   : > { %1307 = vmatpush3.bf16.msra.mxu0 %v1487_v4  ;;  %1387 = vmatpush3.bf16.msra.mxu1 %v1487_v4  ;;  %v1498_v15 = vld [vmem:[%s1677_s5 + $0x18] sm:$0xff]   ;;  %v1500_v17 = vld [vmem:[%s1677_s5 + $0x20] sm:$0xff]   ;;  %v1502_v19 = vld [vmem:[%s1677_s5 + $0x28] sm:$0xff]  }
  0x19   : > { %1308 = vmatprep.subr.bf16.mxu0 %v1599_v1  ;;  %1380 = vmatprep.subr.bf16.mxu1 %v1599_v1  ;;  %v1499_v16 = vld [vmem:[%s1677_s5 + $0x58] sm:$0xff]   ;;  %v1501_v18 = vld [vmem:[%s1677_s5 + $0x60] sm:$0xff]   ;;  %v1503_v20 = vld [vmem:[%s1677_s5 + $0x68] sm:$0xff]  }
  0x1a   : > { %v1504_v21 = vld [vmem:[%s1677_s5 + $0x30] sm:$0xff]   ;;  %v1506_v23 = vld [vmem:[%s1677_s5 + $0x38] sm:$0xff]  }
  0x1b   : > { %v1505_v22 = vld [vmem:[%s1677_s5 + $0x70] ss:$0 sps:$4 sm:$0xff]  }
  0x1c   : > { %1309 = vmatpush3.bf16.msra.mxu0 %v1488_v5  ;;  %1388 = vmatpush3.bf16.msra.mxu1 %v1488_v5 }
  0x1d   : > { %1310 = vmatprep.subr.bf16.mxu0 %v1599_v1  ;;  %1381 = vmatprep.subr.bf16.mxu1 %v1599_v1 }
  0x20   : > { %1311 = vmatpush3.bf16.msra.mxu0 %v1489_v6  ;;  %1389 = vmatpush3.bf16.msra.mxu1 %v1489_v6 }
  0x21   : > { %1312 = vmatprep.subr.bf16.mxu0 %v1599_v1  ;;  %1382 = vmatprep.subr.bf16.mxu1 %v1599_v1 }
  0x24   : > { %1313 = vmatpush3.bf16.msra.mxu0 %v1490_v7  ;;  %1390 = vmatpush3.bf16.msra.mxu1 %v1490_v7 }
  0x25   : > { %1314 = vmatprep.subr.bf16.mxu0 %v1599_v1  ;;  %1383 = vmatprep.subr.bf16.mxu1 %v1599_v1 }
  0x28   : > { %1315 = vmatpush3.bf16.msra.mxu0 %v1491_v8  ;;  %1391 = vmatpush3.bf16.msra.mxu1 %v1491_v8 }
  0x2b   : > { %1317 = vmatmul.mubr.bf16.vlgmr.msra.gmra.mrb[0].mxu0 %v1492_v9  ;;  %1349 = vmatmul.mubr.bf16.vlgmr.msra.gmra.mrb[0].mxu1 %v1493_v10 }
  0x2c   : > { %1320 = vmatprep.mubr.msk.bf16.mxu0 %vm1600_vm0, %v1599_v1  ;;  %1352 = vmatprep.mubr.msk.bf16.mxu1 %vm1600_vm0, %v1599_v1 }
  0x33   : > { %1321 = vmatmul.mubr.bf16.gmra.mrb[4].mxu0 %v1494_v11  ;;  %1353 = vmatmul.mubr.bf16.gmra.mrb[4].mxu1 %v1495_v12 }
  0x34   : > { %1324 = vmatprep.mubr.msk.bf16.mxu0 %vm1600_vm0, %v1599_v1  ;;  %1356 = vmatprep.mubr.msk.bf16.mxu1 %vm1600_vm0, %v1599_v1 }
  0x3b   : > { %1325 = vmatmul.mubr.bf16.gmra.mrb[8].mxu0 %v1496_v13  ;;  %1357 = vmatmul.mubr.bf16.gmra.mrb[8].mxu1 %v1497_v14 }
  0x3c   : > { %1328 = vmatprep.mubr.msk.bf16.mxu0 %vm1600_vm0, %v1599_v1  ;;  %1360 = vmatprep.mubr.msk.bf16.mxu1 %vm1600_vm0, %v1599_v1 }
  0x43   : > { %1329 = vmatmul.mubr.bf16.gmra.mrb[12].mxu0 %v1498_v15  ;;  %1361 = vmatmul.mubr.bf16.gmra.mrb[12].mxu1 %v1499_v16 }
  0x44   : > { %1332 = vmatprep.mubr.msk.bf16.mxu0 %vm1600_vm0, %v1599_v1  ;;  %1364 = vmatprep.mubr.msk.bf16.mxu1 %vm1600_vm0, %v1599_v1 }
  0x4b   : > { %1333 = vmatmul.mubr.bf16.gmra.mrb[16].mxu0 %v1500_v17  ;;  %1365 = vmatmul.mubr.bf16.gmra.mrb[16].mxu1 %v1501_v18 }
  0x4c   : > { %1336 = vmatprep.mubr.msk.bf16.mxu0 %vm1600_vm0, %v1599_v1  ;;  %1368 = vmatprep.mubr.msk.bf16.mxu1 %vm1600_vm0, %v1599_v1 }
  0x53   : > { %1337 = vmatmul.mubr.bf16.gmra.mrb[20].mxu0 %v1502_v19  ;;  %1369 = vmatmul.mubr.bf16.gmra.mrb[20].mxu1 %v1503_v20 }
  0x54   : > { %1340 = vmatprep.mubr.msk.bf16.mxu0 %vm1600_vm0, %v1599_v1  ;;  %1372 = vmatprep.mubr.msk.bf16.mxu1 %vm1600_vm0, %v1599_v1 }
  0x5b   : > { %1341 = vmatmul.mubr.bf16.gmra.mrb[24].mxu0 %v1504_v21  ;;  %1373 = vmatmul.mubr.bf16.gmra.mrb[24].mxu1 %v1505_v22 }
  0x5c   : > { %1344 = vmatprep.mubr.msk.bf16.mxu0 %vm1600_vm0, %v1599_v1 }
  0x63   : > { %1345 = vmatmul.mubr.bf16.gmra.mrb[28].mxu0 %v1506_v23 }
  0xfe   : > { %v415_v25 = vpop.f32.mrb[0].mxu0  ;;  %v479_v26 = vpop.f32.mrb[0].mxu1 }
  0xff   : > { %v416_v27 = vadd.f32 %v1748_v24, %v415_v25  ;;  %v1318_v28 = vpop.f32.mrb[1].mxu0  ;;  %v480_v29 = vadd.f32 %v1748_v24, %v479_v26  ;;  %v1350_v30 = vpop.f32.mrb[1].mxu1 }
 0x100   : > { %v418_v31 = vpop.f32.mrb[2].mxu0  ;;  %v482_v32 = vpop.f32.mrb[2].mxu1 }
 0x101   : > { %v562_v33 = vmul.f32 0.1, %v416_v27  ;;  %v419_v34 = vadd.f32 %v1748_v24, %v418_v31  ;;  %v1319_v35 = vpop.f32.mrb[3].mxu0  ;;  %vm549_vm1 = vcmp.ge.f32.partialorder %v480_v29, 0.0  ;;  %v1351_v36 = vpop.f32.mrb[3].mxu1  ;;  %vm533_vm2 = vcmp.ge.f32.partialorder %v416_v27, 0.0 }
 0x102   : > { %v578_v37 = vmul.f32 0.1, %v480_v29  ;;  %v483_v38 = vadd.f32 %v1748_v24, %v482_v32 }
 0x103   : > { %vm534_vm3 = vcmp.ge.f32.partialorder %v419_v34, 0.0  ;;  %v563_v39 = vmul.f32 0.1, %v419_v34  ;;  %v591_v42 = vsel %vm533_vm2, %v416_v27, %v562_v33 }
 0x104   : > { %v607_v40 = vsel %vm549_vm1, %v480_v29, %v578_v37  ;;  %vm550_vm4 = vcmp.ge.f32.partialorder %v483_v38, 0.0  ;;  %v579_v41 = vmul.f32 0.1, %v483_v38 }
 0x105   : > { %v592_v43 = vsel %vm534_vm3, %v419_v34, %v563_v39 }
 0x106   : > { %v1197_v44 = vpack.c.bf16 %v592_v43, %v591_v42  ;;  %v423_v45 = vpop.f32.mrb[4].mxu0  ;;  %v608_v46 = vsel %vm550_vm4, %v483_v38, %v579_v41  ;;  %v487_v47 = vpop.f32.mrb[4].mxu1 }
 0x107   : > { %v424_v48 = vadd.f32 %v1748_v24, %v423_v45  ;;  %v1237_v49 = vpack.c.bf16 %v608_v46, %v607_v40  ;;  %v1322_v50 = vpop.f32.mrb[5].mxu0  ;;  %v488_v51 = vadd.f32 %v1748_v24, %v487_v47  ;;  %v1354_v52 = vpop.f32.mrb[5].mxu1 }
 0x108   : > { %1198 = vst [vmem:[%s1757_s12] sm:$0xff] %v1197_v44   ;;  %v426_v53 = vpop.f32.mrb[6].mxu0  ;;  %v490_v54 = vpop.f32.mrb[6].mxu1 }
 0x109   : > { %v564_v55 = vmul.f32 0.1, %v424_v48  ;;  %1271 = vst [vmem:[%s1757_s12 + $0x40] sm:$0xff] %v1237_v49   ;;  %v427_v56 = vadd.f32 %v1748_v24, %v426_v53  ;;  %v1323_v57 = vpop.f32.mrb[7].mxu0  ;;  %vm551_vm5 = vcmp.ge.f32.partialorder %v488_v51, 0.0  ;;  %v1355_v58 = vpop.f32.mrb[7].mxu1  ;;  %v491_v60 = vadd.f32 %v1748_v24, %v490_v54 }
 0x10a   : > { %vm535_vm6 = vcmp.ge.f32.partialorder %v424_v48, 0.0  ;;  %v580_v59 = vmul.f32 0.1, %v488_v51 }
 0x10b   : > { %vm536_vm7 = vcmp.ge.f32.partialorder %v427_v56, 0.0  ;;  %v565_v61 = vmul.f32 0.1, %v427_v56  ;;  %vm552_vm8 = vcmp.ge.f32.partialorder %v491_v60, 0.0  ;;  %v581_v63 = vmul.f32 0.1, %v491_v60 }
 0x10c   : > { %v609_v62 = vsel %vm551_vm5, %v488_v51, %v580_v59  ;;  %v593_v0 = vsel %vm535_vm6, %v424_v48, %v564_v55 }
 0x10d   : > { %v594_v1 = vsel %vm536_vm7, %v427_v56, %v565_v61  ;;  %v610_v4 = vsel %vm552_vm8, %v491_v60, %v581_v63 }
 0x10e   : > { %v1202_v2 = vpack.c.bf16 %v594_v1, %v593_v0  ;;  %v431_v3 = vpop.f32.mrb[8].mxu0  ;;  %v495_v5 = vpop.f32.mrb[8].mxu1  ;;  %v1242_v7 = vpack.c.bf16 %v610_v4, %v609_v62 }
 0x10f   : > { %v432_v6 = vadd.f32 %v1748_v24, %v431_v3  ;;  %v1326_v8 = vpop.f32.mrb[9].mxu0  ;;  %v496_v9 = vadd.f32 %v1748_v24, %v495_v5  ;;  %v1358_v10 = vpop.f32.mrb[9].mxu1 }
 0x110   : > { %1264 = vst [vmem:[%s1757_s12 + $0x8] sm:$0xff] %v1202_v2   ;;  %v434_v11 = vpop.f32.mrb[10].mxu0  ;;  %v498_v12 = vpop.f32.mrb[10].mxu1  ;;  %1272 = vst [vmem:[%s1757_s12 + $0x48] sm:$0xff] %v1242_v7  }
 0x111   : > { %v566_v13 = vmul.f32 0.1, %v432_v6  ;;  %v435_v14 = vadd.f32 %v1748_v24, %v434_v11  ;;  %v1327_v15 = vpop.f32.mrb[11].mxu0  ;;  %vm553_vm9 = vcmp.ge.f32.partialorder %v496_v9, 0.0  ;;  %v1359_v16 = vpop.f32.mrb[11].mxu1  ;;  %vm537_vm10 = vcmp.ge.f32.partialorder %v432_v6, 0.0 }
 0x112   : > { %v582_v17 = vmul.f32 0.1, %v496_v9  ;;  %v499_v18 = vadd.f32 %v1748_v24, %v498_v12 }
 0x113   : > { %vm538_vm11 = vcmp.ge.f32.partialorder %v435_v14, 0.0  ;;  %v567_v19 = vmul.f32 0.1, %v435_v14  ;;  %v595_v22 = vsel %vm537_vm10, %v432_v6, %v566_v13 }
 0x114   : > { %v611_v20 = vsel %vm553_vm9, %v496_v9, %v582_v17  ;;  %vm554_vm12 = vcmp.ge.f32.partialorder %v499_v18, 0.0  ;;  %v583_v21 = vmul.f32 0.1, %v499_v18 }
 0x115   : > { %v596_v23 = vsel %vm538_vm11, %v435_v14, %v567_v19 }
 0x116   : > { %v1207_v25 = vpack.c.bf16 %v596_v23, %v595_v22  ;;  %v439_v26 = vpop.f32.mrb[12].mxu0  ;;  %v612_v27 = vsel %vm554_vm12, %v499_v18, %v583_v21  ;;  %v503_v28 = vpop.f32.mrb[12].mxu1 }
 0x117   : > { %v440_v29 = vadd.f32 %v1748_v24, %v439_v26  ;;  %v1247_v30 = vpack.c.bf16 %v612_v27, %v611_v20  ;;  %v1330_v31 = vpop.f32.mrb[13].mxu0  ;;  %v504_v32 = vadd.f32 %v1748_v24, %v503_v28  ;;  %v1362_v33 = vpop.f32.mrb[13].mxu1 }
 0x118   : > { %1265 = vst [vmem:[%s1757_s12 + $0x10] sm:$0xff] %v1207_v25   ;;  %v442_v34 = vpop.f32.mrb[14].mxu0  ;;  %v506_v35 = vpop.f32.mrb[14].mxu1 }
 0x119   : > { %v568_v36 = vmul.f32 0.1, %v440_v29  ;;  %1273 = vst [vmem:[%s1757_s12 + $0x50] sm:$0xff] %v1247_v30   ;;  %v443_v37 = vadd.f32 %v1748_v24, %v442_v34  ;;  %v1331_v38 = vpop.f32.mrb[15].mxu0  ;;  %vm555_vm13 = vcmp.ge.f32.partialorder %v504_v32, 0.0  ;;  %v1363_v39 = vpop.f32.mrb[15].mxu1  ;;  %v507_v41 = vadd.f32 %v1748_v24, %v506_v35 }
 0x11a   : > { %vm539_vm14 = vcmp.ge.f32.partialorder %v440_v29, 0.0  ;;  %v584_v40 = vmul.f32 0.1, %v504_v32 }
 0x11b   : > { %vm540_vm15 = vcmp.ge.f32.partialorder %v443_v37, 0.0  ;;  %v569_v42 = vmul.f32 0.1, %v443_v37  ;;  %vm556_vm0 = vcmp.ge.f32.partialorder %v507_v41, 0.0  ;;  %v585_v44 = vmul.f32 0.1, %v507_v41 }
 0x11c   : > { %v613_v43 = vsel %vm555_vm13, %v504_v32, %v584_v40  ;;  %v597_v45 = vsel %vm539_vm14, %v440_v29, %v568_v36 }
 0x11d   : > { %v598_v46 = vsel %vm540_vm15, %v443_v37, %v569_v42  ;;  %v614_v49 = vsel %vm556_vm0, %v507_v41, %v585_v44 }
 0x11e   : > { %v1212_v47 = vpack.c.bf16 %v598_v46, %v597_v45  ;;  %v447_v48 = vpop.f32.mrb[16].mxu0  ;;  %v511_v50 = vpop.f32.mrb[16].mxu1  ;;  %v1252_v52 = vpack.c.bf16 %v614_v49, %v613_v43 }
 0x11f   : > { %v448_v51 = vadd.f32 %v1748_v24, %v447_v48  ;;  %v1334_v53 = vpop.f32.mrb[17].mxu0  ;;  %v512_v54 = vadd.f32 %v1748_v24, %v511_v50  ;;  %v1366_v55 = vpop.f32.mrb[17].mxu1 }
 0x120   : > { %1266 = vst [vmem:[%s1757_s12 + $0x18] sm:$0xff] %v1212_v47   ;;  %v450_v56 = vpop.f32.mrb[18].mxu0  ;;  %v514_v57 = vpop.f32.mrb[18].mxu1  ;;  %1274 = vst [vmem:[%s1757_s12 + $0x58] sm:$0xff] %v1252_v52  }
 0x121   : > { %v570_v58 = vmul.f32 0.1, %v448_v51  ;;  %v451_v59 = vadd.f32 %v1748_v24, %v450_v56  ;;  %v1335_v60 = vpop.f32.mrb[19].mxu0  ;;  %vm557_vm1 = vcmp.ge.f32.partialorder %v512_v54, 0.0  ;;  %v1367_v61 = vpop.f32.mrb[19].mxu1  ;;  %vm541_vm2 = vcmp.ge.f32.partialorder %v448_v51, 0.0 }
 0x122   : > { %v586_v62 = vmul.f32 0.1, %v512_v54  ;;  %v515_v63 = vadd.f32 %v1748_v24, %v514_v57 }
 0x123   : > { %vm542_vm3 = vcmp.ge.f32.partialorder %v451_v59, 0.0  ;;  %v571_v0 = vmul.f32 0.1, %v451_v59  ;;  %v599_v3 = vsel %vm541_vm2, %v448_v51, %v570_v58 }
 0x124   : > { %v615_v1 = vsel %vm557_vm1, %v512_v54, %v586_v62  ;;  %vm558_vm4 = vcmp.ge.f32.partialorder %v515_v63, 0.0  ;;  %v587_v2 = vmul.f32 0.1, %v515_v63 }
 0x125   : > { %v600_v4 = vsel %vm542_vm3, %v451_v59, %v571_v0 }
 0x126   : > { %v1217_v5 = vpack.c.bf16 %v600_v4, %v599_v3  ;;  %v455_v6 = vpop.f32.mrb[20].mxu0  ;;  %v616_v7 = vsel %vm558_vm4, %v515_v63, %v587_v2  ;;  %v519_v8 = vpop.f32.mrb[20].mxu1 }
 0x127   : > { %v456_v9 = vadd.f32 %v1748_v24, %v455_v6  ;;  %v1257_v10 = vpack.c.bf16 %v616_v7, %v615_v1  ;;  %v1338_v11 = vpop.f32.mrb[21].mxu0  ;;  %v520_v12 = vadd.f32 %v1748_v24, %v519_v8  ;;  %v1370_v13 = vpop.f32.mrb[21].mxu1 }
 0x128   : > { %1267 = vst [vmem:[%s1757_s12 + $0x20] sm:$0xff] %v1217_v5   ;;  %v458_v14 = vpop.f32.mrb[22].mxu0  ;;  %v522_v15 = vpop.f32.mrb[22].mxu1 }
 0x129   : > { %v572_v16 = vmul.f32 0.1, %v456_v9  ;;  %1275 = vst [vmem:[%s1757_s12 + $0x60] sm:$0xff] %v1257_v10   ;;  %v459_v17 = vadd.f32 %v1748_v24, %v458_v14  ;;  %v1339_v18 = vpop.f32.mrb[23].mxu0  ;;  %vm559_vm5 = vcmp.ge.f32.partialorder %v520_v12, 0.0  ;;  %v1371_v19 = vpop.f32.mrb[23].mxu1  ;;  %v523_v21 = vadd.f32 %v1748_v24, %v522_v15 }
 0x12a   : > { %vm543_vm6 = vcmp.ge.f32.partialorder %v456_v9, 0.0  ;;  %v588_v20 = vmul.f32 0.1, %v520_v12 }
 0x12b   : > { %vm544_vm7 = vcmp.ge.f32.partialorder %v459_v17, 0.0  ;;  %v573_v22 = vmul.f32 0.1, %v459_v17  ;;  %vm560_vm8 = vcmp.ge.f32.partialorder %v523_v21, 0.0  ;;  %v589_v25 = vmul.f32 0.1, %v523_v21 }
 0x12c   : > { %v617_v23 = vsel %vm559_vm5, %v520_v12, %v588_v20  ;;  %v601_v26 = vsel %vm543_vm6, %v456_v9, %v572_v16 }
 0x12d   : > { %v602_v27 = vsel %vm544_vm7, %v459_v17, %v573_v22  ;;  %v618_v30 = vsel %vm560_vm8, %v523_v21, %v589_v25 }
 0x12e   : > { %v1222_v28 = vpack.c.bf16 %v602_v27, %v601_v26  ;;  %v463_v29 = vpop.f32.mrb[24].mxu0  ;;  %v527_v31 = vpop.f32.mrb[24].mxu1  ;;  %v1262_v33 = vpack.c.bf16 %v618_v30, %v617_v23 }
 0x12f   : > { %v464_v32 = vadd.f32 %v1748_v24, %v463_v29  ;;  %v1342_v34 = vpop.f32.mrb[25].mxu0  ;;  %v528_v35 = vadd.f32 %v1748_v24, %v527_v31  ;;  %v1374_v36 = vpop.f32.mrb[25].mxu1 }
 0x130   : > { %1268 = vst [vmem:[%s1757_s12 + $0x28] sm:$0xff] %v1222_v28   ;;  %v466_v37 = vpop.f32.mrb[26].mxu0  ;;  %v530_v38 = vpop.f32.mrb[26].mxu1  ;;  %1276 = vst [vmem:[%s1757_s12 + $0x68] sm:$0xff] %v1262_v33  }
 0x131   : > { %v574_v39 = vmul.f32 0.1, %v464_v32  ;;  %v467_v40 = vadd.f32 %v1748_v24, %v466_v37  ;;  %v1343_v41 = vpop.f32.mrb[27].mxu0  ;;  %vm561_vm9 = vcmp.ge.f32.partialorder %v528_v35, 0.0  ;;  %v1375_v42 = vpop.f32.mrb[27].mxu1  ;;  %vm545_vm10 = vcmp.ge.f32.partialorder %v464_v32, 0.0 }
 0x132   : > { %v590_v43 = vmul.f32 0.1, %v528_v35 }
 0x133   : > { %vm546_vm11 = vcmp.ge.f32.partialorder %v467_v40, 0.0  ;;  %v575_v44 = vmul.f32 0.1, %v467_v40  ;;  %v603_v46 = vsel %vm545_vm10, %v464_v32, %v574_v39 }
 0x134   : > { %v619_v45 = vsel %vm561_vm9, %v528_v35, %v590_v43 }
 0x135   : > { %v604_v47 = vsel %vm546_vm11, %v467_v40, %v575_v44  ;;  %v1192_v48 = vpack.c.bf16 %v619_v45, %v619_v45 }
 0x136   : > { %v1227_v49 = vpack.c.bf16 %v604_v47, %v603_v46  ;;  %v471_v50 = vpop.f32.mrb[28].mxu0 }
 0x137   : > { %765 = vst [vmem:[%s1757_s12 + $0x70] sm:$0xf] %v1192_v48  ;;  %v472_v51 = vadd.f32 %v1748_v24, %v471_v50  ;;  %v1346_v52 = vpop.f32.mrb[29].mxu0 }
 0x138   : > { %1269 = vst [vmem:[%s1757_s12 + $0x30] sm:$0xff] %v1227_v49   ;;  %v474_v53 = vpop.f32.mrb[30].mxu0 }
 0x139   : > { %v576_v54 = vmul.f32 0.1, %v472_v51  ;;  %v475_v55 = vadd.f32 %v1748_v24, %v474_v53  ;;  %v1347_v56 = vpop.f32.mrb[31].mxu0  ;;  %vm547_vm12 = vcmp.ge.f32.partialorder %v472_v51, 0.0 }
 0x13a   : > { %772 = sbr.rel (!%p1646_p4) target bundleno = 402 (0x192), region = 36 }
 0x13b   : > { %vm548_vm13 = vcmp.ge.f32.partialorder %v475_v55, 0.0  ;;  %v577_v57 = vmul.f32 0.1, %v475_v55  ;;  %v605_v58 = vsel %vm547_vm12, %v472_v51, %v576_v54 }
 0x13d   : > { %v606_v59 = vsel %vm548_vm13, %v475_v55, %v577_v57 }
 0x13e   : > { %v1232_v60 = vpack.c.bf16 %v606_v59, %v605_v58 }
 0x140   : > { %1270 = vst [vmem:[%s1757_s12 + $0x38] sm:$0xff] %v1232_v60  }
 0x141   : > { %s1933_s27 = smov (!%p775_p8, %s774_s27), 29 }
 0x142   : > { %s1152_s5 = sshll.u32 %s1933_s27, 6 }
 0x143   : > { %p1155_p9 = scmp.eq.s32.totalorder %s1152_s5, 0 }
 0x144   : > { %1507 = sdivrem.u32 (!%p1155_p9), %s1933_s27, 29 }
 0x145   : > { %783 = sbr.rel (%p1155_p9) target bundleno = 402 (0x192), region = 40 }
 0x14d   : > { %s1810_s20 = spop.drf %1507 }
 0x14e   : > { %p1156_p10 = scmp.le.s32.totalorder %s1810_s20, 0 }
 0x14f   : > { %s1926_s15 = smov (!%p1156_p10), %s1804_s4  ;;  %s1927_s25 = smov (!%p1156_p10), %s1757_s12 }
 0x150   : > { %1050 = sbr.rel (%p1156_p10) target bundleno = 373 (0x175), region = 112  ;;  %s1819_s6 = smov (!%p1156_p10), 0  }
 0x151   : > { %s1821_s7 = smov (!%p1156_p10), 0  }
 0x157 LB: >> { %v800_v24 = vld [vmem:[%s1573_s25] sm:$0xf]  ;;  %v802_v61 = vld [vmem:[%s1573_s25 + $0x4] sm:$0xf]  ;;  %v804_v62 = vld [vmem:[%s1573_s25 + $0x8] sm:$0xf]  ;;  %s1581_s7 = sphi %s1821_s7, %s794_s7   ;;  %s1577_s6 = sphi %s1819_s6, %s1928_s6   ;;  %s1573_s25 = sphi %s1927_s25, %s863_s25   ;;  %s1569_s15 = sphi %s1926_s15, %s864_s15  }
 0x158   : >> { %801 = vst [vmem:[%s1569_s15] sm:$0xf] %v800_v24  ;;  %803 = vst [vmem:[%s1569_s15 + $0x4] sm:$0xf] %v802_v61  ;;  %v806_v63 = vld [vmem:[%s1573_s25 + $0xc] sm:$0xf]  ;;  %s858_s8 = sadd.s32 1, %s1577_s6 }
 0x159   : >> { %805 = vst [vmem:[%s1569_s15 + $0x8] sm:$0xf] %v804_v62  ;;  %v808_v0 = vld [vmem:[%s1573_s25 + $0x10] sm:$0xf]  ;;  %v810_v1 = vld [vmem:[%s1573_s25 + $0x14] sm:$0xf]  ;;  %p859_p11 = scmp.ge.s32.totalorder %s858_s8, %s1810_s20 }
 0x15a   : >> { %807 = vst [vmem:[%s1569_s15 + $0xc] sm:$0xf] %v806_v63  ;;  %809 = vst [vmem:[%s1569_s15 + $0x10] sm:$0xf] %v808_v0  ;;  %v812_v2 = vld [vmem:[%s1573_s25 + $0x18] sm:$0xf] }
 0x15b   : >> { %811 = vst [vmem:[%s1569_s15 + $0x14] sm:$0xf] %v810_v1  ;;  %v814_v3 = vld [vmem:[%s1573_s25 + $0x1c] sm:$0xf]  ;;  %v816_v4 = vld [vmem:[%s1573_s25 + $0x20] sm:$0xf] }
 0x15c   : >> { %813 = vst [vmem:[%s1569_s15 + $0x18] sm:$0xf] %v812_v2  ;;  %815 = vst [vmem:[%s1569_s15 + $0x1c] sm:$0xf] %v814_v3  ;;  %v818_v5 = vld [vmem:[%s1573_s25 + $0x24] sm:$0xf] }
 0x15d   : >> { %817 = vst [vmem:[%s1569_s15 + $0x20] sm:$0xf] %v816_v4  ;;  %v820_v6 = vld [vmem:[%s1573_s25 + $0x28] sm:$0xf]  ;;  %v822_v7 = vld [vmem:[%s1573_s25 + $0x2c] sm:$0xf] }
 0x15e   : >> { %819 = vst [vmem:[%s1569_s15 + $0x24] sm:$0xf] %v818_v5  ;;  %821 = vst [vmem:[%s1569_s15 + $0x28] sm:$0xf] %v820_v6  ;;  %v824_v8 = vld [vmem:[%s1573_s25 + $0x30] sm:$0xf] }
 0x15f   : >> { %823 = vst [vmem:[%s1569_s15 + $0x2c] sm:$0xf] %v822_v7  ;;  %v826_v9 = vld [vmem:[%s1573_s25 + $0x34] sm:$0xf]  ;;  %v828_v10 = vld [vmem:[%s1573_s25 + $0x38] sm:$0xf] }
 0x160   : >> { %825 = vst [vmem:[%s1569_s15 + $0x30] sm:$0xf] %v824_v8  ;;  %827 = vst [vmem:[%s1569_s15 + $0x34] sm:$0xf] %v826_v9  ;;  %v830_v11 = vld [vmem:[%s1573_s25 + $0x3c] sm:$0xf] }
 0x161   : >> { %829 = vst [vmem:[%s1569_s15 + $0x38] sm:$0xf] %v828_v10  ;;  %v832_v12 = vld [vmem:[%s1573_s25 + $0x40] sm:$0xf]  ;;  %v834_v13 = vld [vmem:[%s1573_s25 + $0x44] sm:$0xf] }
 0x162   : >> { %831 = vst [vmem:[%s1569_s15 + $0x3c] sm:$0xf] %v830_v11  ;;  %833 = vst [vmem:[%s1569_s15 + $0x40] sm:$0xf] %v832_v12  ;;  %v836_v14 = vld [vmem:[%s1573_s25 + $0x48] sm:$0xf] }
 0x163   : >> { %835 = vst [vmem:[%s1569_s15 + $0x44] sm:$0xf] %v834_v13  ;;  %v838_v15 = vld [vmem:[%s1573_s25 + $0x4c] sm:$0xf]  ;;  %v840_v16 = vld [vmem:[%s1573_s25 + $0x50] sm:$0xf] }
 0x164   : >> { %837 = vst [vmem:[%s1569_s15 + $0x48] sm:$0xf] %v836_v14  ;;  %839 = vst [vmem:[%s1569_s15 + $0x4c] sm:$0xf] %v838_v15  ;;  %v842_v17 = vld [vmem:[%s1573_s25 + $0x54] sm:$0xf] }
 0x165   : >> { %841 = vst [vmem:[%s1569_s15 + $0x50] sm:$0xf] %v840_v16  ;;  %v844_v18 = vld [vmem:[%s1573_s25 + $0x58] sm:$0xf]  ;;  %v846_v19 = vld [vmem:[%s1573_s25 + $0x5c] sm:$0xf] }
 0x166   : >> { %843 = vst [vmem:[%s1569_s15 + $0x54] sm:$0xf] %v842_v17  ;;  %845 = vst [vmem:[%s1569_s15 + $0x58] sm:$0xf] %v844_v18  ;;  %v848_v20 = vld [vmem:[%s1573_s25 + $0x60] sm:$0xf] }
 0x167   : >> { %847 = vst [vmem:[%s1569_s15 + $0x5c] sm:$0xf] %v846_v19  ;;  %v850_v21 = vld [vmem:[%s1573_s25 + $0x64] sm:$0xf]  ;;  %v852_v22 = vld [vmem:[%s1573_s25 + $0x68] sm:$0xf] }
 0x168   : >> { %849 = vst [vmem:[%s1569_s15 + $0x60] sm:$0xf] %v848_v20  ;;  %851 = vst [vmem:[%s1569_s15 + $0x64] sm:$0xf] %v850_v21  ;;  %v854_v23 = vld [vmem:[%s1573_s25 + $0x6c] sm:$0xf] }
 0x169   : >> { %853 = vst [vmem:[%s1569_s15 + $0x68] sm:$0xf] %v852_v22  ;;  %v856_v25 = vld [vmem:[%s1573_s25 + $0x70] sm:$0xf]  ;;  %855 = vst [vmem:[%s1569_s15 + $0x6c] sm:$0xf] %v854_v23 }
 0x16a   : >> { %857 = vst [vmem:[%s1569_s15 + $0x70] sm:$0xf] %v856_v25  ;;  %s1935_s8 = smov (%p859_p11, %s858_s8), 0  ;;  %s794_s7 = sadd.s32 1, %s1581_s7  }
 0x16b   : >> { %s861_s9 = smul.u32 116, %s1935_s8  ;;  %p793_p12 = scmp.ge.s32.totalorder %s794_s7, %s1810_s20 }
 0x16c   : >> { %s1928_s6 = smov %s1935_s8 }
 0x16d   : >> { %s863_s25 = scalar_lea.vmem %s1757_s12, %s861_s9 [#allocation2]   ;;  %s864_s15 = scalar_lea.vmem %s1804_s4, %s861_s9  }
 0x16e   : > { %796 = sbr.rel (!%p793_p12) target bundleno = 343 (0x157), region = 118 }
 0x175 PF: > { %1509 = sdivrem.u32 %s1933_s27, 29 }
 0x176   : > { %s1157_s10 = smul.u32 116, %s1810_s20 }
 0x178   : > { %s869_s11 = scalar_lea.vmem %s1757_s12, %s1157_s10 [#allocation2]   ;;  %s871_s14 = scalar_lea.vmem %s1804_s4, %s1157_s10  }
 0x17e   : > { %s1510_s17 = spop.drf %1509 }
 0x17f   : > { %p1159_p13 = scmp.le.s32.totalorder %s1510_s17, 0 }
 0x180   : > { %s1583_s18 = smov (!%p1159_p13), %s871_s14   ;;  %s1587_s21 = smov (!%p1159_p13), %s869_s11  }
 0x181   : > { %1064 = sbr.rel (%p1159_p13) target bundleno = 402 (0x192), region = 123  ;;  %s1591_s22 = smov (!%p1159_p13), 0  }
 0x182   : > { %s1595_s23 = smov (!%p1159_p13), 0  }
 0x188 LB: >> { %v881_v26 = vld [vmem:[%s1589_s21] sm:$0xf]  ;;  %s883_s24 = sadd.s32 1, %s1593_s22  ;;  %s875_s23 = sadd.s32 1, %s1597_s23   ;;  %s1597_s23 = sphi %s1595_s23, %s875_s23   ;;  %s1593_s22 = sphi %s1591_s22, %s1592_s22   ;;  %s1589_s21 = sphi %s1587_s21, %s888_s21   ;;  %s1585_s18 = sphi %s1583_s18, %s889_s18  }
 0x189   : >> { %882 = vst [vmem:[%s1585_s18] sm:$0xf] %v881_v26  ;;  %p884_p0 = scmp.ge.s32.totalorder %s883_s24, %s1510_s17  ;;  %p874_p1 = scmp.ge.s32.totalorder %s875_s23, %s1510_s17 }
 0x18b   : >> { %s1937_s24 = smov (%p884_p0, %s883_s24), 0  ;;  %877 = sbr.rel (!%p874_p1) target bundleno = 392 (0x188), region = 129 }
 0x18c   : >> { %s1160_s26 = sshll.u32 %s1937_s24, 2  ;;  %s1592_s22 = smov %s1937_s24  }
 0x18d   : >> { %s888_s21 = scalar_lea.vmem %s869_s11, %s1160_s26 [#allocation2]   ;;  %s889_s18 = scalar_lea.vmem %s871_s14, %s1160_s26  }
 0x192 PF: > { %p10_p2 = scmp.ge.s32.totalorder %s1636_s16, 4   ;;  %s1929_s12 = smov %s1561_s13 }
 0x193   : > { %s1930_s13 = smov %s1644_s19  ;;  %s1931_s14 = smov %s1636_s16 }
 0x194   :  { %12 = sbr.rel (!%p10_p2) target bundleno = 2 (0x2), region = 140 }

// kernel: nlayer_discriminator_forward.6
= control target key start
LH: loop header
LB: loop body
LE: loop exit
PB: predicated region body
PF: predicated region fallthrough
CT: control target
= control target key end

     0   :  { %s1060_s12 = smov 0   ;;  %s1216_s0 = inlined_call_operand.vmem [shape: bf16[128,512], index: 0, kind: input, shape index: {}]   ;;  %s1217_s1 = inlined_call_operand.vmem [shape: bf16[512,128], index: 1, kind: input, shape index: {}]   ;;  %s1218_s2 = inlined_call_operand.vmem [shape: f32[1,128], index: 2, kind: input, shape index: {}]   ;;  %s1219_s3 = inlined_call_operand.vmem [shape: bf16[128,128], index: 3, kind: output, shape index: {}]  }
   0x1 LB: > { %s787_s13 = sadd.s32 4294967295, %s1038_s12   ;;  %p791_p0 = scmp.ge.s32.totalorder %s1038_s12, 1  ;;  %s1038_s12 = sphi %s1060_s12, %s13_s12  }
   0x2   : > { %p139_p1 = scmp.lt.s32.totalorder %s1038_s12, 3 }
   0x4   : > { %p140_p2 = pnand %p791_p0, %p139_p1 }
   0x5   : > { %v976_v0 = vld [vmem:[%s1217_s1 + $0x40] sm:$0xff] (!%p140_p2)   ;;  %v980_v4 = vld [vmem:[%s1217_s1 + $0x48] sm:$0xff] (!%p140_p2)   ;;  %v984_v8 = vld [vmem:[%s1217_s1 + $0x50] sm:$0xff] (!%p140_p2)   ;;  %s792_s21 = sshll.u32 (!%p140_p2), %s787_s13, 3 }
   0x6   : > { %143 = sbr.rel (%p140_p2) target bundleno = 290 (0x122), region = 32  ;;  %v977_v1 = vld [vmem:[%s1217_s1 + $0xc0] sm:$0xff] (!%p140_p2)   ;;  %888 = vmatprep.subr.bf16.mxu0 (!%p140_p2), %v976_v0  ;;  %v981_v5 = vld [vmem:[%s1217_s1 + $0xc8] sm:$0xff] (!%p140_p2)   ;;  %v985_v9 = vld [vmem:[%s1217_s1 + $0xd0] sm:$0xff] (!%p140_p2)   ;;  %p165_p3 = scmp.lt.s32.totalorder (!%p140_p2), %s792_s21, 15 }
   0x7   : > { %v978_v2 = vld [vmem:[%s1217_s1] sm:$0xff] (!%p140_p2)   ;;  %928 = vmatprep.subr.bf16.mxu1 (!%p140_p2), %v977_v1  ;;  %v982_v6 = vld [vmem:[%s1217_s1 + $0x8] sm:$0xff] (!%p140_p2)   ;;  %v986_v10 = vld [vmem:[%s1217_s1 + $0x10] sm:$0xff] (!%p140_p2)  }
   0x8   : > { %v979_v3 = vld [vmem:[%s1217_s1 + $0x80] sm:$0xff] (!%p140_p2)   ;;  %889 = vmatpush3.bf16.msra.mxu0 (!%p140_p2), %v978_v2  ;;  %v983_v7 = vld [vmem:[%s1217_s1 + $0x88] sm:$0xff] (!%p140_p2)   ;;  %v987_v11 = vld [vmem:[%s1217_s1 + $0x90] sm:$0xff] (!%p140_p2)  }
   0x9   : > { %929 = vmatpush3.bf16.msra.mxu1 (!%p140_p2), %v979_v3  ;;  %890 = vmatprep.subr.bf16.mxu0 (!%p140_p2), %v980_v4  ;;  %v988_v12 = vld [vmem:[%s1217_s1 + $0x58] sm:$0xff] (!%p140_p2)   ;;  %v992_v16 = vld [vmem:[%s1217_s1 + $0x60] sm:$0xff] (!%p140_p2)   ;;  %v996_v20 = vld [vmem:[%s1217_s1 + $0x68] sm:$0xff] (!%p140_p2)  }
   0xa   : > { %930 = vmatprep.subr.bf16.mxu1 (!%p140_p2), %v981_v5  ;;  %v989_v13 = vld [vmem:[%s1217_s1 + $0xd8] sm:$0xff] (!%p140_p2)   ;;  %v993_v17 = vld [vmem:[%s1217_s1 + $0xe0] sm:$0xff] (!%p140_p2)   ;;  %v997_v21 = vld [vmem:[%s1217_s1 + $0xe8] sm:$0xff] (!%p140_p2)  }
   0xb   : > { %v990_v14 = vld [vmem:[%s1217_s1 + $0x18] sm:$0xff] (!%p140_p2)   ;;  %v994_v18 = vld [vmem:[%s1217_s1 + $0x20] sm:$0xff] (!%p140_p2)   ;;  %v998_v22 = vld [vmem:[%s1217_s1 + $0x28] sm:$0xff] (!%p140_p2)  }
   0xc   : > { %891 = vmatpush3.bf16.msra.mxu0 (!%p140_p2), %v982_v6  ;;  %v991_v15 = vld [vmem:[%s1217_s1 + $0x98] sm:$0xff] (!%p140_p2)   ;;  %v995_v19 = vld [vmem:[%s1217_s1 + $0xa0] sm:$0xff] (!%p140_p2)   ;;  %v999_v23 = vld [vmem:[%s1217_s1 + $0xa8] sm:$0xff] (!%p140_p2)  }
   0xd   : > { %931 = vmatpush3.bf16.msra.mxu1 %v983_v7  ;;  %892 = vmatprep.subr.bf16.mxu0 %v984_v8  ;;  %s1221_s21 = smov (!%p165_p3, %s792_s21), 15  ;;  %v1000_v24 = vld [vmem:[%s1217_s1 + $0x70] sm:$0xff]   ;;  %v1004_v28 = vld [vmem:[%s1217_s1 + $0x78] sm:$0xff]   ;;  %v1193_v50 = vld [vmem:[%s1218_s2] ss:$0 sm:$0xff] }
   0xe   : > { %932 = vmatprep.subr.bf16.mxu1 %v985_v9  ;;  %v1001_v25 = vld [vmem:[%s1217_s1 + $0xf0] sm:$0xff]   ;;  %s856_s18 = sshll.u32 %s1221_s21, 4  ;;  %v1005_v29 = vld [vmem:[%s1217_s1 + $0xf8] sm:$0xff]   ;;  %s796_s7 = sshll.u32 %s1221_s21, 2 }
   0xf   : > { %v1002_v26 = vld [vmem:[%s1217_s1 + $0x30] sm:$0xff]   ;;  %s1166_s28 = scalar_lea.vmem %s1216_s0, %s856_s18  ;;  %v1006_v30 = vld [vmem:[%s1217_s1 + $0x38] sm:$0xff]   ;;  %s1201_s10 = scalar_lea.vmem %s1219_s3, %s796_s7 }
  0x10   : > { %893 = vmatpush3.bf16.msra.mxu0 %v986_v10  ;;  %v1003_v27 = vld [vmem:[%s1217_s1 + $0xb0] sm:$0xff]   ;;  %v1007_v31 = vld [vmem:[%s1217_s1 + $0xb8] sm:$0xff]  }
  0x11   : > { %933 = vmatpush3.bf16.msra.mxu1 %v987_v11  ;;  %894 = vmatprep.subr.bf16.mxu0 %v988_v12  ;;  %v1008_v32 = vld [vmem:[%s1166_s28] ss:$16 sps:$4 sm:$0xff]   ;;  %v1010_v33 = vld [vmem:[%s1166_s28 + $0x4] ss:$16 sps:$4 sm:$0xff]   ;;  %v1011_v34 = vld [vmem:[%s1166_s28 + $0x8] ss:$16 sps:$4 sm:$0xff]  }
  0x12   : > { %934 = vmatprep.subr.bf16.mxu1 %v989_v13  ;;  %v1013_v35 = vld [vmem:[%s1166_s28 + $0xc] ss:$16 sps:$4 sm:$0xff]   ;;  %569 = vmatprep.mubr.bf16.mxu0 %v1010_v33  ;;  %v1014_v36 = vld [vmem:[%s1166_s28 + $0x24] ss:$16 sps:$4 sm:$0xff]   ;;  %v1018_v38 = vld [vmem:[%s1166_s28 + $0x20] ss:$16 sps:$4 sm:$0xff]  }
  0x13   : > { %634 = vmatprep.mubr.bf16.mxu1 %v1013_v35  ;;  %v1016_v37 = vld [vmem:[%s1166_s28 + $0x2c] ss:$16 sps:$4 sm:$0xff]   ;;  %v1019_v39 = vld [vmem:[%s1166_s28 + $0x28] ss:$16 sps:$4 sm:$0xff]   ;;  %v1020_v40 = vld [vmem:[%s1166_s28 + $0x44] ss:$16 sps:$4 sm:$0xff]  }
  0x14   : > { %895 = vmatpush3.bf16.msra.mxu0 %v990_v14  ;;  %v1022_v41 = vld [vmem:[%s1166_s28 + $0x4c] ss:$16 sps:$4 sm:$0xff]   ;;  %v1024_v42 = vld [vmem:[%s1166_s28 + $0x40] ss:$16 sps:$4 sm:$0xff]   ;;  %v1025_v43 = vld [vmem:[%s1166_s28 + $0x48] ss:$16 sps:$4 sm:$0xff]  }
  0x15   : > { %935 = vmatpush3.bf16.msra.mxu1 %v991_v15  ;;  %896 = vmatprep.subr.bf16.mxu0 %v992_v16  ;;  %v1026_v44 = vld [vmem:[%s1166_s28 + $0x64] ss:$16 sps:$4 sm:$0xff]   ;;  %v1028_v45 = vld [vmem:[%s1166_s28 + $0x6c] ss:$16 sps:$4 sm:$0xff]   ;;  %v1030_v46 = vld [vmem:[%s1166_s28 + $0x60] ss:$16 sps:$4 sm:$0xff]  }
  0x16   : > { %936 = vmatprep.subr.bf16.mxu1 %v993_v17  ;;  %v1031_v47 = vld [vmem:[%s1166_s28 + $0x68] ss:$16 sps:$4 sm:$0xff]  }
  0x18   : > { %897 = vmatpush3.bf16.msra.mxu0 %v994_v18 }
  0x19   : > { %937 = vmatpush3.bf16.msra.mxu1 %v995_v19  ;;  %898 = vmatprep.subr.bf16.mxu0 %v996_v20 }
  0x1a   : > { %938 = vmatprep.subr.bf16.mxu1 %v997_v21 }
  0x1c   : > { %899 = vmatpush3.bf16.msra.mxu0 %v998_v22 }
  0x1d   : > { %939 = vmatpush3.bf16.msra.mxu1 %v999_v23  ;;  %900 = vmatprep.subr.bf16.mxu0 %v1000_v24 }
  0x1e   : > { %940 = vmatprep.subr.bf16.mxu1 %v1001_v25 }
  0x20   : > { %901 = vmatpush3.bf16.msra.mxu0 %v1002_v26 }
  0x21   : > { %941 = vmatpush3.bf16.msra.mxu1 %v1003_v27  ;;  %902 = vmatprep.subr.bf16.mxu0 %v1004_v28 }
  0x22   : > { %942 = vmatprep.subr.bf16.mxu1 %v1005_v29 }
  0x24   : > { %903 = vmatpush3.bf16.msra.mxu0 %v1006_v30 }
  0x25   : > { %943 = vmatpush3.bf16.msra.mxu1 %v1007_v31 }
  0x27   : > { %570 = vmatmul.mubr.bf16.vlgmr.msra.gmra.mrb[0].mxu0 %v1008_v32 }
  0x28   : > { %635 = vmatmul.mubr.bf16.vlgmr.msra.gmra.mrb[0].mxu1 %v1011_v34  ;;  %577 = vmatprep.mubr.bf16.mxu0 %v1014_v36 }
  0x29   : > { %642 = vmatprep.mubr.bf16.mxu1 %v1016_v37 }
  0x2f   : > { %578 = vmatmul.mubr.bf16.gmra.mrb[4].mxu0 %v1018_v38 }
  0x30   : > { %643 = vmatmul.mubr.bf16.gmra.mrb[4].mxu1 %v1019_v39  ;;  %585 = vmatprep.mubr.bf16.mxu0 %v1020_v40 }
  0x31   : > { %650 = vmatprep.mubr.bf16.mxu1 %v1022_v41 }
  0x37   : > { %586 = vmatmul.mubr.bf16.gmra.mrb[8].mxu0 %v1024_v42 }
  0x38   : > { %651 = vmatmul.mubr.bf16.gmra.mrb[8].mxu1 %v1025_v43  ;;  %593 = vmatprep.mubr.bf16.mxu0 %v1026_v44 }
  0x39   : > { %658 = vmatprep.mubr.bf16.mxu1 %v1028_v45 }
  0x3f   : > { %594 = vmatmul.mubr.bf16.gmra.mrb[12].mxu0 %v1030_v46 }
  0x40   : > { %659 = vmatmul.mubr.bf16.gmra.mrb[12].mxu1 %v1031_v47 }
  0xfa   : > { %v904_v48 = vpop.f32.mrb[0].mxu0 }
  0xfb   : > { %v944_v49 = vpop.f32.mrb[0].mxu1  ;;  %v905_v51 = vpop.f32.mrb[1].mxu0 }
  0xfc   : > { %v906_v52 = vadd.f32 %v905_v51, %v904_v48  ;;  %v945_v53 = vpop.f32.mrb[1].mxu1  ;;  %v907_v54 = vpop.f32.mrb[2].mxu0 }
  0xfd   : > { %v946_v55 = vadd.f32 %v945_v53, %v944_v49  ;;  %v947_v56 = vpop.f32.mrb[2].mxu1  ;;  %v908_v57 = vpop.f32.mrb[3].mxu0 }
  0xfe   : > { %v572_v58 = vadd.f32 %v906_v52, %v1193_v50  ;;  %v909_v59 = vadd.f32 %v908_v57, %v907_v54  ;;  %v948_v60 = vpop.f32.mrb[3].mxu1 }
  0xff   : > { %v949_v61 = vadd.f32 %v948_v60, %v947_v56 }
 0x100   : > { %v637_v62 = vadd.f32 %v946_v55, %v572_v58  ;;  %v575_v63 = vadd.f32 %v909_v59, %v1193_v50 }
 0x102   : > { %v675_v0 = vmul.f32 0.1, %v637_v62  ;;  %v640_v1 = vadd.f32 %v949_v61, %v575_v63  ;;  %v910_v2 = vpop.f32.mrb[4].mxu0  ;;  %vm667_vm0 = vcmp.ge.f32.partialorder %v637_v62, 0.0 }
 0x103   : > { %v950_v3 = vpop.f32.mrb[4].mxu1  ;;  %v911_v4 = vpop.f32.mrb[5].mxu0 }
 0x104   : > { %vm668_vm1 = vcmp.ge.f32.partialorder %v640_v1, 0.0  ;;  %v676_v5 = vmul.f32 0.1, %v640_v1  ;;  %v912_v6 = vadd.f32 %v911_v4, %v910_v2  ;;  %v951_v7 = vpop.f32.mrb[5].mxu1  ;;  %v913_v8 = vpop.f32.mrb[6].mxu0  ;;  %v683_v12 = vsel %vm667_vm0, %v637_v62, %v675_v0 }
 0x105   : > { %v952_v9 = vadd.f32 %v951_v7, %v950_v3  ;;  %v953_v10 = vpop.f32.mrb[6].mxu1  ;;  %v914_v11 = vpop.f32.mrb[7].mxu0 }
 0x106   : > { %v684_v13 = vsel %vm668_vm1, %v640_v1, %v676_v5  ;;  %v580_v14 = vadd.f32 %v912_v6, %v1193_v50  ;;  %v915_v15 = vadd.f32 %v914_v11, %v913_v8  ;;  %v954_v16 = vpop.f32.mrb[7].mxu1 }
 0x107   : > { %v868_v17 = vpack.c.bf16 %v684_v13, %v683_v12  ;;  %v955_v18 = vadd.f32 %v954_v16, %v953_v10 }
 0x108   : > { %v645_v19 = vadd.f32 %v952_v9, %v580_v14  ;;  %v583_v20 = vadd.f32 %v915_v15, %v1193_v50 }
 0x109   : > { %869 = vst [vmem:[%s1201_s10] sm:$0xff] %v868_v17  }
 0x10a   : > { %v677_v21 = vmul.f32 0.1, %v645_v19  ;;  %v648_v22 = vadd.f32 %v955_v18, %v583_v20  ;;  %v916_v23 = vpop.f32.mrb[8].mxu0  ;;  %vm669_vm2 = vcmp.ge.f32.partialorder %v645_v19, 0.0 }
 0x10b   : > { %v956_v24 = vpop.f32.mrb[8].mxu1  ;;  %v917_v25 = vpop.f32.mrb[9].mxu0 }
 0x10c   : > { %vm670_vm3 = vcmp.ge.f32.partialorder %v648_v22, 0.0  ;;  %v678_v26 = vmul.f32 0.1, %v648_v22  ;;  %v918_v27 = vadd.f32 %v917_v25, %v916_v23  ;;  %v957_v28 = vpop.f32.mrb[9].mxu1  ;;  %v919_v29 = vpop.f32.mrb[10].mxu0  ;;  %v685_v33 = vsel %vm669_vm2, %v645_v19, %v677_v21 }
 0x10d   : > { %v958_v30 = vadd.f32 %v957_v28, %v956_v24  ;;  %v959_v31 = vpop.f32.mrb[10].mxu1  ;;  %v920_v32 = vpop.f32.mrb[11].mxu0 }
 0x10e   : > { %v686_v34 = vsel %vm670_vm3, %v648_v22, %v678_v26  ;;  %v588_v35 = vadd.f32 %v918_v27, %v1193_v50  ;;  %v921_v36 = vadd.f32 %v920_v32, %v919_v29  ;;  %v960_v37 = vpop.f32.mrb[11].mxu1 }
 0x10f   : > { %v873_v38 = vpack.c.bf16 %v686_v34, %v685_v33  ;;  %v961_v39 = vadd.f32 %v960_v37, %v959_v31 }
 0x110   : > { %v653_v40 = vadd.f32 %v958_v30, %v588_v35  ;;  %v591_v41 = vadd.f32 %v921_v36, %v1193_v50 }
 0x111   : > { %885 = vst [vmem:[%s1201_s10 + $0x8] sm:$0xff] %v873_v38  }
 0x112   : > { %v679_v42 = vmul.f32 0.1, %v653_v40  ;;  %v656_v43 = vadd.f32 %v961_v39, %v591_v41  ;;  %v922_v44 = vpop.f32.mrb[12].mxu0  ;;  %vm671_vm4 = vcmp.ge.f32.partialorder %v653_v40, 0.0 }
 0x113   : > { %v962_v45 = vpop.f32.mrb[12].mxu1  ;;  %v923_v46 = vpop.f32.mrb[13].mxu0 }
 0x114   : > { %vm672_vm5 = vcmp.ge.f32.partialorder %v656_v43, 0.0  ;;  %v680_v47 = vmul.f32 0.1, %v656_v43  ;;  %v924_v48 = vadd.f32 %v923_v46, %v922_v44  ;;  %v963_v49 = vpop.f32.mrb[13].mxu1  ;;  %v925_v51 = vpop.f32.mrb[14].mxu0  ;;  %v687_v55 = vsel %vm671_vm4, %v653_v40, %v679_v42 }
 0x115   : > { %v964_v52 = vadd.f32 %v963_v49, %v962_v45  ;;  %v965_v53 = vpop.f32.mrb[14].mxu1  ;;  %v926_v54 = vpop.f32.mrb[15].mxu0 }
 0x116   : > { %v688_v56 = vsel %vm672_vm5, %v656_v43, %v680_v47  ;;  %v596_v57 = vadd.f32 %v924_v48, %v1193_v50  ;;  %v927_v58 = vadd.f32 %v926_v54, %v925_v51  ;;  %v966_v59 = vpop.f32.mrb[15].mxu1 }
 0x117   : > { %v878_v60 = vpack.c.bf16 %v688_v56, %v687_v55  ;;  %v967_v61 = vadd.f32 %v966_v59, %v965_v53 }
 0x118   : > { %v661_v62 = vadd.f32 %v964_v52, %v596_v57  ;;  %v599_v63 = vadd.f32 %v927_v58, %v1193_v50 }
 0x119   : > { %886 = vst [vmem:[%s1201_s10 + $0x10] sm:$0xff] %v878_v60  }
 0x11a   : > { %v681_v0 = vmul.f32 0.1, %v661_v62  ;;  %v664_v1 = vadd.f32 %v967_v61, %v599_v63  ;;  %vm673_vm6 = vcmp.ge.f32.partialorder %v661_v62, 0.0 }
 0x11c   : > { %vm674_vm7 = vcmp.ge.f32.partialorder %v664_v1, 0.0  ;;  %v682_v2 = vmul.f32 0.1, %v664_v1  ;;  %v689_v3 = vsel %vm673_vm6, %v661_v62, %v681_v0 }
 0x11e   : > { %v690_v4 = vsel %vm674_vm7, %v664_v1, %v682_v2 }
 0x11f   : > { %v883_v5 = vpack.c.bf16 %v690_v4, %v689_v3 }
 0x121   : > { %887 = vst [vmem:[%s1201_s10 + $0x18] sm:$0xff] %v883_v5  }
 0x122 PF: > { %s13_s12 = sadd.s32 1, %s1038_s12  }
 0x123   : > { %p10_p4 = scmp.ge.s32.totalorder %s13_s12, 4  }
 0x125   :  { %12 = sbr.rel (!%p10_p4) target bundleno = 1 (0x1), region = 62 }

// kernel: nlayer_discriminator_forward.7
= control target key start
LH: loop header
LB: loop body
LE: loop exit
PB: predicated region body
PF: predicated region fallthrough
CT: control target
= control target key end

     0   :  { %s2323_s18 = smov 0   ;;  %s2325_s19 = smov 0   ;;  %s2723_s0 = inlined_call_operand.vmem [shape: bf16[72,1152], index: 0, kind: input, shape index: {}]   ;;  %s2724_s1 = inlined_call_operand.vmem [shape: bf16[1152,128], index: 1, kind: input, shape index: {}]   ;;  %s2725_s2 = inlined_call_operand.vmem [shape: f32[1,128], index: 2, kind: input, shape index: {}]   ;;  %s2726_s3 = inlined_call_operand.vmem [shape: bf16[128,128], index: 3, kind: input, shape index: {}]   ;;  %s2727_s4 = inlined_call_operand.vmem [shape: f32[1,128], index: 4, kind: input, shape index: {}]   ;;  %s2728_s5 = inlined_call_operand.vmem [shape: f32[72,128], index: 5, kind: output, shape index: {}]  }
   0x1   :  { %s2327_s20 = smov 0  }
   0x2 LB: > { %s2336_s21 = sadd.s32 4294967295, %s2257_s20   ;;  %s2338_s22 = sadd.s32 1, %s2257_s20   ;;  %s2257_s20 = sphi %s2327_s20, %s2735_s20   ;;  %s2253_s19 = sphi %s2325_s19, %s2734_s19   ;;  %s2249_s18 = sphi %s2323_s18, %s2733_s18  }
   0x3   : > { %s129_s23 = ssub.s32 %s2257_s20, %s2338_s22  ;;  %s132_s24 = sadd.s32 1, %s2253_s19 }
   0x4   : > { %p130_p0 = scmp.eq.s32.totalorder %s129_s23, 0  ;;  %p142_p1 = scmp.ne.s32.totalorder %s2253_s19, %s2249_s18 }
   0x5   : > { %p143_p2 = scmp.eq.s32.totalorder %s2336_s21, 1  ;;  %p1653_p3 = scmp.ge.s32.totalorder %s2257_s20, 1 }
   0x6   : > { %s2346_s25 = scalar_select %p130_p0, %s2253_s19, %s132_s24  }
   0x7   : > { %p2348_p4 = por %p143_p2, %p142_p1  ;;  %p199_p5 = scmp.lt.s32.totalorder %s2257_s20, 3 }
   0x9   : > { %p200_p6 = pnand %p1653_p3, %p199_p5 }
   0xa   : > { %v2084_v0 = vld [vmem:[%s2724_s1 + $0x40] sm:$0xff] (!%p200_p6)   ;;  %v2088_v4 = vld [vmem:[%s2724_s1 + $0x48] sm:$0xff] (!%p200_p6)   ;;  %v2092_v8 = vld [vmem:[%s2724_s1 + $0x50] sm:$0xff] (!%p200_p6)   ;;  %s2392_s9 = smul.u32 (!%p200_p6), 5, %s2336_s21  ;;  %vm2292_vm0 = vmmov (!%p200_p6), 0   ;;  %s229_s12 = sand.u32 (!%p200_p6), 1, %s2249_s18  }
   0xb   : > { %203 = sbr.rel (%p200_p6) target bundleno = 620 (0x26c), region = 40  ;;  %v2085_v1 = vld [vmem:[%s2724_s1] sm:$0xff] (!%p200_p6)   ;;  %1777 = vmatprep.subr.bf16.mxu0 (!%p200_p6), %v2084_v0  ;;  %v2089_v5 = vld [vmem:[%s2724_s1 + $0x8] sm:$0xff] (!%p200_p6)   ;;  %v2093_v9 = vld [vmem:[%s2724_s1 + $0x10] sm:$0xff] (!%p200_p6)  }
   0xc   : > { %v2086_v2 = vld [vmem:[%s2724_s1 + $0xc0] sm:$0xff] (!%p200_p6)   ;;  %1778 = vmatpush3.bf16.msra.mxu0 (!%p200_p6), %v2085_v1  ;;  %v2090_v6 = vld [vmem:[%s2724_s1 + $0xc8] sm:$0xff] (!%p200_p6)   ;;  %v2094_v10 = vld [vmem:[%s2724_s1 + $0xd0] sm:$0xff] (!%p200_p6)   ;;  %p238_p7 = scmp.lt.s32.totalorder (!%p200_p6), %s2392_s9, 8  ;;  %s1991_s13 = smul.u32 (!%p200_p6), 40, %s229_s12 }
   0xd   : > { %v2087_v3 = vld [vmem:[%s2724_s1 + $0x80] sm:$0xff] (!%p200_p6)   ;;  %1811 = vmatprep.subr.bf16.mxu1 (!%p200_p6), %v2086_v2  ;;  %1779 = vmatprep.subr.bf16.mxu0 (!%p200_p6), %v2088_v4  ;;  %v2091_v7 = vld [vmem:[%s2724_s1 + $0x88] sm:$0xff] (!%p200_p6)   ;;  %v2095_v11 = vld [vmem:[%s2724_s1 + $0x90] sm:$0xff] (!%p200_p6)  }
   0xe   : > { %1812 = vmatpush3.bf16.msra.mxu1 (!%p200_p6), %v2087_v3  ;;  %v2096_v12 = vld [vmem:[%s2724_s1 + $0x58] sm:$0xff] (!%p200_p6)   ;;  %v2100_v16 = vld [vmem:[%s2724_s1 + $0x60] sm:$0xff] (!%p200_p6)   ;;  %v2104_v20 = vld [vmem:[%s2724_s1 + $0x68] sm:$0xff] (!%p200_p6)   ;;  %s2660_s16 = scalar_lea.vmem (!%p200_p6), [#allocation2], %s1991_s13  }
   0xf   : > { %1813 = vmatprep.subr.bf16.mxu1 (!%p200_p6), %v2090_v6  ;;  %v2097_v13 = vld [vmem:[%s2724_s1 + $0x18] sm:$0xff] (!%p200_p6)   ;;  %v2101_v17 = vld [vmem:[%s2724_s1 + $0x20] sm:$0xff] (!%p200_p6)   ;;  %v2105_v21 = vld [vmem:[%s2724_s1 + $0x28] sm:$0xff] (!%p200_p6)  }
  0x10   : > { %1780 = vmatpush3.bf16.msra.mxu0 (!%p200_p6), %v2089_v5  ;;  %v2098_v14 = vld [vmem:[%s2724_s1 + $0xd8] sm:$0xff] (!%p200_p6)   ;;  %v2102_v18 = vld [vmem:[%s2724_s1 + $0xe0] sm:$0xff] (!%p200_p6)   ;;  %v2106_v22 = vld [vmem:[%s2724_s1 + $0xe8] sm:$0xff] (!%p200_p6)  }
  0x11   : > { %1781 = vmatprep.subr.bf16.mxu0 (!%p200_p6), %v2092_v8  ;;  %v2099_v15 = vld [vmem:[%s2724_s1 + $0x98] sm:$0xff] (!%p200_p6)   ;;  %v2103_v19 = vld [vmem:[%s2724_s1 + $0xa0] sm:$0xff] (!%p200_p6)   ;;  %v2107_v23 = vld [vmem:[%s2724_s1 + $0xa8] sm:$0xff] (!%p200_p6)  }
  0x12   : > { %1814 = vmatpush3.bf16.msra.mxu1 %v2091_v7  ;;  %s239_s7 = scalar_select %p238_p7, %s2392_s9, 8  ;;  %v2108_v24 = vld [vmem:[%s2724_s1 + $0x70] sm:$0xff]   ;;  %v2112_v28 = vld [vmem:[%s2724_s1 + $0x78] sm:$0xff]   ;;  %v2119_v34 = vld [vmem:[%s2724_s1 + $0x140] sm:$0xff]  }
  0x13   : > { %1815 = vmatprep.subr.bf16.mxu1 %v2094_v10  ;;  %v2109_v25 = vld [vmem:[%s2724_s1 + $0x30] sm:$0xff]   ;;  %v2113_v29 = vld [vmem:[%s2724_s1 + $0x38] sm:$0xff]   ;;  %v2123_v37 = vld [vmem:[%s2724_s1 + $0x100] sm:$0xff]   ;;  %s1425_s18 = ssub.s32 (%p2348_p4), 9, %s2392_s9 }
  0x14   : > { %1782 = vmatpush3.bf16.msra.mxu0 %v2093_v9  ;;  %s1992_s17 = smul.u32 36, %s239_s7  ;;  %v2110_v26 = vld [vmem:[%s2724_s1 + $0xf0] sm:$0xff]   ;;  %v2114_v30 = vld [vmem:[%s2724_s1 + $0xf8] sm:$0xff]   ;;  %v2124_v38 = vld [vmem:[%s2724_s1 + $0x1c0] sm:$0xff]   ;;  %p1426_p8 = scmp.lt.s32.totalorder (%p2348_p4), %s1425_s18, 5 }
  0x15   : > { %1783 = vmatprep.subr.bf16.mxu0 %v2096_v12  ;;  %v2111_v27 = vld [vmem:[%s2724_s1 + $0xb0] sm:$0xff]   ;;  %v2118_v33 = vld [vmem:[%s2724_s1 + $0xb8] sm:$0xff]   ;;  %v2125_v39 = vld [vmem:[%s2724_s1 + $0x180] sm:$0xff]  }
  0x16   : > { %1816 = vmatpush3.bf16.msra.mxu1 %v2095_v11  ;;  %s2447_s10 = scalar_lea.vmem %s2723_s0, %s1992_s17  ;;  %v2126_v40 = vld [vmem:[%s2724_s1 + $0x148] sm:$0xff]   ;;  %v2130_v44 = vld [vmem:[%s2724_s1 + $0x150] sm:$0xff]   ;;  %v2134_v48 = vld [vmem:[%s2724_s1 + $0x158] sm:$0xff]   ;;  %s1776_s17 = smul.u32 (%p2348_p4), 40, %s2336_s21 }
  0x17   : > { %1817 = vmatprep.subr.bf16.mxu1 %v2098_v14  ;;  %v2115_v31 = vld [vmem:[%s2447_s10] ss:$36 sps:$4 sm:$0xff]   ;;  %v2120_v35 = vld [vmem:[%s2447_s10 + $0x8] ss:$36 sps:$4 sm:$0xff]   ;;  %v2131_v45 = vld [vmem:[%s2724_s1 + $0x110] sm:$0xff]  }
  0x18   : > { %1784 = vmatpush3.bf16.msra.mxu0 %v2097_v13  ;;  %v2117_v32 = vld [vmem:[%s2447_s10 + $0x4] ss:$36 sps:$4 sm:$0xff]   ;;  %v2122_v36 = vld [vmem:[%s2447_s10 + $0xc] ss:$36 sps:$4 sm:$0xff]   ;;  %v2137_v50 = vld [vmem:[%s2724_s1 + $0x118] sm:$0xff]   ;;  %s2674_s23 = scalar_lea.vmem (%p2348_p4), %s2728_s5, %s1776_s17  }
  0x19   : > { %1785 = vmatprep.subr.bf16.mxu0 %v2100_v16  ;;  %1019 = vmatprep.mubr.bf16.mxu0 %v2117_v32  ;;  %v2127_v41 = vld [vmem:[%s2724_s1 + $0x108] sm:$0xff]   ;;  %v2132_v46 = vld [vmem:[%s2724_s1 + $0x1d0] sm:$0xff]   ;;  %v2139_v52 = vld [vmem:[%s2724_s1 + $0x1d8] sm:$0xff]  }
  0x1a   : > { %1818 = vmatpush3.bf16.msra.mxu1 %v2099_v15  ;;  %1075 = vmatprep.mubr.bf16.mxu1 %v2122_v36  ;;  %v2128_v42 = vld [vmem:[%s2724_s1 + $0x1c8] sm:$0xff]   ;;  %v2133_v47 = vld [vmem:[%s2724_s1 + $0x190] sm:$0xff]   ;;  %v2142_v54 = vld [vmem:[%s2724_s1 + $0x198] sm:$0xff]   ;;  %v2291_v15 = vmov 0.0  }
  0x1b   : > { %1819 = vmatprep.subr.bf16.mxu1 %v2102_v18  ;;  %v2129_v43 = vld [vmem:[%s2724_s1 + $0x188] sm:$0xff]   ;;  %v2140_v53 = vld [vmem:[%s2447_s10 + $0x54] ss:$36 sps:$4 sm:$0xff]   ;;  %v2144_v56 = vld [vmem:[%s2724_s1 + $0x160] sm:$0xff]  }
  0x1c   : > { %1786 = vmatpush3.bf16.msra.mxu0 %v2101_v17  ;;  %v2135_v49 = vld [vmem:[%s2447_s10 + $0x4c] ss:$36 sps:$4 sm:$0xff]   ;;  %v2145_v57 = vld [vmem:[%s2724_s1 + $0x120] sm:$0xff]   ;;  %v276_v4 = vld [vmem:[%s2447_s10 + $0x98] sm:$0xff] }
  0x1d   : > { %1787 = vmatprep.subr.bf16.mxu0 %v2104_v20  ;;  %v2138_v51 = vld [vmem:[%s2447_s10 + $0x48] ss:$36 sps:$4 sm:$0xff]   ;;  %v2143_v55 = vld [vmem:[%s2447_s10 + $0x50] ss:$36 sps:$4 sm:$0xff]   ;;  %v2146_v58 = vld [vmem:[%s2724_s1 + $0x1e0] sm:$0xff]   ;;  %v1677_v5 = vcombine.high %v276_v4, %v276_v4  ;;  %v1676_v7 = vcombine.low %v276_v4, %v276_v4 }
  0x1e   : > { %1820 = vmatpush3.bf16.msra.mxu1 %v2103_v19  ;;  %v2147_v59 = vld [vmem:[%s2724_s1 + $0x1a0] sm:$0xff]   ;;  %v2148_v60 = vld [vmem:[%s2724_s1 + $0x168] sm:$0xff]   ;;  %v275_v61 = vld [vmem:[%s2447_s10 + $0x90] sm:$0xff] }
  0x1f   : > { %1821 = vmatprep.subr.bf16.mxu1 %v2106_v22  ;;  %v1675_v62 = vcombine.high %v275_v61, %v275_v61  ;;  %v2150_v63 = vld [vmem:[%s2724_s1 + $0x128] sm:$0xff]   ;;  %v1674_v0 = vcombine.low %v275_v61, %v275_v61  ;;  %v2154_v3 = vld [vmem:[%s2724_s1 + $0x170] sm:$0xff]   ;;  %v2160_v10 = vld [vmem:[%s2724_s1 + $0x178] sm:$0xff]  }
  0x20   : > { %1788 = vmatpush3.bf16.msra.mxu0 %v2105_v21  ;;  %v2152_v1 = vld [vmem:[%s2724_s1 + $0x1e8] sm:$0xff]   ;;  %v2156_v6 = vld [vmem:[%s2724_s1 + $0x130] sm:$0xff]   ;;  %v2161_v11 = vld [vmem:[%s2724_s1 + $0x138] sm:$0xff]  }
  0x21   : > { %1789 = vmatprep.subr.bf16.mxu0 %v2108_v24  ;;  %v2153_v2 = vld [vmem:[%s2724_s1 + $0x1a8] sm:$0xff]   ;;  %v2158_v8 = vld [vmem:[%s2724_s1 + $0x1f0] sm:$0xff]   ;;  %v2162_v12 = vld [vmem:[%s2724_s1 + $0x1f8] sm:$0xff]  }
  0x22   : > { %1822 = vmatpush3.bf16.msra.mxu1 %v2107_v23  ;;  %v2159_v9 = vld [vmem:[%s2724_s1 + $0x1b0] sm:$0xff]   ;;  %v2166_v16 = vld [vmem:[%s2724_s1 + $0x1b8] sm:$0xff]   ;;  %v2170_v19 = vld [vmem:[%s2724_s1 + $0x200] sm:$0xff]  }
  0x23   : > { %1823 = vmatprep.subr.bf16.mxu1 %v2110_v26  ;;  %v2163_v13 = vld [vmem:[%s2447_s10 + $0x10] ss:$36 sps:$4 sm:$0xff]   ;;  %v2167_v17 = vld [vmem:[%s2447_s10 + $0x18] ss:$36 sps:$4 sm:$0xff]   ;;  %v2171_v20 = vld [vmem:[%s2724_s1 + $0x208] sm:$0xff]  }
  0x24   : > { %1790 = vmatpush3.bf16.msra.mxu0 %v2109_v25  ;;  %v2165_v14 = vld [vmem:[%s2447_s10 + $0x14] ss:$36 sps:$4 sm:$0xff]   ;;  %v2169_v18 = vld [vmem:[%s2447_s10 + $0x1c] ss:$36 sps:$4 sm:$0xff]   ;;  %v2175_v22 = vld [vmem:[%s2447_s10 + $0x64] ss:$36 sps:$4 sm:$0xff]  }
  0x25   : > { %1791 = vmatprep.subr.bf16.mxu0 %v2112_v28  ;;  %v2172_v21 = vld [vmem:[%s2447_s10 + $0x5c] ss:$36 sps:$4 sm:$0xff]   ;;  %v2177_v24 = vld [vmem:[%s2724_s1 + $0x210] sm:$0xff]   ;;  %v278_v26 = vld [vmem:[%s2447_s10 + $0xa8] sm:$0xff] }
  0x26   : > { %1824 = vmatpush3.bf16.msra.mxu1 %v2111_v27  ;;  %v2174_v23 = vld [vmem:[%s2447_s10 + $0x58] ss:$36 sps:$4 sm:$0xff]   ;;  %v277_v25 = vld [vmem:[%s2447_s10 + $0xa0] sm:$0xff] }
  0x27   : > { %1825 = vmatprep.subr.bf16.mxu1 %v2114_v30  ;;  %v2178_v27 = vld [vmem:[%s2447_s10 + $0x60] ss:$36 sps:$4 sm:$0xff]   ;;  %v1679_v28 = vcombine.high %v277_v25, %v277_v25  ;;  %v2179_v30 = vld [vmem:[%s2724_s1 + $0x218] sm:$0xff]  }
  0x28   : > { %1792 = vmatpush3.bf16.msra.mxu0 %v2113_v29  ;;  %v1681_v29 = vcombine.high %v278_v26, %v278_v26  ;;  %v2183_v32 = vld [vmem:[%s2724_s1 + $0x220] sm:$0xff]   ;;  %v2187_v36 = vld [vmem:[%s2724_s1 + $0x238] sm:$0xff]  }
  0x29   : > { %1845 = vmatprep.subr.bf16.mxu0 %v2119_v34  ;;  %v2185_v34 = vld [vmem:[%s2724_s1 + $0x228] sm:$0xff]  }
  0x2a   : > { %1826 = vmatpush3.bf16.msra.mxu1 %v2118_v33  ;;  %v1680_v33 = vcombine.low %v278_v26, %v278_v26 }
  0x2b   : > { %1020 = vmatmul.mubr.bf16.vlgmr.msra.gmra.mrb[0].mxu0 %v2115_v31  ;;  %1879 = vmatprep.subr.bf16.mxu1 %v2124_v38  ;;  %v1678_v31 = vcombine.low %v277_v25, %v277_v25  ;;  %v2189_v38 = vld [vmem:[%s2447_s10 + $0x68] ss:$36 sps:$4 sm:$0xff]  }
  0x2c   : > { %1846 = vmatpush3.bf16.msra.mxu0 %v2123_v37  ;;  %1027 = vmatprep.mubr.bf16.mxu0 %v2135_v49  ;;  %v2188_v37 = vld [vmem:[%s2447_s10 + $0x20] ss:$36 sps:$4 sm:$0xff]  }
  0x2d   : > { %1076 = vmatmul.mubr.bf16.vlgmr.msra.gmra.mrb[0].mxu1 %v2120_v35  ;;  %1847 = vmatprep.subr.bf16.mxu0 %v2126_v40  ;;  %v2186_v35 = vld [vmem:[%s2724_s1 + $0x230] sm:$0xff]   ;;  %v2191_v40 = vld [vmem:[%s2726_s3] sm:$0xff]  }
  0x2e   : > { %1880 = vmatpush3.bf16.msra.mxu1 %v2125_v39  ;;  %1083 = vmatprep.mubr.bf16.mxu1 %v2140_v53  ;;  %v2190_v39 = vld [vmem:[%s2447_s10 + $0xb0] ss:$0 sps:$4 sm:$0xff]   ;;  %v1655_v49 = vld [vmem:[%s2725_s2] ss:$0 sm:$0xff] }
  0x2f   : > { %1881 = vmatprep.subr.bf16.mxu1 %v2128_v42  ;;  %v2193_v42 = vld [vmem:[%s2726_s3 + $0x10] sm:$0xff]  }
  0x30   : > { %1848 = vmatpush3.bf16.msra.mxu0 %v2127_v41  ;;  %v2192_v41 = vld [vmem:[%s2726_s3 + $0x8] sm:$0xff]  }
  0x31   : > { %1849 = vmatprep.subr.bf16.mxu0 %v2130_v44  ;;  %v2195_v44 = vld [vmem:[%s2726_s3 + $0x20] sm:$0xff]  }
  0x32   : > { %1882 = vmatpush3.bf16.msra.mxu1 %v2129_v43  ;;  %v2194_v43 = vld [vmem:[%s2726_s3 + $0x18] sm:$0xff]  }
  0x33   : > { %1883 = vmatprep.subr.bf16.mxu1 %v2132_v46  ;;  %1028 = vmatmul.mubr.bf16.gmra.mrb[4].mxu0 %v2138_v51  ;;  %v2197_v46 = vld [vmem:[%s2726_s3 + $0x30] sm:$0xff]  }
  0x34   : > { %1850 = vmatpush3.bf16.msra.mxu0 %v2131_v45  ;;  %1035 = vmatprep.mubr.bf16.mxu0 %v1675_v62  ;;  %v2196_v45 = vld [vmem:[%s2726_s3 + $0x28] sm:$0xff]  }
  0x35   : > { %1851 = vmatprep.subr.bf16.mxu0 %v2134_v48  ;;  %1084 = vmatmul.mubr.bf16.gmra.mrb[4].mxu1 %v2143_v55 }
  0x36   : > { %1884 = vmatpush3.bf16.msra.mxu1 %v2133_v47  ;;  %1091 = vmatprep.mubr.bf16.mxu1 %v1677_v5  ;;  %v2198_v47 = vld [vmem:[%s2726_s3 + $0x38] sm:$0xff]  }
  0x37   : > { %1885 = vmatprep.subr.bf16.mxu1 %v2139_v52 }
  0x38   : > { %1852 = vmatpush3.bf16.msra.mxu0 %v2137_v50 }
  0x39   : > { %1853 = vmatprep.subr.bf16.mxu0 %v2144_v56 }
  0x3a   : > { %1886 = vmatpush3.bf16.msra.mxu1 %v2142_v54 }
  0x3b   : > { %1887 = vmatprep.subr.bf16.mxu1 %v2146_v58  ;;  %1036 = vmatmul.mubr.bf16.gmra.mrb[8].mxu0 %v1674_v0 }
  0x3c   : > { %1854 = vmatpush3.bf16.msra.mxu0 %v2145_v57  ;;  %1131 = vmatprep.mubr.bf16.mxu0 %v2165_v14 }
  0x3d   : > { %1855 = vmatprep.subr.bf16.mxu0 %v2148_v60  ;;  %1092 = vmatmul.mubr.bf16.gmra.mrb[8].mxu1 %v1676_v7 }
  0x3e   : > { %1888 = vmatpush3.bf16.msra.mxu1 %v2147_v59  ;;  %1187 = vmatprep.mubr.bf16.mxu1 %v2169_v18 }
  0x3f   : > { %1889 = vmatprep.subr.bf16.mxu1 %v2152_v1 }
  0x40   : > { %1856 = vmatpush3.bf16.msra.mxu0 %v2150_v63 }
  0x41   : > { %1857 = vmatprep.subr.bf16.mxu0 %v2154_v3 }
  0x42   : > { %1890 = vmatpush3.bf16.msra.mxu1 %v2153_v2 }
  0x43   : > { %1891 = vmatprep.subr.bf16.mxu1 %v2158_v8 }
  0x44   : > { %1858 = vmatpush3.bf16.msra.mxu0 %v2156_v6 }
  0x45   : > { %1859 = vmatprep.subr.bf16.mxu0 %v2160_v10 }
  0x46   : > { %1892 = vmatpush3.bf16.msra.mxu1 %v2159_v9 }
  0x47   : > { %1893 = vmatprep.subr.bf16.mxu1 %v2162_v12 }
  0x48   : > { %1860 = vmatpush3.bf16.msra.mxu0 %v2161_v11 }
  0x49   : > { %1935 = vmatprep.subr.bf16.mxu0 %v2291_v15 }
  0x4a   : > { %1894 = vmatpush3.bf16.msra.mxu1 %v2166_v16 }
  0x4b   : > { %1132 = vmatmul.mubr.bf16.vlgmr.msra.gmra.mrb[12].mxu0 %v2163_v13  ;;  %1963 = vmatprep.subr.bf16.mxu1 %v2291_v15 }
  0x4c   : > { %1936 = vmatpush3.bf16.msra.mxu0 %v2170_v19  ;;  %1139 = vmatprep.mubr.bf16.mxu0 %v2172_v21 }
  0x4d   : > { %1188 = vmatmul.mubr.bf16.vlgmr.msra.gmra.mrb[12].mxu1 %v2167_v17  ;;  %1937 = vmatprep.subr.bf16.mxu0 %v2291_v15 }
  0x4e   : > { %1195 = vmatprep.mubr.bf16.mxu1 %v2175_v22  ;;  %1964 = vmatpush3.bf16.msra.mxu1 %v2191_v40 }
  0x4f   : > { %1965 = vmatprep.subr.bf16.mxu1 %v2291_v15 }
  0x50   : > { %1938 = vmatpush3.bf16.msra.mxu0 %v2171_v20 }
  0x51   : > { %1939 = vmatprep.subr.bf16.mxu0 %v2291_v15 }
  0x52   : > { %1966 = vmatpush3.bf16.msra.mxu1 %v2192_v41 }
  0x53   : > { %1140 = vmatmul.mubr.bf16.gmra.mrb[16].mxu0 %v2174_v23  ;;  %1967 = vmatprep.subr.bf16.mxu1 %v2291_v15 }
  0x54   : > { %1147 = vmatprep.mubr.bf16.mxu0 %v1679_v28  ;;  %1940 = vmatpush3.bf16.msra.mxu0 %v2177_v24 }
  0x55   : > { %1196 = vmatmul.mubr.bf16.gmra.mrb[16].mxu1 %v2178_v27  ;;  %1941 = vmatprep.subr.bf16.mxu0 %v2291_v15 }
  0x56   : > { %1203 = vmatprep.mubr.bf16.mxu1 %v1681_v29  ;;  %1968 = vmatpush3.bf16.msra.mxu1 %v2193_v42 }
  0x57   : > { %1969 = vmatprep.subr.bf16.mxu1 %v2291_v15 }
  0x58   : > { %1942 = vmatpush3.bf16.msra.mxu0 %v2179_v30 }
  0x59   : > { %1943 = vmatprep.subr.bf16.mxu0 %v2291_v15 }
  0x5a   : > { %1970 = vmatpush3.bf16.msra.mxu1 %v2194_v43 }
  0x5b   : > { %1148 = vmatmul.mubr.bf16.gmra.mrb[20].mxu0 %v1678_v31  ;;  %1971 = vmatprep.subr.bf16.mxu1 %v2291_v15 }
  0x5c   : > { %1951 = vmatprep.mubr.msk.bf16.mxu0 %vm2292_vm0, %v2291_v15  ;;  %1944 = vmatpush3.bf16.msra.mxu0 %v2183_v32 }
  0x5d   : > { %1204 = vmatmul.mubr.bf16.gmra.mrb[20].mxu1 %v1680_v33  ;;  %1945 = vmatprep.subr.bf16.mxu0 %v2291_v15 }
  0x5e   : > { %1979 = vmatprep.mubr.msk.bf16.mxu1 %vm2292_vm0, %v2291_v15  ;;  %1972 = vmatpush3.bf16.msra.mxu1 %v2195_v44 }
  0x5f   : > { %1973 = vmatprep.subr.bf16.mxu1 %v2291_v15 }
  0x60   : > { %1946 = vmatpush3.bf16.msra.mxu0 %v2185_v34 }
  0x61   : > { %1947 = vmatprep.subr.bf16.mxu0 %v2291_v15 }
  0x62   : > { %1974 = vmatpush3.bf16.msra.mxu1 %v2196_v45 }
  0x63   : > { %1975 = vmatprep.subr.bf16.mxu1 %v2291_v15 }
  0x64   : > { %1948 = vmatpush3.bf16.msra.mxu0 %v2186_v35 }
  0x65   : > { %1949 = vmatprep.subr.bf16.mxu0 %v2291_v15 }
  0x66   : > { %1976 = vmatpush3.bf16.msra.mxu1 %v2197_v46 }
  0x67   : > { %1977 = vmatprep.subr.bf16.mxu1 %v2291_v15 }
  0x68   : > { %1950 = vmatpush3.bf16.msra.mxu0 %v2187_v36 }
  0x6a   : > { %1978 = vmatpush3.bf16.msra.mxu1 %v2198_v47 }
  0x6b   : > { %1952 = vmatmul.mubr.bf16.vlgmr.msra.gmra.mrb[24].mxu0 %v2188_v37 }
  0x6c   : > { %1955 = vmatprep.mubr.msk.bf16.mxu0 %vm2292_vm0, %v2291_v15 }
  0x73   : > { %1956 = vmatmul.mubr.bf16.gmra.mrb[28].mxu0 %v2189_v38 }
  0x74   : > { %1959 = vmatprep.mubr.msk.bf16.mxu0 %vm2292_vm0, %v2291_v15 }
  0x7b   : > { %1960 = vmatmul.mubr.bf16.gmra.mrb[32].mxu0 %v2190_v39 }
  0xfe   : > { %v1793_v48 = vpop.f32.mrb[0].mxu0 }
  0xff   : > { %v1794_v50 = vpop.f32.mrb[1].mxu0 }
 0x100   : > { %v1795_v51 = vadd.f32 %v1794_v50, %v1793_v48  ;;  %v1796_v52 = vpop.f32.mrb[2].mxu0  ;;  %v1827_v53 = vpop.f32.mrb[0].mxu1 }
 0x101   : > { %v1797_v54 = vpop.f32.mrb[3].mxu0  ;;  %v1828_v57 = vpop.f32.mrb[1].mxu1 }
 0x102   : > { %v1022_v55 = vadd.f32 %v1795_v51, %v1655_v49  ;;  %v1798_v56 = vadd.f32 %v1797_v54, %v1796_v52  ;;  %v1829_v58 = vadd.f32 %v1828_v57, %v1827_v53  ;;  %v1830_v59 = vpop.f32.mrb[2].mxu1 }
 0x103   : > { %v1831_v61 = vpop.f32.mrb[3].mxu1 }
 0x104   : > { %v1025_v60 = vadd.f32 %v1798_v56, %v1655_v49  ;;  %v1078_v62 = vadd.f32 %v1829_v58, %v1022_v55  ;;  %v1832_v63 = vadd.f32 %v1831_v61, %v1830_v59 }
 0x106   : > { %v1081_v0 = vadd.f32 %v1832_v63, %v1025_v60  ;;  %v1799_v1 = vpop.f32.mrb[4].mxu0 }
 0x107   : > { %v1800_v2 = vpop.f32.mrb[5].mxu0 }
 0x108   : > { %v1801_v3 = vadd.f32 %v1800_v2, %v1799_v1  ;;  %v1802_v4 = vpop.f32.mrb[6].mxu0  ;;  %v1833_v5 = vpop.f32.mrb[4].mxu1 }
 0x109   : > { %v1803_v6 = vpop.f32.mrb[7].mxu0  ;;  %v1834_v9 = vpop.f32.mrb[5].mxu1 }
 0x10a   : > { %v1030_v7 = vadd.f32 %v1801_v3, %v1655_v49  ;;  %v1804_v8 = vadd.f32 %v1803_v6, %v1802_v4  ;;  %v1835_v10 = vadd.f32 %v1834_v9, %v1833_v5  ;;  %v1836_v11 = vpop.f32.mrb[6].mxu1 }
 0x10b   : > { %v1837_v13 = vpop.f32.mrb[7].mxu1 }
 0x10c   : > { %v1033_v12 = vadd.f32 %v1804_v8, %v1655_v49  ;;  %v1086_v14 = vadd.f32 %v1835_v10, %v1030_v7  ;;  %v1838_v16 = vadd.f32 %v1837_v13, %v1836_v11 }
 0x10e   : > { %v1089_v17 = vadd.f32 %v1838_v16, %v1033_v12  ;;  %v1805_v18 = vpop.f32.mrb[8].mxu0 }
 0x10f   : > { %v1806_v19 = vpop.f32.mrb[9].mxu0 }
 0x110   : > { %v1807_v20 = vadd.f32 %v1806_v19, %v1805_v18  ;;  %v1808_v21 = vpop.f32.mrb[10].mxu0  ;;  %v1839_v24 = vpop.f32.mrb[8].mxu1 }
 0x111   : > { %v1809_v22 = vpop.f32.mrb[11].mxu0  ;;  %v1840_v25 = vpop.f32.mrb[9].mxu1 }
 0x112   : > { %v1038_v23 = vadd.f32 %v1807_v20, %v1655_v49  ;;  %v1841_v26 = vadd.f32 %v1840_v25, %v1839_v24  ;;  %v1842_v27 = vpop.f32.mrb[10].mxu1 }
 0x113   : > { %v1843_v28 = vpop.f32.mrb[11].mxu1 }
 0x114   : > { %v1094_v29 = vadd.f32 %v1841_v26, %v1038_v23 }
 0x11e   : > { %v1861_v30 = vpop.f32.mrb[12].mxu0 }
 0x11f   : > { %v1862_v31 = vpop.f32.mrb[13].mxu0 }
 0x120   : > { %v1863_v32 = vadd.f32 %v1862_v31, %v1861_v30  ;;  %v1864_v33 = vpop.f32.mrb[14].mxu0  ;;  %v1895_v34 = vpop.f32.mrb[12].mxu1 }
 0x121   : > { %v1865_v35 = vpop.f32.mrb[15].mxu0  ;;  %v1896_v38 = vpop.f32.mrb[13].mxu1 }
 0x122   : > { %v1134_v36 = vadd.f32 %v1863_v32, %v1078_v62  ;;  %v1866_v37 = vadd.f32 %v1865_v35, %v1864_v33  ;;  %v1897_v39 = vadd.f32 %v1896_v38, %v1895_v34  ;;  %v1898_v40 = vpop.f32.mrb[14].mxu1 }
 0x123   : > { %v1899_v42 = vpop.f32.mrb[15].mxu1 }
 0x124   : > { %v1137_v41 = vadd.f32 %v1866_v37, %v1081_v0  ;;  %v1900_v43 = vadd.f32 %v1899_v42, %v1898_v40  ;;  %v1190_v44 = vadd.f32 %v1897_v39, %v1134_v36 }
 0x126   : > { %v1867_v45 = vpop.f32.mrb[16].mxu0  ;;  %v1193_v47 = vadd.f32 %v1900_v43, %v1137_v41  ;;  %v1755_v41 = vld [vmem:[%s2727_s4] ss:$0 sm:$0xff] }
 0x127   : > { %v1868_v46 = vpop.f32.mrb[17].mxu0 }
 0x128   : > { %v1869_v48 = vadd.f32 %v1868_v46, %v1867_v45  ;;  %v1870_v49 = vpop.f32.mrb[18].mxu0  ;;  %v1901_v50 = vpop.f32.mrb[16].mxu1 }
 0x129   : > { %v1871_v51 = vpop.f32.mrb[19].mxu0  ;;  %v1902_v54 = vpop.f32.mrb[17].mxu1 }
 0x12a   : > { %v1142_v52 = vadd.f32 %v1869_v48, %v1086_v14  ;;  %v1872_v53 = vadd.f32 %v1871_v51, %v1870_v49  ;;  %v1903_v55 = vadd.f32 %v1902_v54, %v1901_v50  ;;  %v1904_v56 = vpop.f32.mrb[18].mxu1 }
 0x12b   : > { %v1905_v58 = vpop.f32.mrb[19].mxu1 }
 0x12c   : > { %v1145_v57 = vadd.f32 %v1872_v53, %v1089_v17  ;;  %v1906_v59 = vadd.f32 %v1905_v58, %v1904_v56  ;;  %v1198_v60 = vadd.f32 %v1903_v55, %v1142_v52 }
 0x12e   : > { %v1873_v61 = vpop.f32.mrb[20].mxu0  ;;  %v1201_v63 = vadd.f32 %v1906_v59, %v1145_v57 }
 0x12f   : > { %v1874_v62 = vpop.f32.mrb[21].mxu0 }
 0x130   : > { %v1875_v0 = vadd.f32 %v1874_v62, %v1873_v61  ;;  %v1876_v1 = vpop.f32.mrb[22].mxu0  ;;  %v1907_v2 = vpop.f32.mrb[20].mxu1 }
 0x131   : > { %v1877_v3 = vpop.f32.mrb[23].mxu0  ;;  %v1908_v5 = vpop.f32.mrb[21].mxu1 }
 0x132   : > { %v1150_v4 = vadd.f32 %v1875_v0, %v1094_v29  ;;  %v1909_v6 = vadd.f32 %v1908_v5, %v1907_v2  ;;  %v1910_v7 = vpop.f32.mrb[22].mxu1 }
 0x133   : > { %v1911_v8 = vpop.f32.mrb[23].mxu1 }
 0x134   : > { %v1206_v9 = vadd.f32 %v1909_v6, %v1150_v4 }
 0x13e   : > { %v1245_v10 = vpop.f32.mrb[24].mxu0 }
 0x13f   : > { %v1246_v11 = vadd.f32 %v1245_v10, %v1190_v44  ;;  %v1953_v12 = vpop.f32.mrb[25].mxu0 }
 0x140   : > { %v1248_v13 = vpop.f32.mrb[26].mxu0 }
 0x141   : > { %v1272_v14 = vmul.f32 0.1, %v1246_v11  ;;  %v1249_v16 = vadd.f32 %v1248_v13, %v1193_v47  ;;  %v1954_v17 = vpop.f32.mrb[27].mxu0  ;;  %vm1267_vm1 = vcmp.ge.f32.partialorder %v1246_v11, 0.0 }
 0x143   : > { %vm1268_vm2 = vcmp.ge.f32.partialorder %v1249_v16, 0.0  ;;  %v1273_v18 = vmul.f32 0.1, %v1249_v16  ;;  %v1277_v19 = vsel %vm1267_vm1, %v1246_v11, %v1272_v14 }
 0x145   : > { %v1278_v20 = vsel %vm1268_vm2, %v1249_v16, %v1273_v18 }
 0x146   : > { %v1282_v21 = vpack.c.bf16 %v1278_v20, %v1277_v19  ;;  %v1253_v22 = vpop.f32.mrb[28].mxu0 }
 0x147   : > { %v1254_v23 = vadd.f32 %v1253_v22, %v1198_v60  ;;  %v1957_v24 = vpop.f32.mrb[29].mxu0 }
 0x148   : > { %v1256_v25 = vpop.f32.mrb[30].mxu0  ;;  %1980 = vmatmul.mubr.bf16.vlgmr.msra.gmra.mrb[24].mxu1 %v1282_v21 }
 0x149   : > { %v1274_v26 = vmul.f32 0.1, %v1254_v23  ;;  %v1257_v27 = vadd.f32 %v1256_v25, %v1201_v63  ;;  %v1958_v28 = vpop.f32.mrb[31].mxu0  ;;  %1983 = vmatprep.mubr.msk.bf16.mxu1 %vm2292_vm0, %v2291_v15  ;;  %vm1269_vm3 = vcmp.ge.f32.partialorder %v1254_v23, 0.0 }
 0x14b   : > { %vm1270_vm4 = vcmp.ge.f32.partialorder %v1257_v27, 0.0  ;;  %v1275_v29 = vmul.f32 0.1, %v1257_v27  ;;  %v1279_v30 = vsel %vm1269_vm3, %v1254_v23, %v1274_v26 }
 0x14d   : > { %v1280_v31 = vsel %vm1270_vm4, %v1257_v27, %v1275_v29 }
 0x14e   : > { %v1261_v32 = vpop.f32.mrb[32].mxu0  ;;  %v1283_v33 = vpack.c.bf16 %v1280_v31, %v1279_v30 }
 0x14f   : > { %v1262_v34 = vadd.f32 %v1261_v32, %v1206_v9  ;;  %v1961_v35 = vpop.f32.mrb[33].mxu0 }
 0x150   : > { %v1264_v36 = vpop.f32.mrb[34].mxu0  ;;  %1984 = vmatmul.mubr.bf16.gmra.mrb[28].mxu1 %v1283_v33 }
 0x151   : > { %vm1271_vm5 = vcmp.ge.f32.partialorder %v1262_v34, 0.0  ;;  %v1276_v37 = vmul.f32 0.1, %v1262_v34  ;;  %v1962_v38 = vpop.f32.mrb[35].mxu0  ;;  %1987 = vmatprep.mubr.msk.bf16.mxu1 %vm2292_vm0, %v2291_v15 }
 0x153   : > { %v1281_v39 = vsel %vm1271_vm5, %v1262_v34, %v1276_v37 }
 0x154   : > { %v1284_v40 = vpack.c.bf16 %v1281_v39, %v1281_v39 }
 0x158   : > { %1988 = vmatmul.mubr.bf16.gmra.mrb[32].mxu1 %v1284_v40 }
 0x21b   : > { %v1390_v42 = vpop.f32.mrb[24].mxu1 }
 0x21c   : > { %v1391_v43 = vadd.f32 %v1755_v41, %v1390_v42  ;;  %v1981_v44 = vpop.f32.mrb[25].mxu1 }
 0x21d   : > { %v1393_v45 = vpop.f32.mrb[26].mxu1 }
 0x21e   : > { %1412 = vst [vmem:[%s2660_s16] sm:$0xff] %v1391_v43  ;;  %v1394_v15 = vadd.f32 %v1755_v41, %v1393_v45  ;;  %v1982_v46 = vpop.f32.mrb[27].mxu1 }
 0x220   : > { %1413 = vst [vmem:[%s2660_s16 + $0x8] sm:$0xff] %v1394_v15 }
 0x223   : > { %v1398_v47 = vpop.f32.mrb[28].mxu1 }
 0x224   : > { %v1399_v48 = vadd.f32 %v1755_v41, %v1398_v47  ;;  %v1985_v49 = vpop.f32.mrb[29].mxu1 }
 0x225   : > { %v1401_v50 = vpop.f32.mrb[30].mxu1 }
 0x226   : > { %1414 = vst [vmem:[%s2660_s16 + $0x10] sm:$0xff] %v1399_v48  ;;  %v1402_v51 = vadd.f32 %v1755_v41, %v1401_v50  ;;  %v1986_v52 = vpop.f32.mrb[31].mxu1 }
 0x228   : > { %1415 = vst [vmem:[%s2660_s16 + $0x18] sm:$0xff] %v1402_v51  ;;  %1423 = sbr.rel (!%p2348_p4) target bundleno = 620 (0x26c), region = 44 }
 0x22b   : > { %v1406_v53 = vpop.f32.mrb[32].mxu1 }
 0x22c   : > { %v1407_v54 = vadd.f32 %v1755_v41, %v1406_v53  ;;  %v1989_v55 = vpop.f32.mrb[33].mxu1 }
 0x22d   : > { %v1409_v56 = vpop.f32.mrb[34].mxu1 }
 0x22e   : > { %1416 = vst [vmem:[%s2660_s16 + $0x20] sm:$0xff] %v1407_v54  ;;  %v1990_v57 = vpop.f32.mrb[35].mxu1 }
 0x22f   : > { %s2737_s18 = smov (!%p1426_p8, %s1425_s18), 5 }
 0x230   : > { %s1764_s24 = sshll.u32 %s2737_s18, 7 }
 0x231   : > { %p1767_p9 = scmp.eq.s32.totalorder %s1764_s24, 0 }
 0x232   : > { %2199 = sdivrem.u32 (!%p1767_p9), %s2737_s18, 5 }
 0x233   : > { %1434 = sbr.rel (%p1767_p9) target bundleno = 620 (0x26c), region = 48 }
 0x23b   : > { %s2680_s26 = spop.drf %2199 }
 0x23c   : > { %p1768_p10 = scmp.le.s32.totalorder %s2680_s26, 0 }
 0x23d   : > { %s2730_s21 = smov (!%p1768_p10), %s2674_s23  ;;  %s2731_s9 = smov (!%p1768_p10), %s2660_s16 }
 0x23e   : > { %1606 = sbr.rel (%p1768_p10) target bundleno = 591 (0x24f), region = 124  ;;  %s2689_s27 = smov (!%p1768_p10), 0  }
 0x23f   : > { %s2691_s28 = smov (!%p1768_p10), 0  }
 0x245 LB: >> { %v1506_v58 = vld [vmem:[%s2265_s9] sm:$0xff]  ;;  %v1508_v59 = vld [vmem:[%s2265_s9 + $0x8] sm:$0xff]  ;;  %v1510_v60 = vld [vmem:[%s2265_s9 + $0x10] sm:$0xff]  ;;  %s1516_s29 = sadd.s32 1, %s2269_s27  ;;  %s1500_s28 = sadd.s32 1, %s2273_s28   ;;  %s2273_s28 = sphi %s2691_s28, %s1500_s28   ;;  %s2269_s27 = sphi %s2689_s27, %s2732_s27   ;;  %s2265_s9 = sphi %s2731_s9, %s1521_s9   ;;  %s2261_s21 = sphi %s2730_s21, %s1522_s21  }
 0x246   : >> { %1507 = vst [vmem:[%s2261_s21] sm:$0xff] %v1506_v58  ;;  %1509 = vst [vmem:[%s2261_s21 + $0x8] sm:$0xff] %v1508_v59  ;;  %v1512_v61 = vld [vmem:[%s2265_s9 + $0x18] sm:$0xff]  ;;  %v1514_v62 = vld [vmem:[%s2265_s9 + $0x20] sm:$0xff]  ;;  %p1517_p11 = scmp.ge.s32.totalorder %s1516_s29, %s2680_s26  ;;  %p1499_p12 = scmp.ge.s32.totalorder %s1500_s28, %s2680_s26 }
 0x247   : >> { %1511 = vst [vmem:[%s2261_s21 + $0x10] sm:$0xff] %v1510_v60  ;;  %1513 = vst [vmem:[%s2261_s21 + $0x18] sm:$0xff] %v1512_v61 }
 0x248   : >> { %1515 = vst [vmem:[%s2261_s21 + $0x20] sm:$0xff] %v1514_v62  ;;  %s2739_s29 = smov (%p1517_p11, %s1516_s29), 0  ;;  %1502 = sbr.rel (!%p1499_p12) target bundleno = 581 (0x245), region = 130 }
 0x249   : >> { %s1519_s30 = smul.u32 40, %s2739_s29  ;;  %s2732_s27 = smov %s2739_s29 }
 0x24b   : >> { %s1521_s9 = scalar_lea.vmem %s2660_s16, %s1519_s30 [#allocation2]   ;;  %s1522_s21 = scalar_lea.vmem %s2674_s23, %s1519_s30  }
 0x24f PF: > { %2201 = sdivrem.u32 %s2737_s18, 5 }
 0x250   : > { %s1769_s6 = smul.u32 40, %s2680_s26 }
 0x252   : > { %s1527_s7 = scalar_lea.vmem %s2660_s16, %s1769_s6 [#allocation2]   ;;  %s1529_s8 = scalar_lea.vmem %s2674_s23, %s1769_s6  }
 0x258   : > { %s2202_s11 = spop.drf %2201 }
 0x259   : > { %p1771_p13 = scmp.le.s32.totalorder %s2202_s11, 0 }
 0x25a   : > { %s2275_s12 = smov (!%p1771_p13), %s1529_s8   ;;  %s2279_s13 = smov (!%p1771_p13), %s1527_s7  }
 0x25b   : > { %1620 = sbr.rel (%p1771_p13) target bundleno = 620 (0x26c), region = 135  ;;  %s2283_s14 = smov (!%p1771_p13), 0  }
 0x25c   : > { %s2287_s15 = smov (!%p1771_p13), 0  }
 0x262 LB: >> { %v1539_v63 = vld [vmem:[%s2281_s13] sm:$0xff]  ;;  %s1541_s17 = sadd.s32 1, %s2285_s14  ;;  %s1533_s15 = sadd.s32 1, %s2289_s15   ;;  %s2289_s15 = sphi %s2287_s15, %s1533_s15   ;;  %s2285_s14 = sphi %s2283_s14, %s2284_s14   ;;  %s2281_s13 = sphi %s2279_s13, %s1546_s13   ;;  %s2277_s12 = sphi %s2275_s12, %s1547_s12  }
 0x263   : >> { %1540 = vst [vmem:[%s2277_s12] sm:$0xff] %v1539_v63  ;;  %p1542_p0 = scmp.ge.s32.totalorder %s1541_s17, %s2202_s11  ;;  %p1532_p1 = scmp.ge.s32.totalorder %s1533_s15, %s2202_s11 }
 0x265   : >> { %s2741_s17 = smov (%p1542_p0, %s1541_s17), 0  ;;  %1535 = sbr.rel (!%p1532_p1) target bundleno = 610 (0x262), region = 141 }
 0x266   : >> { %s1772_s16 = sshll.u32 %s2741_s17, 3  ;;  %s2284_s14 = smov %s2741_s17  }
 0x267   : >> { %s1546_s13 = scalar_lea.vmem %s1527_s7, %s1772_s16 [#allocation2]   ;;  %s1547_s12 = scalar_lea.vmem %s1529_s8, %s1772_s16  }
 0x26c PF: > { %p12_p2 = scmp.ge.s32.totalorder %s2338_s22, 4   ;;  %s2733_s18 = smov %s2253_s19 }
 0x26d   : > { %s2734_s19 = smov %s2346_s25  ;;  %s2735_s20 = smov %s2338_s22 }
 0x26e   :  { %14 = sbr.rel (!%p12_p2) target bundleno = 2 (0x2), region = 152 }

</bundles_post_ra>
